<compile_context>
chip_gen: v5e
topology: v5e:2x2
jax: 0.10.0
libtpu: 0.0.40
codegen_flags: <defaults>
</compile_context>

<pallas_src>
import functools

import jax
import jax.numpy as jnp
from jax.experimental import pallas as pl
from jax.experimental.pallas import tpu as pltpu

F32 = jnp.float32


# ------------------------------ fused kernel --------------------------------

def fused_kernel(taps_ref, meta_ref,
                 c1w_ref, c1a_ref, s1_ref,
                 c2w_ref, c2a_ref, s2_ref,
                 c3w_ref, c3a_ref, s3_ref,
                 c4w_ref, c4a_ref,
                 mw_ref, ma_ref,
                 fw_ref, fa_ref,
                 hw1_ref, hb1_ref, hw2_ref, hb2_ref,
                 out_ref, *, W):
    """Whole HorizonCNN forward for one batch element (grid axis = batch).

    taps_ref : (1, H*W, 9)  pre-expanded taps of the 1-channel input image
    meta_ref : (1, 1, 3)    metadata features
    c*w_ref  : (9*Cin, Cout) conv weights (tap-major K)
    c*a_ref  : (3, Cout)     rows = [conv bias, bn scale, bn shift]
    s*_ref   : (HoWo, HW)    0/1 stride-2 selection matrix for the 2x2 pool
    mw/ma, fw/fa : metadata / fusion linear weights and [bias, scale, shift]
    hw1/hb1  : fused head hidden layer (loc1 | az1), (128,128) / (1,128)
    hw2/hb2  : fused head output layer block-diag(loc2, az2), (128,3) / (1,3)
    out_ref  : (1, 1, 3)   lanes 0:2 = location, lane 2 = azimuth
    """

    def shifted(x, shifts):
        """List of row-shifted copies: y_s[p] = x[p + s] (zeros outside)."""
        r, c = x.shape
        lead = max(0, -min(shifts))
        tail = max(0, max(shifts))
        parts = []
        if lead:
            parts.append(jnp.zeros((lead, c), x.dtype))
        parts.append(x)
        if tail:
            parts.append(jnp.zeros((tail, c), x.dtype))
        xp = jnp.concatenate(parts, axis=0) if len(parts) > 1 else x
        return [xp[lead + s:lead + s + r, :] for s in shifts]

    def conv3x3_relu(x, w_ref, aff_ref, width):
        """x: (HW, Cin) row-major with row width `width` -> (HW, Cout)."""
        hw, cin = x.shape
        # column (w) coordinate of each output row; width is a power of two.
        col = jax.lax.broadcasted_iota(jnp.int32, (hw, cin), 0) & (width - 1)
        shifts = [(t // 3 - 1) * width + (t % 3 - 1) for t in range(9)]
        taps = shifted(x, shifts)
        for t in range(9):
            kw = t % 3
            if kw == 0:                       # reads column w-1: invalid at w==0
                taps[t] = jnp.where(col == 0, 0.0, taps[t])
            elif kw == 2:                     # reads column w+1: invalid at w==W-1
                taps[t] = jnp.where(col == width - 1, 0.0, taps[t])
        xc = jnp.concatenate(taps, axis=1)                     # (HW, 9*Cin)
        aff = aff_ref[...]
        y = jnp.dot(xc, w_ref[...], preferred_element_type=F32) + aff[0:1, :]
        return jnp.maximum(y, 0.0)

    def pool2x2_bn(y, width, sel_ref, aff_ref):
        """2x2 max-pool (stride 2) + folded BatchNorm affine."""
        a, b, c, d = shifted(y, [0, 1, width, width + 1])
        m = jnp.maximum(jnp.maximum(a, b), jnp.maximum(c, d))
        p = jnp.dot(sel_ref[...], m, preferred_element_type=F32)
        aff = aff_ref[...]
        return p * aff[1:2, :] + aff[2:3, :]

    # ----------------------------- conv tower -------------------------------
    a1 = c1a_ref[...]
    x = jnp.dot(taps_ref[0], c1w_ref[...], preferred_element_type=F32) + a1[0:1, :]
    x = jnp.maximum(x, 0.0)                                    # (H*W, 32)
    x = pool2x2_bn(x, W, s1_ref, c1a_ref)                      # (H*W/4, 32)
    x = conv3x3_relu(x, c2w_ref, c2a_ref, W // 2)
    x = pool2x2_bn(x, W // 2, s2_ref, c2a_ref)                 # (H*W/16, 64)
    x = conv3x3_relu(x, c3w_ref, c3a_ref, W // 4)
    x = pool2x2_bn(x, W // 4, s3_ref, c3a_ref)                 # (H*W/64, 128)
    x = conv3x3_relu(x, c4w_ref, c4a_ref, W // 8)              # (hw4, 256)

    a4 = c4a_ref[...]
    feat = jnp.sum(x, axis=0, keepdims=True) * (1.0 / x.shape[0])   # GAP
    feat = feat * a4[1:2, :] + a4[2:3, :]                      # (1, 256)

    # ------------------------------ MLP head --------------------------------
    def linear_relu_bn(v, w_ref, aff_ref):
        aff = aff_ref[...]
        y = jnp.dot(v, w_ref[...], preferred_element_type=F32) + aff[0:1, :]
        y = jnp.maximum(y, 0.0)
        return y * aff[1:2, :] + aff[2:3, :]

    meta = linear_relu_bn(meta_ref[0], mw_ref, ma_ref)          # (1, 64)
    fused = linear_relu_bn(jnp.concatenate([feat, meta], axis=1),
                           fw_ref, fa_ref)                      # (1, 128)

    # Fused (location | azimuth) heads: two matmuls, one store.
    h = jnp.dot(fused, hw1_ref[...], preferred_element_type=F32) + hb1_ref[...]
    h = jnp.maximum(h, 0.0)                                     # (1, 128)
    out_ref[0] = jnp.dot(h, hw2_ref[...], preferred_element_type=F32) + hb2_ref[...]


# ------------------------------ JAX wrapper ----------------------------------

def horizon_cnn_forward(params, image_nchw, metadata):
    n, _, h, w = image_nchw.shape
    assert h % 8 == 0 and w % 8 == 0 and (w & (w - 1)) == 0, "expects pow2 width"

    # --- tiny JAX glue: layer-1 im2col (Cin=1) and pool-selection matrices ---
    img = image_nchw[:, 0]                                      # (N, H, W)
    imgp = jnp.pad(img, ((0, 0), (1, 1), (1, 1)))
    taps1 = jnp.stack([imgp[:, dy:dy + h, dx:dx + w].reshape(n, h * w)
                       for dy in range(3) for dx in range(3)], axis=-1)  # (N,HW,9)

    def pool_select(hh, ww):
        ho, wo = hh // 2, ww // 2
        r = jnp.arange(ho * wo)
        idx = (r // wo) * 2 * ww + (r % wo) * 2
        return jax.nn.one_hot(idx, hh * ww, dtype=F32)          # (ho*wo, hh*ww)

    s1 = pool_select(h, w)
    s2 = pool_select(h // 2, w // 2)
    s3 = pool_select(h // 4, w // 4)
    meta3 = metadata.reshape(n, 1, metadata.shape[1])

    # --- fuse the two heads into one hidden matmul + one block-diag matmul ---
    head_w1 = jnp.concatenate([params["loc1_w"], params["az1_w"]], axis=1)   # (128,128)
    head_b1 = jnp.concatenate([params["loc1_b"], params["az1_b"]], axis=1)   # (1,128)
    head_w2 = jnp.zeros((head_w1.shape[1], 3), F32)
    head_w2 = head_w2.at[:64, :2].set(params["loc2_w"])
    head_w2 = head_w2.at[64:, 2:].set(params["az2_w"])                       # (128,3)
    head_b2 = jnp.concatenate([params["loc2_b"], params["az2_b"]], axis=1)   # (1,3)

    weights = (params["conv0_w"], params["conv0_aff"], s1,
               params["conv1_w"], params["conv1_aff"], s2,
               params["conv2_w"], params["conv2_aff"], s3,
               params["conv3_w"], params["conv3_aff"],
               params["meta_w"], params["meta_aff"],
               params["fuse_w"], params["fuse_aff"],
               head_w1, head_b1, head_w2, head_b2)

    def bcast(arr):
        nd = arr.ndim
        return pl.BlockSpec(arr.shape, lambda i, _nd=nd: (0,) * _nd)

    kernel = functools.partial(fused_kernel, W=w)
    out = pl.pallas_call(
        kernel,
        out_shape=jax.ShapeDtypeStruct((n, 1, 3), F32),
        grid=(n,),
        in_specs=[pl.BlockSpec((1, h * w, 9), lambda i: (i, 0, 0)),
                  pl.BlockSpec((1, 1, meta3.shape[2]), lambda i: (i, 0, 0))]
                 + [bcast(a) for a in weights],
        out_specs=pl.BlockSpec((1, 1, 3), lambda i: (i, 0, 0)),
        compiler_params=pltpu.CompilerParams(dimension_semantics=("parallel",)),
    )(taps1, meta3, *weights)
    out = out.reshape(n, 3)
    return out[:, 0:2], out[:, 2:3]


# --------------------------------- params ------------------------------------

def init_params(key):
    keys = iter(jax.random.split(key, 64))

    def dense(fan_in, shape):
        bound = 1.0 / float(fan_in) ** 0.5
        return jax.random.uniform(next(keys), shape, F32, -bound, bound)

    def bn_affine(c):
        gamma = jax.random.uniform(next(keys), (1, c), F32, 0.5, 1.5)
        beta = jax.random.uniform(next(keys), (1, c), F32, -0.5, 0.5)
        running_mean = jnp.zeros((1, c), F32)
        running_var = jnp.ones((1, c), F32)
        scale = gamma / jnp.sqrt(running_var + 1e-5)
        shift = beta - running_mean * scale
        return scale, shift

    p = {}
    for li, (cin, cout) in enumerate([(1, 32), (32, 64), (64, 128), (128, 256)]):
        p[f"conv{li}_w"] = dense(cin * 9, (9 * cin, cout))       # tap-major K
        b = dense(cin * 9, (1, cout))
        sc, sh = bn_affine(cout)
        p[f"conv{li}_aff"] = jnp.concatenate([b, sc, sh], axis=0)  # (3, cout)

    def lin(name, fin, fout, with_bn):
        p[f"{name}_w"] = dense(fin, (fin, fout))
        b = dense(fin, (1, fout))
        if with_bn:
            sc, sh = bn_affine(fout)
            p[f"{name}_aff"] = jnp.concatenate([b, sc, sh], axis=0)
        else:
            p[f"{name}_b"] = b

    lin("meta", 3, 64, True)
    lin("fuse", 256 + 64, 128, True)
    lin("loc1", 128, 64, False)
    lin("loc2", 64, 2, False)
    lin("az1", 128, 64, False)
    lin("az2", 64, 1, False)
    return p


# ----------------------- plain-JAX reference (for checking) ------------------

def reference_forward(params, image_nchw, metadata):
    x = jnp.transpose(image_nchw, (0, 2, 3, 1))

    def conv_relu(x, w, aff):
        cin, cout = w.shape[0] // 9, w.shape[1]
        wk = w.reshape(3, 3, cin, cout)
        y = jax.lax.conv_general_dilated(
            x, wk, window_strides=(1, 1), padding="SAME",
            dimension_numbers=("NHWC", "HWIO", "NHWC"))
        return jax.nn.relu(y + aff[0].reshape(1, 1, 1, cout))

    def pool_bn(x, aff):
        y = jax.lax.reduce_window(x, -jnp.inf, jax.lax.max,
                                  (1, 2, 2, 1), (1, 2, 2, 1), "VALID")
        return y * aff[1].reshape(1, 1, 1, -1) + aff[2].reshape(1, 1, 1, -1)

    for li in range(3):
        x = conv_relu(x, params[f"conv{li}_w"], params[f"conv{li}_aff"])
        x = pool_bn(x, params[f"conv{li}_aff"])
    x = conv_relu(x, params["conv3_w"], params["conv3_aff"])
    feat = (jnp.mean(x, axis=(1, 2)) * params["conv3_aff"][1]
            + params["conv3_aff"][2])

    def lin(v, name, relu=False, bn=False):
        y = v @ params[f"{name}_w"]
        if bn:
            aff = params[f"{name}_aff"]
            y = y + aff[0]
            if relu:
                y = jax.nn.relu(y)
            return y * aff[1] + aff[2]
        y = y + params[f"{name}_b"]
        return jax.nn.relu(y) if relu else y

    meta = lin(metadata, "meta", relu=True, bn=True)
    fused = lin(jnp.concatenate([feat, meta], axis=1), "fuse", relu=True, bn=True)
    location = lin(lin(fused, "loc1", relu=True), "loc2")
    azimuth = lin(lin(fused, "az1", relu=True), "az2")
    return location, azimuth


# ----------------------------------- main ------------------------------------

if __name__ == "__main__":
    key = jax.random.PRNGKey(0)
    pkey, ikey, mkey = jax.random.split(key, 3)

    params = init_params(pkey)
    image = jax.random.normal(ikey, (2, 1, 16, 16), F32)    # (N, C=1, H, W)
    metadata = jax.random.normal(mkey, (2, 3), F32)         # (N, num_metadata)

    fwd = jax.jit(horizon_cnn_forward)
    location, azimuth = jax.block_until_ready(fwd(params, image, metadata))

    assert location.shape == (2, 2) and azimuth.shape == (2, 1)

    ref_loc, ref_az = reference_forward(params, image, metadata)
    assert jnp.allclose(location, ref_loc, atol=1e-3, rtol=1e-2)
    assert jnp.allclose(azimuth, ref_az, atol=1e-3, rtol=1e-2)

    print("KERNEL_OK")
</pallas_src>

<mosaic_0001>
module attributes {stable_mosaic.version = 11 : i64} {
  func.func @fused_kernel(%arg0: i32, %arg1: memref<1x256x9xf32, #tpu.memory_space<vmem>>, %arg2: memref<1x1x3xf32, #tpu.memory_space<vmem>>, %arg3: memref<9x32xf32, #tpu.memory_space<vmem>>, %arg4: memref<3x32xf32, #tpu.memory_space<vmem>>, %arg5: memref<64x256xf32, #tpu.memory_space<vmem>>, %arg6: memref<288x64xf32, #tpu.memory_space<vmem>>, %arg7: memref<3x64xf32, #tpu.memory_space<vmem>>, %arg8: memref<16x64xf32, #tpu.memory_space<vmem>>, %arg9: memref<576x128xf32, #tpu.memory_space<vmem>>, %arg10: memref<3x128xf32, #tpu.memory_space<vmem>>, %arg11: memref<4x16xf32, #tpu.memory_space<vmem>>, %arg12: memref<1152x256xf32, #tpu.memory_space<vmem>>, %arg13: memref<3x256xf32, #tpu.memory_space<vmem>>, %arg14: memref<3x64xf32, #tpu.memory_space<vmem>>, %arg15: memref<3x64xf32, #tpu.memory_space<vmem>>, %arg16: memref<320x128xf32, #tpu.memory_space<vmem>>, %arg17: memref<3x128xf32, #tpu.memory_space<vmem>>, %arg18: memref<128x128xf32, #tpu.memory_space<vmem>>, %arg19: memref<1x128xf32, #tpu.memory_space<vmem>>, %arg20: memref<128x3xf32, #tpu.memory_space<vmem>>, %arg21: memref<1x3xf32, #tpu.memory_space<vmem>>, %arg22: memref<1x1x3xf32, #tpu.memory_space<vmem>>) attributes {dimension_semantics = [#tpu.dimension_semantics<parallel>], iteration_bounds = array<i64: 2>, scalar_prefetch = 0 : i64, scratch_operands = 0 : i64, tpu.core_type = #tpu.core_type<tc>, window_params = [{transform_indices = @transform_0, window_bounds = array<i64: 1, 256, 9>}, {transform_indices = @transform_1, window_bounds = array<i64: 1, 1, 3>}, {pipeline_mode = #tpu.pipeline_mode<synchronous>, transform_indices = @transform_2, window_bounds = array<i64: 9, 32>}, {pipeline_mode = #tpu.pipeline_mode<synchronous>, transform_indices = @transform_3, window_bounds = array<i64: 3, 32>}, {pipeline_mode = #tpu.pipeline_mode<synchronous>, transform_indices = @transform_4, window_bounds = array<i64: 64, 256>}, {pipeline_mode = #tpu.pipeline_mode<synchronous>, transform_indices = @transform_5, window_bounds = array<i64: 288, 64>}, {pipeline_mode = #tpu.pipeline_mode<synchronous>, transform_indices = @transform_6, window_bounds = array<i64: 3, 64>}, {pipeline_mode = #tpu.pipeline_mode<synchronous>, transform_indices = @transform_7, window_bounds = array<i64: 16, 64>}, {pipeline_mode = #tpu.pipeline_mode<synchronous>, transform_indices = @transform_8, window_bounds = array<i64: 576, 128>}, {pipeline_mode = #tpu.pipeline_mode<synchronous>, transform_indices = @transform_9, window_bounds = array<i64: 3, 128>}, {pipeline_mode = #tpu.pipeline_mode<synchronous>, transform_indices = @transform_10, window_bounds = array<i64: 4, 16>}, {pipeline_mode = #tpu.pipeline_mode<synchronous>, transform_indices = @transform_11, window_bounds = array<i64: 1152, 256>}, {pipeline_mode = #tpu.pipeline_mode<synchronous>, transform_indices = @transform_12, window_bounds = array<i64: 3, 256>}, {pipeline_mode = #tpu.pipeline_mode<synchronous>, transform_indices = @transform_13, window_bounds = array<i64: 3, 64>}, {pipeline_mode = #tpu.pipeline_mode<synchronous>, transform_indices = @transform_14, window_bounds = array<i64: 3, 64>}, {pipeline_mode = #tpu.pipeline_mode<synchronous>, transform_indices = @transform_15, window_bounds = array<i64: 320, 128>}, {pipeline_mode = #tpu.pipeline_mode<synchronous>, transform_indices = @transform_16, window_bounds = array<i64: 3, 128>}, {pipeline_mode = #tpu.pipeline_mode<synchronous>, transform_indices = @transform_17, window_bounds = array<i64: 128, 128>}, {pipeline_mode = #tpu.pipeline_mode<synchronous>, transform_indices = @transform_18, window_bounds = array<i64: 1, 128>}, {pipeline_mode = #tpu.pipeline_mode<synchronous>, transform_indices = @transform_19, window_bounds = array<i64: 128, 3>}, {pipeline_mode = #tpu.pipeline_mode<synchronous>, transform_indices = @transform_20, window_bounds = array<i64: 1, 3>}, {transform_indices = @transform_21, window_bounds = array<i64: 1, 1, 3>}]} {
    %c0 = arith.constant 0 : index
    %c0_0 = arith.constant 0 : index
    %0 = vector.load %arg4[%c0, %c0_0] : memref<3x32xf32, #tpu.memory_space<vmem>>, vector<3x32xf32>
    %c0_1 = arith.constant 0 : index
    %c0_2 = arith.constant 0 : index
    %c0_3 = arith.constant 0 : index
    %1 = vector.load %arg1[%c0_1, %c0_2, %c0_3] : memref<1x256x9xf32, #tpu.memory_space<vmem>>, vector<1x256x9xf32>
    %2 = vector.shape_cast %1 : vector<1x256x9xf32> to vector<256x9xf32>
    %c0_4 = arith.constant 0 : index
    %c0_5 = arith.constant 0 : index
    %3 = vector.load %arg3[%c0_4, %c0_5] : memref<9x32xf32, #tpu.memory_space<vmem>>, vector<9x32xf32>
    %cst = arith.constant dense<0.000000e+00> : vector<256x32xf32>
    %4 = tpu.matmul %2, %3, %cst {dimension_numbers = #tpu.dot_dimension_numbers<[1], [0], [0], [1], [0, 0, 1, 1], [], []>} : vector<256x9xf32>, vector<9x32xf32>, vector<256x32xf32> -> vector<256x32xf32>
    %5 = vector.extract_strided_slice %0 {offsets = [0, 0], sizes = [1, 32], strides = [1, 1]} : vector<3x32xf32> to vector<1x32xf32>
    %6 = vector.broadcast %5 : vector<1x32xf32> to vector<256x32xf32>
    %7 = arith.addf %4, %6 : vector<256x32xf32>
    %cst_6 = arith.constant 0.000000e+00 : f32
    %8 = vector.broadcast %cst_6 : f32 to vector<256x32xf32>
    %9 = arith.maximumf %7, %8 : vector<256x32xf32>
    %cst_7 = arith.constant 0.000000e+00 : f32
    %10 = vector.broadcast %cst_7 : f32 to vector<17x32xf32>
    %11 = tpu.concatenate %9, %10 in 0 : vector<256x32xf32>, vector<17x32xf32> -> vector<273x32xf32>
    %12 = vector.extract_strided_slice %11 {offsets = [0, 0], sizes = [256, 32], strides = [1, 1]} : vector<273x32xf32> to vector<256x32xf32>
    %13 = vector.extract_strided_slice %11 {offsets = [1, 0], sizes = [256, 32], strides = [1, 1]} : vector<273x32xf32> to vector<256x32xf32>
    %14 = vector.extract_strided_slice %11 {offsets = [16, 0], sizes = [256, 32], strides = [1, 1]} : vector<273x32xf32> to vector<256x32xf32>
    %15 = vector.extract_strided_slice %11 {offsets = [17, 0], sizes = [256, 32], strides = [1, 1]} : vector<273x32xf32> to vector<256x32xf32>
    %16 = arith.maximumf %12, %13 : vector<256x32xf32>
    %17 = arith.maximumf %14, %15 : vector<256x32xf32>
    %18 = arith.maximumf %16, %17 : vector<256x32xf32>
    %c0_8 = arith.constant 0 : index
    %c0_9 = arith.constant 0 : index
    %19 = vector.load %arg5[%c0_8, %c0_9] : memref<64x256xf32, #tpu.memory_space<vmem>>, vector<64x256xf32>
    %cst_10 = arith.constant dense<0.000000e+00> : vector<64x32xf32>
    %20 = tpu.matmul %19, %18, %cst_10 {dimension_numbers = #tpu.dot_dimension_numbers<[1], [0], [0], [1], [0, 0, 1, 1], [], []>} : vector<64x256xf32>, vector<256x32xf32>, vector<64x32xf32> -> vector<64x32xf32>
    %c0_11 = arith.constant 0 : index
    %c0_12 = arith.constant 0 : index
    %21 = vector.load %arg4[%c0_11, %c0_12] : memref<3x32xf32, #tpu.memory_space<vmem>>, vector<3x32xf32>
    %22 = vector.extract_strided_slice %21 {offsets = [1, 0], sizes = [1, 32], strides = [1, 1]} : vector<3x32xf32> to vector<1x32xf32>
    %23 = vector.broadcast %22 : vector<1x32xf32> to vector<64x32xf32>
    %24 = arith.mulf %20, %23 : vector<64x32xf32>
    %25 = vector.extract_strided_slice %21 {offsets = [2, 0], sizes = [1, 32], strides = [1, 1]} : vector<3x32xf32> to vector<1x32xf32>
    %26 = vector.broadcast %25 : vector<1x32xf32> to vector<64x32xf32>
    %27 = arith.addf %24, %26 : vector<64x32xf32>
    %28 = tpu.iota {dimensions = array<i32: 0>} : vector<64x32xi32>
    %c7_i32 = arith.constant 7 : i32
    %29 = vector.broadcast %c7_i32 : i32 to vector<64x32xi32>
    %30 = arith.andi %28, %29 : vector<64x32xi32>
    %cst_13 = arith.constant 0.000000e+00 : f32
    %31 = vector.broadcast %cst_13 : f32 to vector<9x32xf32>
    %cst_14 = arith.constant 0.000000e+00 : f32
    %32 = vector.broadcast %cst_14 : f32 to vector<9x32xf32>
    %33 = tpu.concatenate %31, %27, %32 in 0 : vector<9x32xf32>, vector<64x32xf32>, vector<9x32xf32> -> vector<82x32xf32>
    %34 = vector.extract_strided_slice %33 {offsets = [0, 0], sizes = [64, 32], strides = [1, 1]} : vector<82x32xf32> to vector<64x32xf32>
    %35 = vector.extract_strided_slice %33 {offsets = [1, 0], sizes = [64, 32], strides = [1, 1]} : vector<82x32xf32> to vector<64x32xf32>
    %36 = vector.extract_strided_slice %33 {offsets = [2, 0], sizes = [64, 32], strides = [1, 1]} : vector<82x32xf32> to vector<64x32xf32>
    %37 = vector.extract_strided_slice %33 {offsets = [8, 0], sizes = [64, 32], strides = [1, 1]} : vector<82x32xf32> to vector<64x32xf32>
    %38 = vector.extract_strided_slice %33 {offsets = [9, 0], sizes = [64, 32], strides = [1, 1]} : vector<82x32xf32> to vector<64x32xf32>
    %39 = vector.extract_strided_slice %33 {offsets = [10, 0], sizes = [64, 32], strides = [1, 1]} : vector<82x32xf32> to vector<64x32xf32>
    %40 = vector.extract_strided_slice %33 {offsets = [16, 0], sizes = [64, 32], strides = [1, 1]} : vector<82x32xf32> to vector<64x32xf32>
    %41 = vector.extract_strided_slice %33 {offsets = [17, 0], sizes = [64, 32], strides = [1, 1]} : vector<82x32xf32> to vector<64x32xf32>
    %42 = vector.extract_strided_slice %33 {offsets = [18, 0], sizes = [64, 32], strides = [1, 1]} : vector<82x32xf32> to vector<64x32xf32>
    %c0_i32 = arith.constant 0 : i32
    %43 = vector.broadcast %c0_i32 : i32 to vector<64x32xi32>
    %44 = arith.cmpi eq, %30, %43 : vector<64x32xi32>
    %cst_15 = arith.constant 0.000000e+00 : f32
    %45 = vector.broadcast %cst_15 : f32 to vector<64x32xf32>
    %46 = arith.select %44, %45, %34 : vector<64x32xi1>, vector<64x32xf32>
    %c7_i32_16 = arith.constant 7 : i32
    %47 = vector.broadcast %c7_i32_16 : i32 to vector<64x32xi32>
    %48 = arith.cmpi eq, %30, %47 : vector<64x32xi32>
    %cst_17 = arith.constant 0.000000e+00 : f32
    %49 = vector.broadcast %cst_17 : f32 to vector<64x32xf32>
    %50 = arith.select %48, %49, %36 : vector<64x32xi1>, vector<64x32xf32>
    %c0_i32_18 = arith.constant 0 : i32
    %51 = vector.broadcast %c0_i32_18 : i32 to vector<64x32xi32>
    %52 = arith.cmpi eq, %30, %51 : vector<64x32xi32>
    %cst_19 = arith.constant 0.000000e+00 : f32
    %53 = vector.broadcast %cst_19 : f32 to vector<64x32xf32>
    %54 = arith.select %52, %53, %37 : vector<64x32xi1>, vector<64x32xf32>
    %c7_i32_20 = arith.constant 7 : i32
    %55 = vector.broadcast %c7_i32_20 : i32 to vector<64x32xi32>
    %56 = arith.cmpi eq, %30, %55 : vector<64x32xi32>
    %cst_21 = arith.constant 0.000000e+00 : f32
    %57 = vector.broadcast %cst_21 : f32 to vector<64x32xf32>
    %58 = arith.select %56, %57, %39 : vector<64x32xi1>, vector<64x32xf32>
    %c0_i32_22 = arith.constant 0 : i32
    %59 = vector.broadcast %c0_i32_22 : i32 to vector<64x32xi32>
    %60 = arith.cmpi eq, %30, %59 : vector<64x32xi32>
    %cst_23 = arith.constant 0.000000e+00 : f32
    %61 = vector.broadcast %cst_23 : f32 to vector<64x32xf32>
    %62 = arith.select %60, %61, %40 : vector<64x32xi1>, vector<64x32xf32>
    %c7_i32_24 = arith.constant 7 : i32
    %63 = vector.broadcast %c7_i32_24 : i32 to vector<64x32xi32>
    %64 = arith.cmpi eq, %30, %63 : vector<64x32xi32>
    %cst_25 = arith.constant 0.000000e+00 : f32
    %65 = vector.broadcast %cst_25 : f32 to vector<64x32xf32>
    %66 = arith.select %64, %65, %42 : vector<64x32xi1>, vector<64x32xf32>
    %67 = tpu.concatenate %46, %35, %50, %54, %38, %58, %62, %41, %66 in 1 : vector<64x32xf32>, vector<64x32xf32>, vector<64x32xf32>, vector<64x32xf32>, vector<64x32xf32>, vector<64x32xf32>, vector<64x32xf32>, vector<64x32xf32>, vector<64x32xf32> -> vector<64x288xf32>
    %c0_26 = arith.constant 0 : index
    %c0_27 = arith.constant 0 : index
    %68 = vector.load %arg7[%c0_26, %c0_27] : memref<3x64xf32, #tpu.memory_space<vmem>>, vector<3x64xf32>
    %c0_28 = arith.constant 0 : index
    %c0_29 = arith.constant 0 : index
    %69 = vector.load %arg6[%c0_28, %c0_29] : memref<288x64xf32, #tpu.memory_space<vmem>>, vector<288x64xf32>
    %cst_30 = arith.constant dense<0.000000e+00> : vector<64x64xf32>
    %70 = tpu.matmul %67, %69, %cst_30 {dimension_numbers = #tpu.dot_dimension_numbers<[1], [0], [0], [1], [0, 0, 1, 1], [], []>} : vector<64x288xf32>, vector<288x64xf32>, vector<64x64xf32> -> vector<64x64xf32>
    %71 = vector.extract_strided_slice %68 {offsets = [0, 0], sizes = [1, 64], strides = [1, 1]} : vector<3x64xf32> to vector<1x64xf32>
    %72 = vector.broadcast %71 : vector<1x64xf32> to vector<64x64xf32>
    %73 = arith.addf %70, %72 : vector<64x64xf32>
    %cst_31 = arith.constant 0.000000e+00 : f32
    %74 = vector.broadcast %cst_31 : f32 to vector<64x64xf32>
    %75 = arith.maximumf %73, %74 : vector<64x64xf32>
    %cst_32 = arith.constant 0.000000e+00 : f32
    %76 = vector.broadcast %cst_32 : f32 to vector<9x64xf32>
    %77 = tpu.concatenate %75, %76 in 0 : vector<64x64xf32>, vector<9x64xf32> -> vector<73x64xf32>
    %78 = vector.extract_strided_slice %77 {offsets = [0, 0], sizes = [64, 64], strides = [1, 1]} : vector<73x64xf32> to vector<64x64xf32>
    %79 = vector.extract_strided_slice %77 {offsets = [1, 0], sizes = [64, 64], strides = [1, 1]} : vector<73x64xf32> to vector<64x64xf32>
    %80 = vector.extract_strided_slice %77 {offsets = [8, 0], sizes = [64, 64], strides = [1, 1]} : vector<73x64xf32> to vector<64x64xf32>
    %81 = vector.extract_strided_slice %77 {offsets = [9, 0], sizes = [64, 64], strides = [1, 1]} : vector<73x64xf32> to vector<64x64xf32>
    %82 = arith.maximumf %78, %79 : vector<64x64xf32>
    %83 = arith.maximumf %80, %81 : vector<64x64xf32>
    %84 = arith.maximumf %82, %83 : vector<64x64xf32>
    %c0_33 = arith.constant 0 : index
    %c0_34 = arith.constant 0 : index
    %85 = vector.load %arg8[%c0_33, %c0_34] : memref<16x64xf32, #tpu.memory_space<vmem>>, vector<16x64xf32>
    %cst_35 = arith.constant dense<0.000000e+00> : vector<16x64xf32>
    %86 = tpu.matmul %85, %84, %cst_35 {dimension_numbers = #tpu.dot_dimension_numbers<[1], [0], [0], [1], [0, 0, 1, 1], [], []>} : vector<16x64xf32>, vector<64x64xf32>, vector<16x64xf32> -> vector<16x64xf32>
    %c0_36 = arith.constant 0 : index
    %c0_37 = arith.constant 0 : index
    %87 = vector.load %arg7[%c0_36, %c0_37] : memref<3x64xf32, #tpu.memory_space<vmem>>, vector<3x64xf32>
    %88 = vector.extract_strided_slice %87 {offsets = [1, 0], sizes = [1, 64], strides = [1, 1]} : vector<3x64xf32> to vector<1x64xf32>
    %89 = vector.broadcast %88 : vector<1x64xf32> to vector<16x64xf32>
    %90 = arith.mulf %86, %89 : vector<16x64xf32>
    %91 = vector.extract_strided_slice %87 {offsets = [2, 0], sizes = [1, 64], strides = [1, 1]} : vector<3x64xf32> to vector<1x64xf32>
    %92 = vector.broadcast %91 : vector<1x64xf32> to vector<16x64xf32>
    %93 = arith.addf %90, %92 : vector<16x64xf32>
    %94 = tpu.iota {dimensions = array<i32: 0>} : vector<16x64xi32>
    %c3_i32 = arith.constant 3 : i32
    %95 = vector.broadcast %c3_i32 : i32 to vector<16x64xi32>
    %96 = arith.andi %94, %95 : vector<16x64xi32>
    %cst_38 = arith.constant 0.000000e+00 : f32
    %97 = vector.broadcast %cst_38 : f32 to vector<5x64xf32>
    %cst_39 = arith.constant 0.000000e+00 : f32
    %98 = vector.broadcast %cst_39 : f32 to vector<5x64xf32>
    %99 = tpu.concatenate %97, %93, %98 in 0 : vector<5x64xf32>, vector<16x64xf32>, vector<5x64xf32> -> vector<26x64xf32>
    %100 = vector.extract_strided_slice %99 {offsets = [0, 0], sizes = [16, 64], strides = [1, 1]} : vector<26x64xf32> to vector<16x64xf32>
    %101 = vector.extract_strided_slice %99 {offsets = [1, 0], sizes = [16, 64], strides = [1, 1]} : vector<26x64xf32> to vector<16x64xf32>
    %102 = vector.extract_strided_slice %99 {offsets = [2, 0], sizes = [16, 64], strides = [1, 1]} : vector<26x64xf32> to vector<16x64xf32>
    %103 = vector.extract_strided_slice %99 {offsets = [4, 0], sizes = [16, 64], strides = [1, 1]} : vector<26x64xf32> to vector<16x64xf32>
    %104 = vector.extract_strided_slice %99 {offsets = [5, 0], sizes = [16, 64], strides = [1, 1]} : vector<26x64xf32> to vector<16x64xf32>
    %105 = vector.extract_strided_slice %99 {offsets = [6, 0], sizes = [16, 64], strides = [1, 1]} : vector<26x64xf32> to vector<16x64xf32>
    %106 = vector.extract_strided_slice %99 {offsets = [8, 0], sizes = [16, 64], strides = [1, 1]} : vector<26x64xf32> to vector<16x64xf32>
    %107 = vector.extract_strided_slice %99 {offsets = [9, 0], sizes = [16, 64], strides = [1, 1]} : vector<26x64xf32> to vector<16x64xf32>
    %108 = vector.extract_strided_slice %99 {offsets = [10, 0], sizes = [16, 64], strides = [1, 1]} : vector<26x64xf32> to vector<16x64xf32>
    %c0_i32_40 = arith.constant 0 : i32
    %109 = vector.broadcast %c0_i32_40 : i32 to vector<16x64xi32>
    %110 = arith.cmpi eq, %96, %109 : vector<16x64xi32>
    %cst_41 = arith.constant 0.000000e+00 : f32
    %111 = vector.broadcast %cst_41 : f32 to vector<16x64xf32>
    %112 = arith.select %110, %111, %100 : vector<16x64xi1>, vector<16x64xf32>
    %c3_i32_42 = arith.constant 3 : i32
    %113 = vector.broadcast %c3_i32_42 : i32 to vector<16x64xi32>
    %114 = arith.cmpi eq, %96, %113 : vector<16x64xi32>
    %cst_43 = arith.constant 0.000000e+00 : f32
    %115 = vector.broadcast %cst_43 : f32 to vector<16x64xf32>
    %116 = arith.select %114, %115, %102 : vector<16x64xi1>, vector<16x64xf32>
    %c0_i32_44 = arith.constant 0 : i32
    %117 = vector.broadcast %c0_i32_44 : i32 to vector<16x64xi32>
    %118 = arith.cmpi eq, %96, %117 : vector<16x64xi32>
    %cst_45 = arith.constant 0.000000e+00 : f32
    %119 = vector.broadcast %cst_45 : f32 to vector<16x64xf32>
    %120 = arith.select %118, %119, %103 : vector<16x64xi1>, vector<16x64xf32>
    %c3_i32_46 = arith.constant 3 : i32
    %121 = vector.broadcast %c3_i32_46 : i32 to vector<16x64xi32>
    %122 = arith.cmpi eq, %96, %121 : vector<16x64xi32>
    %cst_47 = arith.constant 0.000000e+00 : f32
    %123 = vector.broadcast %cst_47 : f32 to vector<16x64xf32>
    %124 = arith.select %122, %123, %105 : vector<16x64xi1>, vector<16x64xf32>
    %c0_i32_48 = arith.constant 0 : i32
    %125 = vector.broadcast %c0_i32_48 : i32 to vector<16x64xi32>
    %126 = arith.cmpi eq, %96, %125 : vector<16x64xi32>
    %cst_49 = arith.constant 0.000000e+00 : f32
    %127 = vector.broadcast %cst_49 : f32 to vector<16x64xf32>
    %128 = arith.select %126, %127, %106 : vector<16x64xi1>, vector<16x64xf32>
    %c3_i32_50 = arith.constant 3 : i32
    %129 = vector.broadcast %c3_i32_50 : i32 to vector<16x64xi32>
    %130 = arith.cmpi eq, %96, %129 : vector<16x64xi32>
    %cst_51 = arith.constant 0.000000e+00 : f32
    %131 = vector.broadcast %cst_51 : f32 to vector<16x64xf32>
    %132 = arith.select %130, %131, %108 : vector<16x64xi1>, vector<16x64xf32>
    %133 = tpu.concatenate %112, %101, %116, %120, %104, %124, %128, %107, %132 in 1 : vector<16x64xf32>, vector<16x64xf32>, vector<16x64xf32>, vector<16x64xf32>, vector<16x64xf32>, vector<16x64xf32>, vector<16x64xf32>, vector<16x64xf32>, vector<16x64xf32> -> vector<16x576xf32>
    %c0_52 = arith.constant 0 : index
    %c0_53 = arith.constant 0 : index
    %134 = vector.load %arg10[%c0_52, %c0_53] : memref<3x128xf32, #tpu.memory_space<vmem>>, vector<3x128xf32>
    %c0_54 = arith.constant 0 : index
    %c0_55 = arith.constant 0 : index
    %135 = vector.load %arg9[%c0_54, %c0_55] : memref<576x128xf32, #tpu.memory_space<vmem>>, vector<576x128xf32>
    %cst_56 = arith.constant dense<0.000000e+00> : vector<16x128xf32>
    %136 = tpu.matmul %133, %135, %cst_56 {dimension_numbers = #tpu.dot_dimension_numbers<[1], [0], [0], [1], [0, 0, 1, 1], [], []>} : vector<16x576xf32>, vector<576x128xf32>, vector<16x128xf32> -> vector<16x128xf32>
    %137 = vector.extract_strided_slice %134 {offsets = [0, 0], sizes = [1, 128], strides = [1, 1]} : vector<3x128xf32> to vector<1x128xf32>
    %138 = vector.broadcast %137 : vector<1x128xf32> to vector<16x128xf32>
    %139 = arith.addf %136, %138 : vector<16x128xf32>
    %cst_57 = arith.constant 0.000000e+00 : f32
    %140 = vector.broadcast %cst_57 : f32 to vector<16x128xf32>
    %141 = arith.maximumf %139, %140 : vector<16x128xf32>
    %cst_58 = arith.constant 0.000000e+00 : f32
    %142 = vector.broadcast %cst_58 : f32 to vector<5x128xf32>
    %143 = tpu.concatenate %141, %142 in 0 : vector<16x128xf32>, vector<5x128xf32> -> vector<21x128xf32>
    %144 = vector.extract_strided_slice %143 {offsets = [0, 0], sizes = [16, 128], strides = [1, 1]} : vector<21x128xf32> to vector<16x128xf32>
    %145 = vector.extract_strided_slice %143 {offsets = [1, 0], sizes = [16, 128], strides = [1, 1]} : vector<21x128xf32> to vector<16x128xf32>
    %146 = vector.extract_strided_slice %143 {offsets = [4, 0], sizes = [16, 128], strides = [1, 1]} : vector<21x128xf32> to vector<16x128xf32>
    %147 = vector.extract_strided_slice %143 {offsets = [5, 0], sizes = [16, 128], strides = [1, 1]} : vector<21x128xf32> to vector<16x128xf32>
    %148 = arith.maximumf %144, %145 : vector<16x128xf32>
    %149 = arith.maximumf %146, %147 : vector<16x128xf32>
    %150 = arith.maximumf %148, %149 : vector<16x128xf32>
    %c0_59 = arith.constant 0 : index
    %c0_60 = arith.constant 0 : index
    %151 = vector.load %arg11[%c0_59, %c0_60] : memref<4x16xf32, #tpu.memory_space<vmem>>, vector<4x16xf32>
    %cst_61 = arith.constant dense<0.000000e+00> : vector<4x128xf32>
    %152 = tpu.matmul %151, %150, %cst_61 {dimension_numbers = #tpu.dot_dimension_numbers<[1], [0], [0], [1], [0, 0, 1, 1], [], []>} : vector<4x16xf32>, vector<16x128xf32>, vector<4x128xf32> -> vector<4x128xf32>
    %c0_62 = arith.constant 0 : index
    %c0_63 = arith.constant 0 : index
    %153 = vector.load %arg10[%c0_62, %c0_63] : memref<3x128xf32, #tpu.memory_space<vmem>>, vector<3x128xf32>
    %154 = vector.extract_strided_slice %153 {offsets = [1, 0], sizes = [1, 128], strides = [1, 1]} : vector<3x128xf32> to vector<1x128xf32>
    %155 = vector.broadcast %154 : vector<1x128xf32> to vector<4x128xf32>
    %156 = arith.mulf %152, %155 : vector<4x128xf32>
    %157 = vector.extract_strided_slice %153 {offsets = [2, 0], sizes = [1, 128], strides = [1, 1]} : vector<3x128xf32> to vector<1x128xf32>
    %158 = vector.broadcast %157 : vector<1x128xf32> to vector<4x128xf32>
    %159 = arith.addf %156, %158 : vector<4x128xf32>
    %160 = tpu.iota {dimensions = array<i32: 0>} : vector<4x128xi32>
    %c1_i32 = arith.constant 1 : i32
    %161 = vector.broadcast %c1_i32 : i32 to vector<4x128xi32>
    %162 = arith.andi %160, %161 : vector<4x128xi32>
    %cst_64 = arith.constant 0.000000e+00 : f32
    %163 = vector.broadcast %cst_64 : f32 to vector<3x128xf32>
    %cst_65 = arith.constant 0.000000e+00 : f32
    %164 = vector.broadcast %cst_65 : f32 to vector<3x128xf32>
    %165 = tpu.concatenate %163, %159, %164 in 0 : vector<3x128xf32>, vector<4x128xf32>, vector<3x128xf32> -> vector<10x128xf32>
    %166 = vector.extract_strided_slice %165 {offsets = [0, 0], sizes = [4, 128], strides = [1, 1]} : vector<10x128xf32> to vector<4x128xf32>
    %167 = vector.extract_strided_slice %165 {offsets = [1, 0], sizes = [4, 128], strides = [1, 1]} : vector<10x128xf32> to vector<4x128xf32>
    %168 = vector.extract_strided_slice %165 {offsets = [2, 0], sizes = [4, 128], strides = [1, 1]} : vector<10x128xf32> to vector<4x128xf32>
    %169 = vector.extract_strided_slice %165 {offsets = [2, 0], sizes = [4, 128], strides = [1, 1]} : vector<10x128xf32> to vector<4x128xf32>
    %170 = vector.extract_strided_slice %165 {offsets = [3, 0], sizes = [4, 128], strides = [1, 1]} : vector<10x128xf32> to vector<4x128xf32>
    %171 = vector.extract_strided_slice %165 {offsets = [4, 0], sizes = [4, 128], strides = [1, 1]} : vector<10x128xf32> to vector<4x128xf32>
    %172 = vector.extract_strided_slice %165 {offsets = [4, 0], sizes = [4, 128], strides = [1, 1]} : vector<10x128xf32> to vector<4x128xf32>
    %173 = vector.extract_strided_slice %165 {offsets = [5, 0], sizes = [4, 128], strides = [1, 1]} : vector<10x128xf32> to vector<4x128xf32>
    %174 = vector.extract_strided_slice %165 {offsets = [6, 0], sizes = [4, 128], strides = [1, 1]} : vector<10x128xf32> to vector<4x128xf32>
    %c0_i32_66 = arith.constant 0 : i32
    %175 = vector.broadcast %c0_i32_66 : i32 to vector<4x128xi32>
    %176 = arith.cmpi eq, %162, %175 : vector<4x128xi32>
    %cst_67 = arith.constant 0.000000e+00 : f32
    %177 = vector.broadcast %cst_67 : f32 to vector<4x128xf32>
    %178 = arith.select %176, %177, %166 : vector<4x128xi1>, vector<4x128xf32>
    %c1_i32_68 = arith.constant 1 : i32
    %179 = vector.broadcast %c1_i32_68 : i32 to vector<4x128xi32>
    %180 = arith.cmpi eq, %162, %179 : vector<4x128xi32>
    %cst_69 = arith.constant 0.000000e+00 : f32
    %181 = vector.broadcast %cst_69 : f32 to vector<4x128xf32>
    %182 = arith.select %180, %181, %168 : vector<4x128xi1>, vector<4x128xf32>
    %c0_i32_70 = arith.constant 0 : i32
    %183 = vector.broadcast %c0_i32_70 : i32 to vector<4x128xi32>
    %184 = arith.cmpi eq, %162, %183 : vector<4x128xi32>
    %cst_71 = arith.constant 0.000000e+00 : f32
    %185 = vector.broadcast %cst_71 : f32 to vector<4x128xf32>
    %186 = arith.select %184, %185, %169 : vector<4x128xi1>, vector<4x128xf32>
    %c1_i32_72 = arith.constant 1 : i32
    %187 = vector.broadcast %c1_i32_72 : i32 to vector<4x128xi32>
    %188 = arith.cmpi eq, %162, %187 : vector<4x128xi32>
    %cst_73 = arith.constant 0.000000e+00 : f32
    %189 = vector.broadcast %cst_73 : f32 to vector<4x128xf32>
    %190 = arith.select %188, %189, %171 : vector<4x128xi1>, vector<4x128xf32>
    %c0_i32_74 = arith.constant 0 : i32
    %191 = vector.broadcast %c0_i32_74 : i32 to vector<4x128xi32>
    %192 = arith.cmpi eq, %162, %191 : vector<4x128xi32>
    %cst_75 = arith.constant 0.000000e+00 : f32
    %193 = vector.broadcast %cst_75 : f32 to vector<4x128xf32>
    %194 = arith.select %192, %193, %172 : vector<4x128xi1>, vector<4x128xf32>
    %c1_i32_76 = arith.constant 1 : i32
    %195 = vector.broadcast %c1_i32_76 : i32 to vector<4x128xi32>
    %196 = arith.cmpi eq, %162, %195 : vector<4x128xi32>
    %cst_77 = arith.constant 0.000000e+00 : f32
    %197 = vector.broadcast %cst_77 : f32 to vector<4x128xf32>
    %198 = arith.select %196, %197, %174 : vector<4x128xi1>, vector<4x128xf32>
    %199 = tpu.concatenate %178, %167, %182, %186, %170, %190, %194, %173, %198 in 1 : vector<4x128xf32>, vector<4x128xf32>, vector<4x128xf32>, vector<4x128xf32>, vector<4x128xf32>, vector<4x128xf32>, vector<4x128xf32>, vector<4x128xf32>, vector<4x128xf32> -> vector<4x1152xf32>
    %c0_78 = arith.constant 0 : index
    %c0_79 = arith.constant 0 : index
    %200 = vector.load %arg13[%c0_78, %c0_79] : memref<3x256xf32, #tpu.memory_space<vmem>>, vector<3x256xf32>
    %c0_80 = arith.constant 0 : index
    %c0_81 = arith.constant 0 : index
    %201 = vector.load %arg12[%c0_80, %c0_81] : memref<1152x256xf32, #tpu.memory_space<vmem>>, vector<1152x256xf32>
    %cst_82 = arith.constant dense<0.000000e+00> : vector<4x256xf32>
    %202 = tpu.matmul %199, %201, %cst_82 {dimension_numbers = #tpu.dot_dimension_numbers<[1], [0], [0], [1], [0, 0, 1, 1], [], []>} : vector<4x1152xf32>, vector<1152x256xf32>, vector<4x256xf32> -> vector<4x256xf32>
    %203 = vector.extract_strided_slice %200 {offsets = [0, 0], sizes = [1, 256], strides = [1, 1]} : vector<3x256xf32> to vector<1x256xf32>
    %204 = vector.broadcast %203 : vector<1x256xf32> to vector<4x256xf32>
    %205 = arith.addf %202, %204 : vector<4x256xf32>
    %cst_83 = arith.constant 0.000000e+00 : f32
    %206 = vector.broadcast %cst_83 : f32 to vector<4x256xf32>
    %207 = arith.maximumf %205, %206 : vector<4x256xf32>
    %c0_84 = arith.constant 0 : index
    %c0_85 = arith.constant 0 : index
    %208 = vector.load %arg13[%c0_84, %c0_85] : memref<3x256xf32, #tpu.memory_space<vmem>>, vector<3x256xf32>
    %cst_86 = arith.constant dense<0.000000e+00> : vector<256xf32>
    %209 = vector.multi_reduction <add>, %207, %cst_86 [0] : vector<4x256xf32> to vector<256xf32>
    %210 = vector.shape_cast %209 : vector<256xf32> to vector<1x256xf32>
    %cst_87 = arith.constant 2.500000e-01 : f32
    %211 = vector.broadcast %cst_87 : f32 to vector<1x256xf32>
    %212 = arith.mulf %210, %211 : vector<1x256xf32>
    %213 = vector.extract_strided_slice %208 {offsets = [1, 0], sizes = [1, 256], strides = [1, 1]} : vector<3x256xf32> to vector<1x256xf32>
    %214 = arith.mulf %212, %213 : vector<1x256xf32>
    %215 = vector.extract_strided_slice %208 {offsets = [2, 0], sizes = [1, 256], strides = [1, 1]} : vector<3x256xf32> to vector<1x256xf32>
    %216 = arith.addf %214, %215 : vector<1x256xf32>
    %c0_88 = arith.constant 0 : index
    %c0_89 = arith.constant 0 : index
    %c0_90 = arith.constant 0 : index
    %217 = vector.load %arg2[%c0_88, %c0_89, %c0_90] : memref<1x1x3xf32, #tpu.memory_space<vmem>>, vector<1x1x3xf32>
    %218 = vector.shape_cast %217 : vector<1x1x3xf32> to vector<1x3xf32>
    %c0_91 = arith.constant 0 : index
    %c0_92 = arith.constant 0 : index
    %219 = vector.load %arg15[%c0_91, %c0_92] : memref<3x64xf32, #tpu.memory_space<vmem>>, vector<3x64xf32>
    %c0_93 = arith.constant 0 : index
    %c0_94 = arith.constant 0 : index
    %220 = vector.load %arg14[%c0_93, %c0_94] : memref<3x64xf32, #tpu.memory_space<vmem>>, vector<3x64xf32>
    %cst_95 = arith.constant dense<0.000000e+00> : vector<1x64xf32>
    %221 = tpu.matmul %218, %220, %cst_95 {dimension_numbers = #tpu.dot_dimension_numbers<[1], [0], [0], [1], [0, 0, 1, 1], [], []>} : vector<1x3xf32>, vector<3x64xf32>, vector<1x64xf32> -> vector<1x64xf32>
    %222 = vector.extract_strided_slice %219 {offsets = [0, 0], sizes = [1, 64], strides = [1, 1]} : vector<3x64xf32> to vector<1x64xf32>
    %223 = arith.addf %221, %222 : vector<1x64xf32>
    %cst_96 = arith.constant 0.000000e+00 : f32
    %224 = vector.broadcast %cst_96 : f32 to vector<1x64xf32>
    %225 = arith.maximumf %223, %224 : vector<1x64xf32>
    %226 = vector.extract_strided_slice %219 {offsets = [1, 0], sizes = [1, 64], strides = [1, 1]} : vector<3x64xf32> to vector<1x64xf32>
    %227 = arith.mulf %225, %226 : vector<1x64xf32>
    %228 = vector.extract_strided_slice %219 {offsets = [2, 0], sizes = [1, 64], strides = [1, 1]} : vector<3x64xf32> to vector<1x64xf32>
    %229 = arith.addf %227, %228 : vector<1x64xf32>
    %230 = tpu.concatenate %216, %229 in 1 : vector<1x256xf32>, vector<1x64xf32> -> vector<1x320xf32>
    %c0_97 = arith.constant 0 : index
    %c0_98 = arith.constant 0 : index
    %231 = vector.load %arg17[%c0_97, %c0_98] : memref<3x128xf32, #tpu.memory_space<vmem>>, vector<3x128xf32>
    %c0_99 = arith.constant 0 : index
    %c0_100 = arith.constant 0 : index
    %232 = vector.load %arg16[%c0_99, %c0_100] : memref<320x128xf32, #tpu.memory_space<vmem>>, vector<320x128xf32>
    %cst_101 = arith.constant dense<0.000000e+00> : vector<1x128xf32>
    %233 = tpu.matmul %230, %232, %cst_101 {dimension_numbers = #tpu.dot_dimension_numbers<[1], [0], [0], [1], [0, 0, 1, 1], [], []>} : vector<1x320xf32>, vector<320x128xf32>, vector<1x128xf32> -> vector<1x128xf32>
    %234 = vector.extract_strided_slice %231 {offsets = [0, 0], sizes = [1, 128], strides = [1, 1]} : vector<3x128xf32> to vector<1x128xf32>
    %235 = arith.addf %233, %234 : vector<1x128xf32>
    %cst_102 = arith.constant 0.000000e+00 : f32
    %236 = vector.broadcast %cst_102 : f32 to vector<1x128xf32>
    %237 = arith.maximumf %235, %236 : vector<1x128xf32>
    %238 = vector.extract_strided_slice %231 {offsets = [1, 0], sizes = [1, 128], strides = [1, 1]} : vector<3x128xf32> to vector<1x128xf32>
    %239 = arith.mulf %237, %238 : vector<1x128xf32>
    %240 = vector.extract_strided_slice %231 {offsets = [2, 0], sizes = [1, 128], strides = [1, 1]} : vector<3x128xf32> to vector<1x128xf32>
    %241 = arith.addf %239, %240 : vector<1x128xf32>
    %c0_103 = arith.constant 0 : index
    %c0_104 = arith.constant 0 : index
    %242 = vector.load %arg18[%c0_103, %c0_104] : memref<128x128xf32, #tpu.memory_space<vmem>>, vector<128x128xf32>
    %cst_105 = arith.constant dense<0.000000e+00> : vector<1x128xf32>
    %243 = tpu.matmul %241, %242, %cst_105 {dimension_numbers = #tpu.dot_dimension_numbers<[1], [0], [0], [1], [0, 0, 1, 1], [], []>} : vector<1x128xf32>, vector<128x128xf32>, vector<1x128xf32> -> vector<1x128xf32>
    %c0_106 = arith.constant 0 : index
    %c0_107 = arith.constant 0 : index
    %244 = vector.load %arg19[%c0_106, %c0_107] : memref<1x128xf32, #tpu.memory_space<vmem>>, vector<1x128xf32>
    %245 = arith.addf %243, %244 : vector<1x128xf32>
    %cst_108 = arith.constant 0.000000e+00 : f32
    %246 = vector.broadcast %cst_108 : f32 to vector<1x128xf32>
    %247 = arith.maximumf %245, %246 : vector<1x128xf32>
    %c0_109 = arith.constant 0 : index
    %c0_110 = arith.constant 0 : index
    %248 = vector.load %arg20[%c0_109, %c0_110] : memref<128x3xf32, #tpu.memory_space<vmem>>, vector<128x3xf32>
    %cst_111 = arith.constant dense<0.000000e+00> : vector<1x3xf32>
    %249 = tpu.matmul %247, %248, %cst_111 {dimension_numbers = #tpu.dot_dimension_numbers<[1], [0], [0], [1], [0, 0, 1, 1], [], []>} : vector<1x128xf32>, vector<128x3xf32>, vector<1x3xf32> -> vector<1x3xf32>
    %c0_112 = arith.constant 0 : index
    %c0_113 = arith.constant 0 : index
    %250 = vector.load %arg21[%c0_112, %c0_113] : memref<1x3xf32, #tpu.memory_space<vmem>>, vector<1x3xf32>
    %251 = arith.addf %249, %250 : vector<1x3xf32>
    %c0_114 = arith.constant 0 : index
    %c0_115 = arith.constant 0 : index
    %c0_116 = arith.constant 0 : index
    %252 = vector.load %arg22[%c0_114, %c0_115, %c0_116] : memref<1x1x3xf32, #tpu.memory_space<vmem>>, vector<1x1x3xf32>
    %253 = vector.shape_cast %252 : vector<1x1x3xf32> to vector<1x3xf32>
    %254 = vector.shape_cast %251 : vector<1x3xf32> to vector<1x1x3xf32>
    tpu.vector_store %arg22[%c0_114, %c0_115, %c0_116], %254 {strides = array<i32>} : memref<1x1x3xf32, #tpu.memory_space<vmem>>, vector<1x1x3xf32>,
    return
  }
  func.func @transform_0(%arg0: i32) -> (i32, i32, i32) {
    %c0_i32 = arith.constant 0 : i32
    %c0_i32_0 = arith.constant 0 : i32
    %c0_i32_1 = arith.constant 0 : i32
    return %arg0, %c0_i32, %c0_i32_0 : i32, i32, i32
  }
  func.func @transform_1(%arg0: i32) -> (i32, i32, i32) {
    %c0_i32 = arith.constant 0 : i32
    %c0_i32_0 = arith.constant 0 : i32
    %c0_i32_1 = arith.constant 0 : i32
    return %arg0, %c0_i32, %c0_i32_0 : i32, i32, i32
  }
  func.func @transform_2(%arg0: i32) -> (i32, i32) {
    %c0_i32 = arith.constant 0 : i32
    %c0_i32_0 = arith.constant 0 : i32
    %c0_i32_1 = arith.constant 0 : i32
    return %c0_i32, %c0_i32_0 : i32, i32
  }
  func.func @transform_3(%arg0: i32) -> (i32, i32) {
    %c0_i32 = arith.constant 0 : i32
    %c0_i32_0 = arith.constant 0 : i32
    %c0_i32_1 = arith.constant 0 : i32
    return %c0_i32, %c0_i32_0 : i32, i32
  }
  func.func @transform_4(%arg0: i32) -> (i32, i32) {
    %c0_i32 = arith.constant 0 : i32
    %c0_i32_0 = arith.constant 0 : i32
    %c0_i32_1 = arith.constant 0 : i32
    return %c0_i32, %c0_i32_0 : i32, i32
  }
  func.func @transform_5(%arg0: i32) -> (i32, i32) {
    %c0_i32 = arith.constant 0 : i32
    %c0_i32_0 = arith.constant 0 : i32
    %c0_i32_1 = arith.constant 0 : i32
    return %c0_i32, %c0_i32_0 : i32, i32
  }
  func.func @transform_6(%arg0: i32) -> (i32, i32) {
    %c0_i32 = arith.constant 0 : i32
    %c0_i32_0 = arith.constant 0 : i32
    %c0_i32_1 = arith.constant 0 : i32
    return %c0_i32, %c0_i32_0 : i32, i32
  }
  func.func @transform_7(%arg0: i32) -> (i32, i32) {
    %c0_i32 = arith.constant 0 : i32
    %c0_i32_0 = arith.constant 0 : i32
    %c0_i32_1 = arith.constant 0 : i32
    return %c0_i32, %c0_i32_0 : i32, i32
  }
  func.func @transform_8(%arg0: i32) -> (i32, i32) {
    %c0_i32 = arith.constant 0 : i32
    %c0_i32_0 = arith.constant 0 : i32
    %c0_i32_1 = arith.constant 0 : i32
    return %c0_i32, %c0_i32_0 : i32, i32
  }
  func.func @transform_9(%arg0: i32) -> (i32, i32) {
    %c0_i32 = arith.constant 0 : i32
    %c0_i32_0 = arith.constant 0 : i32
    %c0_i32_1 = arith.constant 0 : i32
    return %c0_i32, %c0_i32_0 : i32, i32
  }
  func.func @transform_10(%arg0: i32) -> (i32, i32) {
    %c0_i32 = arith.constant 0 : i32
    %c0_i32_0 = arith.constant 0 : i32
    %c0_i32_1 = arith.constant 0 : i32
    return %c0_i32, %c0_i32_0 : i32, i32
  }
  func.func @transform_11(%arg0: i32) -> (i32, i32) {
    %c0_i32 = arith.constant 0 : i32
    %c0_i32_0 = arith.constant 0 : i32
    %c0_i32_1 = arith.constant 0 : i32
    return %c0_i32, %c0_i32_0 : i32, i32
  }
  func.func @transform_12(%arg0: i32) -> (i32, i32) {
    %c0_i32 = arith.constant 0 : i32
    %c0_i32_0 = arith.constant 0 : i32
    %c0_i32_1 = arith.constant 0 : i32
    return %c0_i32, %c0_i32_0 : i32, i32
  }
  func.func @transform_13(%arg0: i32) -> (i32, i32) {
    %c0_i32 = arith.constant 0 : i32
    %c0_i32_0 = arith.constant 0 : i32
    %c0_i32_1 = arith.constant 0 : i32
    return %c0_i32, %c0_i32_0 : i32, i32
  }
  func.func @transform_14(%arg0: i32) -> (i32, i32) {
    %c0_i32 = arith.constant 0 : i32
    %c0_i32_0 = arith.constant 0 : i32
    %c0_i32_1 = arith.constant 0 : i32
    return %c0_i32, %c0_i32_0 : i32, i32
  }
  func.func @transform_15(%arg0: i32) -> (i32, i32) {
    %c0_i32 = arith.constant 0 : i32
    %c0_i32_0 = arith.constant 0 : i32
    %c0_i32_1 = arith.constant 0 : i32
    return %c0_i32, %c0_i32_0 : i32, i32
  }
  func.func @transform_16(%arg0: i32) -> (i32, i32) {
    %c0_i32 = arith.constant 0 : i32
    %c0_i32_0 = arith.constant 0 : i32
    %c0_i32_1 = arith.constant 0 : i32
    return %c0_i32, %c0_i32_0 : i32, i32
  }
  func.func @transform_17(%arg0: i32) -> (i32, i32) {
    %c0_i32 = arith.constant 0 : i32
    %c0_i32_0 = arith.constant 0 : i32
    %c0_i32_1 = arith.constant 0 : i32
    return %c0_i32, %c0_i32_0 : i32, i32
  }
  func.func @transform_18(%arg0: i32) -> (i32, i32) {
    %c0_i32 = arith.constant 0 : i32
    %c0_i32_0 = arith.constant 0 : i32
    %c0_i32_1 = arith.constant 0 : i32
    return %c0_i32, %c0_i32_0 : i32, i32
  }
  func.func @transform_19(%arg0: i32) -> (i32, i32) {
    %c0_i32 = arith.constant 0 : i32
    %c0_i32_0 = arith.constant 0 : i32
    %c0_i32_1 = arith.constant 0 : i32
    return %c0_i32, %c0_i32_0 : i32, i32
  }
  func.func @transform_20(%arg0: i32) -> (i32, i32) {
    %c0_i32 = arith.constant 0 : i32
    %c0_i32_0 = arith.constant 0 : i32
    %c0_i32_1 = arith.constant 0 : i32
    return %c0_i32, %c0_i32_0 : i32, i32
  }
  func.func @transform_21(%arg0: i32) -> (i32, i32, i32) {
    %c0_i32 = arith.constant 0 : i32
    %c0_i32_0 = arith.constant 0 : i32
    %c0_i32_1 = arith.constant 0 : i32
    return %arg0, %c0_i32, %c0_i32_0 : i32, i32, i32
  }
}

</mosaic_0001>

<bundles_post_ra>
// kernel: horizon_cnn_forward.1
= control target key start
LH: loop header
LB: loop body
LE: loop exit
PB: predicated region body
PF: predicated region fallthrough
CT: control target
= control target key end

     0   :  { %s6351_s0 = inlined_call_operand.vmem [shape: f32[2,256,9], index: 0, kind: input, shape index: {}]   ;;  %s6352_s1 = inlined_call_operand.hbm [shape: f32[2,1,3], index: 1, kind: input, shape index: {}]   ;;  %s6353_s2 = inlined_call_operand.vmem [shape: f32[9,32], index: 2, kind: input, shape index: {}]   ;;  %s6354_s3 = inlined_call_operand.vmem [shape: f32[3,32], index: 3, kind: input, shape index: {}]   ;;  %s6355_s4 = inlined_call_operand.vmem [shape: f32[64,256], index: 4, kind: input, shape index: {}]   ;;  %s6356_s5 = inlined_call_operand.vmem [shape: f32[288,64], index: 5, kind: input, shape index: {}]   ;;  %s6357_s6 = inlined_call_operand.vmem [shape: f32[3,64], index: 6, kind: input, shape index: {}]   ;;  %s6358_s7 = inlined_call_operand.vmem [shape: f32[16,64], index: 7, kind: input, shape index: {}]   ;;  %s6359_s8 = inlined_call_operand.vmem [shape: f32[576,128], index: 8, kind: input, shape index: {}]   ;;  %s6360_s9 = inlined_call_operand.vmem [shape: f32[3,128], index: 9, kind: input, shape index: {}]   ;;  %s6361_s10 = inlined_call_operand.vmem [shape: f32[4,16], index: 10, kind: input, shape index: {}]   ;;  %s6362_s11 = inlined_call_operand.vmem [shape: f32[1152,256], index: 11, kind: input, shape index: {}]   ;;  %s6363_s12 = inlined_call_operand.vmem [shape: f32[3,256], index: 12, kind: input, shape index: {}]   ;;  %s6364_s13 = inlined_call_operand.vmem [shape: f32[3,64], index: 13, kind: input, shape index: {}]   ;;  %s6365_s14 = inlined_call_operand.vmem [shape: f32[3,64], index: 14, kind: input, shape index: {}]   ;;  %s6366_s15 = inlined_call_operand.hbm [shape: f32[320,128], index: 15, kind: input, shape index: {}]   ;;  %s6367_s16 = inlined_call_operand.hbm [shape: f32[3,128], index: 16, kind: input, shape index: {}]   ;;  %s6368_s17 = inlined_call_operand.vmem [shape: f32[128,128], index: 17, kind: input, shape index: {}]   ;;  %s6369_s18 = inlined_call_operand.vmem [shape: f32[1,128], index: 18, kind: input, shape index: {}]   ;;  %s6370_s19 = inlined_call_operand.vmem [shape: f32[128,3], index: 19, kind: input, shape index: {}]   ;;  %s6371_s20 = inlined_call_operand.vmem [shape: f32[1,3], index: 20, kind: input, shape index: {}]   ;;  %s6372_s21 = inlined_call_operand.vmem [shape: f32[2,1,3], index: 21, kind: output, shape index: {}]  }
   0x1   :  { %6382 = sst [smem:[#allocation12_spill]] %s6351_s0 }
   0x2   :  { %6383 = sst [smem:[#allocation13_spill]] %s6352_s1 }
   0x3   :  { %6384 = sst [smem:[#allocation14_spill]] %s6353_s2 }
   0x4   :  { %6385 = sst [smem:[#allocation15_spill]] %s6354_s3 }
   0x5   :  { %6386 = sst [smem:[#allocation16_spill]] %s6355_s4 }
   0x6   :  { %6387 = sst [smem:[#allocation17_spill]] %s6356_s5 }
   0x7   :  { %6388 = sst [smem:[#allocation18_spill]] %s6366_s15 }
   0x8   :  { %6389 = sst [smem:[#allocation19_spill]] %s6367_s16 }
   0x9   :  { %6390 = sst [smem:[#allocation20_spill]] %s6372_s21 }
   0xa   :  { %26 = vsyncpa [#allocation3], 0 }
   0xb   :  { %28 = vsyncpa [#allocation3 + $0x1], 0 }
   0xc   :  { %29 = vsyncpa [#allocation5], 0  ;;  %s3899_s2 = smov 0   ;;  %s3901_s25 = smov 0  }
   0xd   :  { %s3903_s26 = smov 0   ;;  %s3905_s27 = smov 0  }
   0xe LB: > { %6391 = sst [smem:[#allocation9_spill]] %s3775_s26  ;;  %s3923_s0 = sadd.s32 4294967295, %s3779_s27   ;;  %s3779_s27 = sphi %s3905_s27, %s6452_s27   ;;  %s3775_s26 = sphi %s3903_s26, %s6454_s26   ;;  %s3771_s25 = sphi %s3901_s25, %s6456_s25   ;;  %s3767_s2 = sphi %s3899_s2, %s6455_s2  }
   0xf   : > { %s6392_s15 = sld [smem:[#allocation18_spill]]  ;;  %p3378_p0 = scmp.ge.s32.totalorder %s3779_s27, 1 }
  0x10   : > { %p82_p1 = scmp.eq.s32.totalorder %s3923_s0, 0  ;;  %p517_p2 = scmp.lt.s32.totalorder %s3779_s27, 3 }
  0x11   : > { %s3781_s30 = smov [#allocation4]   ;;  %s6394_s16 = sld [smem:[#allocation19_spill]] }
  0x12   : > { %p3928_p3 = pnand %p3378_p0, %p517_p2  ;;  %s569_s5 = sshll.u32 %s3781_s30, 4  ;;  %s570_s5 = int_to_ptr.vmem [resolvable:$true] %s569_s5 }
  0x13   : > { %s3782_s24 = smov [#allocation6]   ;;  %s3783_s28 = smov 128  }
  0x14   : > { %p3475_p4 = pneg %p3928_p3  ;;  %s584_s3 = sshll.u32 %s3782_s24, 4  ;;  %s585_s3 = int_to_ptr.vmem [resolvable:$true] %s584_s3 }
  0x15   : > { %s567_s29 = sshll.u32 %s6392_s15, 4  ;;  %s3784_s30 = smov 8   ;;  %s568_s29 = int_to_ptr.hbm [resolvable:$true] %s567_s29 }
  0x16   : > { %p3476_p5 = pnand %p3475_p4, %p82_p1  ;;  %s3940_s22 = sadd.s32 1, %s3779_s27  }
  0x17   : > { %s582_s1 = sshll.u32 %s6394_s16, 4  ;;  %6395 = sst [smem:[#allocation10_spill]] %s3940_s22  ;;  %s583_s1 = int_to_ptr.hbm [resolvable:$true] %s582_s1 }
  0x18   : > { %3478 = dma.hbm_to_vmem [thread:$0]  (!%p3476_p5), %s568_s29, 5120, %s570_s5, [#allocation5], %s3783_s28, %s3783_s28, %s3784_s30  }
  0x19   : > { %3481 = dma.hbm_to_vmem [thread:$0]  (!%p3476_p5), %s583_s1, 64, %s585_s3, [#allocation5]  }
  0x1a   : > { %s68_s23 = sadd.s32 1, %s3775_s26  ;;  %s65_s15 = ssub.s32 %s3779_s27, %s3940_s22 }
  0x1b   : > { %p75_p6 = scmp.ne.s32.totalorder %s3775_s26, %s3771_s25  ;;  %p66_p7 = scmp.eq.s32.totalorder %s65_s15, 0 }
  0x1c   : > { %p76_p8 = scmp.eq.s32.totalorder %s3779_s27, 0  ;;  %p81_p9 = scmp.ne.s32.totalorder %s3771_s25, %s3767_s2 }
  0x1d   : > { %p3488_p10 = scmp.lt.s32.totalorder %s3779_s27, 2  ;;  %s615_s29 = sand.u32 1, %s3775_s26  }
  0x1e   : > { %s3952_s16 = scalar_select %p66_p7, %s3775_s26, %s68_s23  }
  0x1f   : > { %p77_p11 = por %p76_p8, %p75_p6  ;;  %p3956_p12 = por %p82_p1, %p81_p9 }
  0x20   : > { %6396 = sst [smem:[#allocation11_spill]] %s3952_s16  ;;  %s618_s22 = scalar_lea.vmem [#allocation2], %s615_s29 }
  0x21   : > { %s6398_s3 = sld [smem:[#allocation13_spill]]  ;;  %s625_s21 = sshll.u32 %s618_s22, 4  ;;  %s626_s21 = int_to_ptr.vmem [resolvable:$true] %s625_s21 }
  0x22   : > { %p3965_p13 = pnand %p3488_p10, %p77_p11  ;;  %s616_s2 = scalar_lea.sflag [#allocation3], %s615_s29 }
  0x24   : > { %p3715_p2 = pneg %p3965_p13 }
  0x27   : > { %s621_s28 = scalar_lea.hbm %s6398_s3, %s3779_s27  ;;  %s3718_s22 = scalar_lea.hbm %s6398_s3, 2 }
  0x28   : > { %s623_s30 = sshll.u32 %s621_s28, 4  ;;  %s624_s30 = int_to_ptr.hbm [resolvable:$true] %s623_s30 }
  0x29   : > { %s3711_s23 = sshra.s32 %s624_s30, 4  ;;  %s3712_s23 = int_to_ptr.hbm [resolvable:$true] %s3711_s23 }
  0x2a   : > { %s3713_s16 = scalar_lea.hbm %s3712_s23, 1  ;;  %p3719_p6 = scmp.lt.s32.totalorder %s3712_s23, %s6398_s3 }
  0x2b   : > { %p3714_p0 = scmp.ne.s32.totalorder %s3712_s23, %s3713_s16  ;;  %p3720_p7 = scmp.lt.s32.totalorder %s3718_s22, %s3713_s16 }
  0x2d   : > { %p3716_p4 = pnand %p3715_p2, %p3714_p0  ;;  %p3721_p8 = por %p3720_p7, %p3719_p6 }
  0x2f   : > { %p3717_p5 = pneg %p3716_p4 }
  0x31   : > { %p3722_p9 = pnand %p3721_p8, %p3717_p5 }
  0x33   : > { %3725 = shalt.err (!%p3722_p9)
}
  0x34   : > { %3485 = dma.hbm_to_vmem [thread:$0]  (!%p3965_p13), %s624_s30, 16, %s626_s21, %s616_s2  }
  0x35   : > { %634 = sbr.rel (%p3928_p3) target bundleno = 2237 (0x8bd), region = 104  ;;  %s636_s29 = sand.u32 (!%p3928_p3), 1, %s3771_s25  }
  0x36   : > { %s637_s26 = scalar_lea.sflag (!%p3928_p3), [#allocation3], %s636_s29  ;;  %s3982_s27 = scalar_lea.vmem (!%p3928_p3), [#allocation2], %s636_s29 }
  0x3a   : > { %3758 = dma.done.wait (%p3956_p12), %s637_s26, 16  }
  0x3b   : > { %3760 = vsyncadd (%p3956_p12), %s637_s26, 4294967280 }
  0x3c   : > { %3762 = dma.done.wait (%p82_p1), [#allocation5], 5184  }
  0x3d   : > { %3764 = vsyncadd (%p82_p1), [#allocation5], 4294962112  ;;  %p711_p3 = scmp.lt.s32.totalorder %s3923_s0, 1  ;;  %vm852_vm0 = vcmask 1040384   ;;  %s6400_s30 = sld [smem:[#allocation12_spill]]  ;;  %vm755_vm1 = vcmask 72704  }
  0x3e   : > { %s6401_s2 = sld [smem:[#allocation14_spill]]  ;;  %vm1034_vm2 = vcmask 1046528   ;;  %s3786_s24 = smov 96   ;;  %vm1390_vm6 = vcmask 1045504   ;;  %vm1665_vm11 = vcmask 261120  }
  0x3f   : > { %s6458_s0 = smov (!%p711_p3, %s3923_s0), 1  ;;  %s6403_s29 = sld [smem:[#allocation15_spill]] }
  0x40   : > { %s3462_s16 = sshll.u32 %s6458_s0, 8  ;;  %s6404_s4 = sld [smem:[#allocation16_spill]] }
  0x41   : > { %s6405_s28 = sld [smem:[#allocation17_spill]]  ;;  %s6380_s5 = smov 64  }
  0x43   : > { %s4000_s15 = scalar_lea.vmem %s6400_s30, %s3462_s16 }
  0x44   : > { %s6402_s23 = smov %s6401_s2  ;;  %v753_v0 = vld [vmem:[%s6401_s2 + $0x8] sm:$0x1]  ;;  %v720_v2 = vld [vmem:[%s4000_s15] sm:$0xff]  ;;  %v722_v4 = vld [vmem:[%s4000_s15 + $0x10] sm:$0xff]  ;;  %s3787_s2 = smov 32  }
  0x45   : > { %v752_v1 = vld [vmem:[%s6402_s23] sm:$0xff]  ;;  %3387 = vmatpush.msk.msra.mxu0 %vm852_vm0, %v753_v0  ;;  %v721_v3 = vld [vmem:[%s4000_s15 + $0x8] sm:$0xff]  ;;  %v723_v5 = vld [vmem:[%s4000_s15 + $0x18] sm:$0xff] }
  0x46   : > { %v724_v6 = vld [vmem:[%s4000_s15 + $0x20] sm:$0xff]  ;;  %v725_v7 = vld [vmem:[%s4000_s15 + $0x28] sm:$0xff]  ;;  %v726_v8 = vld [vmem:[%s4000_s15 + $0x30] sm:$0xff] }
  0x47   : > { %871 = vmatpush.msra.mxu0 %v752_v1  ;;  %v727_v9 = vld [vmem:[%s4000_s15 + $0x38] sm:$0xff]  ;;  %v728_v10 = vld [vmem:[%s4000_s15 + $0x40] sm:$0xff]  ;;  %v729_v11 = vld [vmem:[%s4000_s15 + $0x48] sm:$0xff] }
  0x48   : > { %3388 = vmatmul.msk.f32.vlgmr.msra.gmra.mxu0 %vm755_vm1, %v720_v2  ;;  %v730_v12 = vld [vmem:[%s4000_s15 + $0x50] sm:$0xff]  ;;  %v731_v13 = vld [vmem:[%s4000_s15 + $0x58] sm:$0xff]  ;;  %v732_v14 = vld [vmem:[%s4000_s15 + $0x60] sm:$0xff] }
  0x49   : > { %v733_v15 = vld [vmem:[%s4000_s15 + $0x68] sm:$0xff]  ;;  %v734_v16 = vld [vmem:[%s4000_s15 + $0x70] sm:$0xff]  ;;  %v735_v17 = vld [vmem:[%s4000_s15 + $0x78] sm:$0xff] }
  0x4a   : > { %v736_v19 = vld [vmem:[%s4000_s15 + $0x80] sm:$0xff]  ;;  %v737_v21 = vld [vmem:[%s4000_s15 + $0x88] sm:$0xff]  ;;  %v738_v23 = vld [vmem:[%s4000_s15 + $0x90] sm:$0xff] }
  0x4b   : > { %v739_v25 = vld [vmem:[%s4000_s15 + $0x98] sm:$0xff]  ;;  %v740_v27 = vld [vmem:[%s4000_s15 + $0xa0] sm:$0xff]  ;;  %v741_v29 = vld [vmem:[%s4000_s15 + $0xa8] sm:$0xff] }
  0x4c   : > { %v742_v31 = vld [vmem:[%s4000_s15 + $0xb0] sm:$0xff]  ;;  %v743_v33 = vld [vmem:[%s4000_s15 + $0xb8] sm:$0xff]  ;;  %v744_v35 = vld [vmem:[%s4000_s15 + $0xc0] sm:$0xff] }
  0x4d   : > { %v745_v37 = vld [vmem:[%s4000_s15 + $0xc8] sm:$0xff]  ;;  %v746_v39 = vld [vmem:[%s4000_s15 + $0xd0] sm:$0xff]  ;;  %v747_v41 = vld [vmem:[%s4000_s15 + $0xd8] sm:$0xff] }
  0x4e   : > { %v748_v43 = vld [vmem:[%s4000_s15 + $0xe0] sm:$0xff]  ;;  %v749_v45 = vld [vmem:[%s4000_s15 + $0xe8] sm:$0xff]  ;;  %v750_v47 = vld [vmem:[%s4000_s15 + $0xf0] sm:$0xff] }
  0x4f   : > { %v751_v49 = vld [vmem:[%s4000_s15 + $0xf8] sm:$0xff]  ;;  %v4092_v51 = vld [vmem:[%s6403_s29] sm:$0x7] }
  0x50   : > { %3389 = vmatmul.msk.f32.gmra.mxu0 %vm755_vm1, %v721_v3  ;;  %v4095_v52 = vperm.slane %v4092_v51, 0 }
  0x58   : > { %3390 = vmatmul.msk.f32.gmra.mxu0 %vm755_vm1, %v722_v4 }
  0x60   : > { %3391 = vmatmul.msk.f32.gmra.mxu0 %vm755_vm1, %v723_v5 }
  0x68   : > { %3392 = vmatmul.msk.f32.gmra.mxu0 %vm755_vm1, %v724_v6 }
  0x70   : > { %3393 = vmatmul.msk.f32.gmra.mxu0 %vm755_vm1, %v725_v7 }
  0x78   : > { %3394 = vmatmul.msk.f32.gmra.mxu0 %vm755_vm1, %v726_v8 }
  0x80   : > { %3395 = vmatmul.msk.f32.gmra.mxu0 %vm755_vm1, %v727_v9 }
  0x88   : > { %3396 = vmatmul.msk.f32.gmra.mxu0 %vm755_vm1, %v728_v10 }
  0x90   : > { %3397 = vmatmul.msk.f32.gmra.mxu0 %vm755_vm1, %v729_v11 }
  0x98   : > { %3398 = vmatmul.msk.f32.gmra.mxu0 %vm755_vm1, %v730_v12 }
  0xa0   : > { %3399 = vmatmul.msk.f32.gmra.mxu0 %vm755_vm1, %v731_v13 }
  0xa8   : > { %3400 = vmatmul.msk.f32.gmra.mxu0 %vm755_vm1, %v732_v14 }
  0xb0   : > { %3401 = vmatmul.msk.f32.gmra.mxu0 %vm755_vm1, %v733_v15 }
  0xb8   : > { %3402 = vmatmul.msk.f32.gmra.mxu0 %vm755_vm1, %v734_v16 }
  0xc0   : > { %3403 = vmatmul.msk.f32.gmra.mxu0 %vm755_vm1, %v735_v17 }
  0xc5   : > { %v4041_v18 = vpop.f32.mrf.mxu0 }
  0xc8   : > { %3404 = vmatmul.msk.f32.gmra.mxu0 %vm755_vm1, %v736_v19 }
  0xcd   : > { %v4045_v20 = vpop.f32.mrf.mxu0 }
  0xd0   : > { %3405 = vmatmul.msk.f32.gmra.mxu0 %vm755_vm1, %v737_v21 }
  0xd5   : > { %v4049_v22 = vpop.f32.mrf.mxu0 }
  0xd8   : > { %3406 = vmatmul.msk.f32.gmra.mxu0 %vm755_vm1, %v738_v23 }
  0xdd   : > { %v4053_v24 = vpop.f32.mrf.mxu0 }
  0xe0   : > { %3407 = vmatmul.msk.f32.gmra.mxu0 %vm755_vm1, %v739_v25 }
  0xe5   : > { %v4057_v26 = vpop.f32.mrf.mxu0 }
  0xe8   : > { %3408 = vmatmul.msk.f32.gmra.mxu0 %vm755_vm1, %v740_v27 }
  0xed   : > { %v4061_v28 = vpop.f32.mrf.mxu0 }
  0xf0   : > { %3409 = vmatmul.msk.f32.gmra.mxu0 %vm755_vm1, %v741_v29 }
  0xf5   : > { %v4065_v30 = vpop.f32.mrf.mxu0 }
  0xf8   : > { %3410 = vmatmul.msk.f32.gmra.mxu0 %vm755_vm1, %v742_v31 }
  0xfd   : > { %v4069_v32 = vpop.f32.mrf.mxu0 }
 0x100   : > { %3411 = vmatmul.msk.f32.gmra.mxu0 %vm755_vm1, %v743_v33 }
 0x105   : > { %v897_v34 = vpop.f32.mrf.mxu0 }
 0x106   : > { %v4112_v21 = vadd.f32 %v897_v34, %v4095_v52 }
 0x108   : > { %3412 = vmatmul.msk.f32.gmra.mxu0 %vm755_vm1, %v744_v35 }
 0x10d   : > { %v900_v36 = vpop.f32.mrf.mxu0 }
 0x10e   : > { %v901_v14 = vadd.f32 %v900_v36, %v4095_v52 }
 0x110   : > { %3413 = vmatmul.msk.f32.gmra.mxu0 %vm755_vm1, %v745_v37  ;;  %v4124_v37 = vadd.f32 %v4069_v32, %v4095_v52  ;;  %v977_v32 = vmax.f32 %v4112_v21, 0.0 }
 0x115   : > { %v903_v38 = vpop.f32.mrf.mxu0 }
 0x116   : > { %v904_v8 = vadd.f32 %v903_v38, %v4095_v52 }
 0x118   : > { %3414 = vmatmul.msk.f32.gmra.mxu0 %vm755_vm1, %v746_v39  ;;  %v979_v31 = vmax.f32 %v904_v8, 0.0  ;;  %v978_v39 = vmax.f32 %v901_v14, 0.0  ;;  %v880_v8 = vadd.f32 %v4049_v22, %v4095_v52  ;;  %v877_v14 = vadd.f32 %v4045_v20, %v4095_v52 }
 0x11d   : > { %v906_v40 = vpop.f32.mrf.mxu0 }
 0x11e   : > { %v907_v4 = vadd.f32 %v906_v40, %v4095_v52 }
 0x120   : > { %3415 = vmatmul.msk.f32.gmra.mxu0 %vm755_vm1, %v747_v41  ;;  %v980_v15 = vmax.f32 %v907_v4, 0.0 }
 0x122   : > { %v1056_v40 = vrot.slane %v980_v15, 1 }
 0x125   : > { %v909_v42 = vpop.f32.mrf.mxu0 }
 0x126   : > { %v910_v62 = vadd.f32 %v909_v42, %v4095_v52 }
 0x128   : > { %3416 = vmatmul.msk.f32.gmra.mxu0 %vm755_vm1, %v748_v43  ;;  %v981_v9 = vmax.f32 %v910_v62, 0.0  ;;  %v4131_v43 = vadd.f32 %v4065_v30, %v4095_v52  ;;  %v976_v30 = vmax.f32 %v4124_v37, 0.0  ;;  %v1050_v62 = vrot.slane %v977_v32, 1 }
 0x12a   : > { %v1058_v33 = vrot.slane %v981_v9, 1 }
 0x12d   : > { %v912_v44 = vpop.f32.mrf.mxu0 }
 0x12e   : > { %v913_v60 = vadd.f32 %v912_v44, %v4095_v52 }
 0x130   : > { %3417 = vmatmul.msk.f32.gmra.mxu0 %vm755_vm1, %v749_v45  ;;  %v982_v5 = vmax.f32 %v913_v60, 0.0 }
 0x132   : > { %v1060_v16 = vrot.slane %v982_v5, 1 }
 0x134   : > { %v1061_v42 = vsel %vm1034_vm2, %v1058_v33, %v1060_v16 }
 0x135   : > { %v915_v46 = vpop.f32.mrf.mxu0 }
 0x136   : > { %v916_v57 = vadd.f32 %v915_v46, %v4095_v52  ;;  %v1054_v46 = vrot.slane %v979_v31, 1 }
 0x138   : > { %3418 = vmatmul.msk.f32.gmra.mxu0 %vm755_vm1, %v750_v47  ;;  %v983_v0 = vmax.f32 %v916_v57, 0.0  ;;  %v4145_v57 = vadd.f32 %v4057_v26, %v4095_v52 }
 0x13a   : > { %v1062_v10 = vrot.slane %v983_v0, 1 }
 0x13c   : > { %v1063_v36 = vsel %vm1034_vm2, %v1060_v16, %v1062_v10 }
 0x13d   : > { %v918_v48 = vpop.f32.mrf.mxu0  ;;  %v1145_v45 = vmax.f32 %v982_v5, %v1063_v36  ;;  %v1048_v5 = vrot.slane %v976_v30, 1  ;;  %v971_v36 = vmax.f32 %v880_v8, 0.0 }
 0x13e   : > { %v919_v56 = vadd.f32 %v918_v48, %v4095_v52  ;;  %v1059_v48 = vsel %vm1034_vm2, %v1056_v40, %v1058_v33 }
 0x13f   : > { %v1143_v60 = vmax.f32 %v980_v15, %v1059_v48 }
 0x140   : > { %3419 = vmatmul.msk.f32.gmra.mxu0 %vm755_vm1, %v751_v49  ;;  %v984_v61 = vmax.f32 %v919_v56, 0.0  ;;  %v4138_v49 = vadd.f32 %v4061_v28, %v4095_v52 }
 0x141   : > { %v1178_v26 = vmax.f32 %v1143_v60, %v1145_v45 }
 0x142   : > { %v1064_v6 = vrot.slane %v984_v61, 1  ;;  %v974_v4 = vmax.f32 %v4138_v49, 0.0 }
 0x144   : > { %v1065_v19 = vsel %vm1034_vm2, %v1062_v10, %v1064_v6 }
 0x145   : > { %v921_v50 = vpop.f32.mrf.mxu0  ;;  %v1146_v38 = vmax.f32 %v983_v0, %v1065_v19  ;;  %v1044_v19 = vrot.slane %v974_v4, 1 }
 0x146   : > { %v922_v54 = vadd.f32 %v921_v50, %v4095_v52 }
 0x148   : > { %v985_v58 = vmax.f32 %v922_v54, 0.0  ;;  %v1052_v54 = vrot.slane %v978_v39, 1 }
 0x14a   : > { %v1066_v1 = vrot.slane %v985_v58, 1  ;;  %v1055_v0 = vsel %vm1034_vm2, %v1052_v54, %v1054_v46 }
 0x14b   : > { %v1141_v10 = vmax.f32 %v978_v39, %v1055_v0 }
 0x14c   : > { %v1067_v12 = vsel %vm1034_vm2, %v1064_v6, %v1066_v1 }
 0x14d   : > { %v924_v53 = vpop.f32.mrf.mxu0  ;;  %v1147_v25 = vmax.f32 %v984_v61, %v1067_v12  ;;  %v975_v61 = vmax.f32 %v4131_v43, 0.0  ;;  %v1176_v15 = vmax.f32 %v1141_v10, %v1143_v60 }
 0x14e   : > { %v925_v55 = vadd.f32 %v924_v53, %v4095_v52  ;;  %v1144_v53 = vmax.f32 %v981_v9, %v1061_v42  ;;  %v970_v42 = vmax.f32 %v877_v14, 0.0 }
 0x14f   : > { %v1180_v50 = vmax.f32 %v1145_v45, %v1147_v25 }
 0x150   : > { %v986_v59 = vmax.f32 %v925_v55, 0.0  ;;  %v1057_v55 = vsel %vm1034_vm2, %v1054_v46, %v1056_v40  ;;  %v1038_v46 = vrot.slane %v971_v36, 1 }
 0x152   : > { %v1068_v2 = vrot.slane %v986_v59, 1 }
 0x154   : > { %v1069_v13 = vsel %vm1034_vm2, %v1066_v1, %v1068_v2  ;;  %v883_v1 = vadd.f32 %v4053_v24, %v4095_v52  ;;  %v973_v24 = vmax.f32 %v4145_v57, 0.0 }
 0x155   : > { %v927_v63 = vpop.f32.mrf.mxu0  ;;  %v4116_v29 = vmax.f32 %v985_v58, %v1069_v13  ;;  %v1051_v13 = vsel %vm1034_vm2, %v1048_v5, %v1050_v62 }
 0x156   : > { %v928_v3 = vadd.f32 %v927_v63, %v4095_v52  ;;  %v1139_v33 = vmax.f32 %v976_v30, %v1051_v13  ;;  %v1042_v20 = vrot.slane %v973_v24, 1 }
 0x157   : > { %v1181_v44 = vmax.f32 %v1146_v38, %v4116_v29 }
 0x158   : > { %v987_v7 = vmax.f32 %v928_v3, 0.0 }
 0x15a   : > { %v1070_v11 = vrot.slane %v987_v7, 1 }
 0x15c   : > { %v1071_v17 = vsel %vm1034_vm2, %v1068_v2, %v1070_v11  ;;  %v1142_v2 = vmax.f32 %v979_v31, %v1057_v55 }
 0x15d   : > { %v930_v23 = vpop.f32.mrf.mxu0  ;;  %v4114_v27 = vmax.f32 %v986_v59, %v1071_v17  ;;  %v1179_v59 = vmax.f32 %v1144_v53, %v1146_v38  ;;  %v972_v17 = vmax.f32 %v883_v1, 0.0  ;;  %v1174_v38 = vmax.f32 %v1139_v33, %v1141_v10 }
 0x15e   : > { %v4119_v35 = vadd.f32 %v930_v23, %v4095_v52  ;;  %v1177_v9 = vmax.f32 %v1142_v2, %v1144_v53  ;;  %v874_v23 = vadd.f32 %v4041_v18, %v4095_v52  ;;  %v1036_v53 = vrot.slane %v970_v42, 1 }
 0x15f   : > { %v1182_v34 = vmax.f32 %v1147_v25, %v4114_v27  ;;  %v1040_v18 = vrot.slane %v972_v17, 1 }
 0x160   : > { %v988_v41 = vmax.f32 %v4119_v35, 0.0 }
 0x161   : > { %1215 = vmatpush.msra.mxu1 %v1182_v34  ;;  %v1043_v48 = vsel %vm1034_vm2, %v1040_v18, %v1042_v20  ;;  %v1041_v30 = vsel %vm1034_vm2, %v1038_v46, %v1040_v18 }
 0x162   : > { %v1072_v47 = vrot.slane %v988_v41, 1  ;;  %v1135_v57 = vmax.f32 %v972_v17, %v1043_v48 }
 0x163   : > { %1216 = vmatpush.msra.mxu1 %v1181_v44  ;;  %v1045_v44 = vsel %vm1034_vm2, %v1042_v20, %v1044_v19 }
 0x164   : > { %v1073_v56 = vsel %vm1034_vm2, %v1070_v11, %v1072_v47  ;;  %v1046_v11 = vrot.slane %v975_v61, 1 }
 0x165   : > { %v933_v58 = vpop.f32.mrf.mxu0  ;;  %1217 = vmatpush.msra.mxu1 %v1180_v50  ;;  %v4147_v28 = vmax.f32 %v987_v7, %v1073_v56  ;;  %v1053_v7 = vsel %vm1034_vm2, %v1050_v62, %v1052_v54  ;;  %v1136_v50 = vmax.f32 %v973_v24, %v1045_v44 }
 0x166   : > { %v4151_v63 = vadd.f32 %v933_v58, %v4095_v52  ;;  %v1140_v16 = vmax.f32 %v977_v32, %v1053_v7  ;;  %v1049_v21 = vsel %vm1034_vm2, %v1046_v11, %v1048_v5  ;;  %v1047_v34 = vsel %vm1034_vm2, %v1044_v19, %v1046_v11 }
 0x167   : > { %1218 = vmatpush.msra.mxu1 %v1179_v59  ;;  %v1183_v3 = vmax.f32 %v4116_v29, %v4147_v28  ;;  %v1138_v39 = vmax.f32 %v975_v61, %v1049_v21  ;;  %v1137_v45 = vmax.f32 %v974_v4, %v1047_v34  ;;  %v969_v32 = vmax.f32 %v874_v23, 0.0  ;;  %v1204_v29 = vld [vmem:[%s6404_s4 + $0x28] sm:$0xff] }
 0x168   : > { %v989_v6 = vmax.f32 %v4151_v63, 0.0  ;;  %v1175_v31 = vmax.f32 %v1140_v16, %v1142_v2  ;;  %v1039_v61 = vsel %vm1034_vm2, %v1036_v53, %v1038_v46  ;;  %v1134_v63 = vmax.f32 %v971_v36, %v1041_v30 }
 0x169   : > { %1219 = vmatpush.msra.mxu1 %v1178_v26  ;;  %v1172_v49 = vmax.f32 %v1137_v45, %v1139_v33  ;;  %v1171_v56 = vmax.f32 %v1136_v50, %v1138_v39  ;;  %v1035_v59 = vrot.slane %v969_v32, 1  ;;  %v1170_v62 = vmax.f32 %v1135_v57, %v1137_v45 }
 0x16a   : > { %v1074_v12 = vrot.slane %v989_v6, 1  ;;  %v1169_v2 = vmax.f32 %v1134_v63, %v1136_v50  ;;  %v1133_v4 = vmax.f32 %v970_v42, %v1039_v61 }
 0x16b   : > { %1220 = vmatpush.msra.mxu1 %v1177_v9  ;;  %v1037_v26 = vsel %vm1034_vm2, %v1035_v59, %v1036_v53  ;;  %v3785_v53 = vmov 0.0  }
 0x16c   : > { %v1075_v22 = vsel %vm1034_vm2, %v1072_v47, %v1074_v12  ;;  %v1132_v7 = vmax.f32 %v969_v32, %v1037_v26  ;;  %v4216_v30 = vrot.slane %v3785_v53, 1 }
 0x16d   : > { %v936_v25 = vpop.f32.mrf.mxu0  ;;  %1221 = vmatpush.msra.mxu1 %v1176_v15  ;;  %v4171_v35 = vmax.f32 %v988_v41, %v1075_v22  ;;  %v1173_v41 = vmax.f32 %v1138_v39, %v1140_v16 }
 0x16e   : > { %v937_v37 = vadd.f32 %v936_v25, %v4095_v52  ;;  %v1167_v10 = vmax.f32 %v1132_v7, %v1134_v63 }
 0x16f   : > { %1222 = vmatpush.msra.mxu1 %v1175_v31  ;;  %v1184_v40 = vmax.f32 %v4114_v27, %v4171_v35  ;;  %v1209_v27 = vld [vmem:[%s6404_s4 + $0x50] sm:$0xff] }
 0x170   : > { %v990_v43 = vmax.f32 %v937_v37, 0.0 }
 0x171   : > { %1223 = vmatpush.msra.mxu1 %v1174_v38 }
 0x172   : > { %v1076_v47 = vrot.slane %v990_v43, 1 }
 0x173   : > { %1224 = vmatpush.msra.mxu1 %v1173_v41 }
 0x174   : > { %v1077_v54 = vsel %vm1034_vm2, %v1074_v12, %v1076_v47 }
 0x175   : > { %v939_v55 = vpop.f32.mrf.mxu0  ;;  %1225 = vmatpush.msra.mxu1 %v1172_v49  ;;  %v4181_v58 = vmax.f32 %v989_v6, %v1077_v54  ;;  %v1168_v6 = vmax.f32 %v1133_v4, %v1135_v57 }
 0x176   : > { %v940_v60 = vadd.f32 %v939_v55, %v4095_v52 }
 0x177   : > { %1226 = vmatpush.msra.mxu1 %v1171_v56  ;;  %v1185_v0 = vmax.f32 %v4147_v28, %v4181_v58  ;;  %v1211_v28 = vld [vmem:[%s6404_s4 + $0x60] sm:$0xff] }
 0x178   : > { %v991_v1 = vmax.f32 %v940_v60, 0.0 }
 0x179   : > { %1227 = vmatpush.msra.mxu1 %v1170_v62  ;;  %v4221_v62 = vmax.f32 %v4216_v30, 0.0 }
 0x17a   : > { %v1078_v5 = vrot.slane %v991_v1, 1 }
 0x17b   : > { %1228 = vmatpush.msra.mxu1 %v1169_v2 }
 0x17c   : > { %v1079_v8 = vsel %vm1034_vm2, %v1076_v47, %v1078_v5 }
 0x17d   : > { %v942_v9 = vpop.f32.mrf.mxu0  ;;  %1229 = vmatpush.msra.mxu1 %v1168_v6  ;;  %v4189_v24 = vmax.f32 %v990_v43, %v1079_v8 }
 0x17e   : > { %v943_v11 = vadd.f32 %v942_v9, %v4095_v52 }
 0x17f   : > { %1230 = vmatpush.msra.mxu1 %v1167_v10  ;;  %v1186_v12 = vmax.f32 %v4171_v35, %v4189_v24  ;;  %v1213_v35 = vld [vmem:[%s6404_s4 + $0x70] sm:$0xff] }
 0x180   : > { %v992_v13 = vmax.f32 %v943_v11, 0.0  ;;  %v1199_v11 = vld [vmem:[%s6404_s4] sm:$0xff] }
 0x181   : > { %1231 = vmatmul.f32.vlgmr.msra.gmra.mxu1 %v1199_v11 }
 0x182   : > { %v1080_v14 = vrot.slane %v992_v13, 1 }
 0x184   : > { %v1081_v15 = vsel %vm1034_vm2, %v1078_v5, %v1080_v14 }
 0x185   : > { %v945_v16 = vpop.f32.mrf.mxu0  ;;  %v4195_v17 = vmax.f32 %v991_v1, %v1081_v15 }
 0x186   : > { %v946_v19 = vadd.f32 %v945_v16, %v4095_v52 }
 0x187   : > { %v1187_v21 = vmax.f32 %v4181_v58, %v4195_v17  ;;  %v1202_v58 = vld [vmem:[%s6404_s4 + $0x18] sm:$0xff] }
 0x188   : > { %v993_v22 = vmax.f32 %v946_v19, 0.0 }
 0x18a   : > { %v1082_v23 = vrot.slane %v993_v22, 1 }
 0x18c   : > { %v1083_v25 = vsel %vm1034_vm2, %v1080_v14, %v1082_v23 }
 0x18d   : > { %v948_v31 = vpop.f32.mrf.mxu0  ;;  %v4201_v33 = vmax.f32 %v992_v13, %v1083_v25 }
 0x18e   : > { %v949_v36 = vadd.f32 %v948_v31, %v4095_v52 }
 0x18f   : > { %v1188_v20 = vmax.f32 %v4189_v24, %v4201_v33  ;;  %v1207_v24 = vld [vmem:[%s6404_s4 + $0x40] sm:$0xff] }
 0x190   : > { %v994_v37 = vmax.f32 %v949_v36, 0.0 }
 0x192   : > { %v1084_v34 = vrot.slane %v994_v37, 1 }
 0x194   : > { %v1085_v38 = vsel %vm1034_vm2, %v1082_v23, %v1084_v34 }
 0x195   : > { %v951_v39 = vpop.f32.mrf.mxu0  ;;  %v4207_v42 = vmax.f32 %v993_v22, %v1085_v38 }
 0x196   : > { %v952_v57 = vadd.f32 %v951_v39, %v4095_v52 }
 0x197   : > { %v1189_v18 = vmax.f32 %v4195_v17, %v4207_v42  ;;  %v1200_v17 = vld [vmem:[%s6404_s4 + $0x8] sm:$0xff] }
 0x198   : > { %v995_v6 = vmax.f32 %v952_v57, 0.0 }
 0x19a   : > { %v1086_v15 = vrot.slane %v995_v6, 1 }
 0x19c   : > { %v1087_v36 = vsel %vm1034_vm2, %v1084_v34, %v1086_v15  ;;  %v1203_v34 = vld [vmem:[%s6404_s4 + $0x20] sm:$0xff] }
 0x19d   : > { %v954_v43 = vpop.f32.mrf.mxu0 }
 0x19e   : > { %v955_v54 = vadd.f32 %v954_v43, %v4095_v52  ;;  %v1201_v43 = vld [vmem:[%s6404_s4 + $0x10] sm:$0xff] }
 0x19f   : > { %1234 = vmatmul.f32.gmra.mxu1 %v1201_v43 }
 0x1a0   : > { %v996_v63 = vmax.f32 %v955_v54, 0.0  ;;  %v4319_v54 = vperm.slane %v4092_v51, 1 }
 0x1a2   : > { %v1088_v9 = vrot.slane %v996_v63, 1 }
 0x1a4   : > { %v1089_v23 = vsel %vm1034_vm2, %v1086_v15, %v1088_v9 }
 0x1a5   : > { %v957_v44 = vpop.f32.mrf.mxu0  ;;  %v1158_v39 = vmax.f32 %v995_v6, %v1089_v23 }
 0x1a6   : > { %v958_v48 = vadd.f32 %v957_v44, %v4095_v52 }
 0x1a7   : > { %1237 = vmatmul.f32.gmra.mxu1 %v1203_v34 }
 0x1a8   : > { %v997_v59 = vmax.f32 %v958_v48, 0.0  ;;  %v1750_v48 = vld [vmem:[%s6405_s28 + $0x108] sm:$0xff] }
 0x1aa   : > { %v1090_v7 = vrot.slane %v997_v59, 1 }
 0x1ac   : > { %v1091_v16 = vsel %vm1034_vm2, %v1088_v9, %v1090_v7 }
 0x1ad   : > { %v960_v41 = vpop.f32.mrf.mxu0  ;;  %v1159_v31 = vmax.f32 %v996_v63, %v1091_v16 }
 0x1ae   : > { %v961_v46 = vadd.f32 %v960_v41, %v4095_v52  ;;  %v1157_v41 = vmax.f32 %v994_v37, %v1087_v36  ;;  %v1205_v37 = vld [vmem:[%s6404_s4 + $0x30] sm:$0xff] }
 0x1af   : > { %1240 = vmatmul.f32.gmra.mxu1 %v1205_v37 }
 0x1b0   : > { %v998_v55 = vmax.f32 %v961_v46, 0.0  ;;  %v1190_v46 = vmax.f32 %v4201_v33, %v1157_v41 }
 0x1b2   : > { %v1092_v1 = vrot.slane %v998_v55, 1 }
 0x1b4   : > { %v1093_v10 = vsel %vm1034_vm2, %v1090_v7, %v1092_v1 }
 0x1b5   : > { %v963_v45 = vpop.f32.mrf.mxu0  ;;  %v1160_v22 = vmax.f32 %v997_v59, %v1093_v10  ;;  %v4325_v59 = vperm.slane %v4092_v51, 2 }
 0x1b6   : > { %v964_v32 = vadd.f32 %v963_v45, %v4095_v52  ;;  %v1192_v45 = vmax.f32 %v1157_v41, %v1159_v31  ;;  %v4369_v41 = vrot.slane %v3785_v53, 2 }
 0x1b7   : > { %v1193_v44 = vmax.f32 %v1158_v39, %v1160_v22  ;;  %1243 = vmatmul.f32.gmra.mxu1 %v1207_v24 }
 0x1b8   : > { %v999_v49 = vmax.f32 %v964_v32, 0.0  ;;  %v1191_v32 = vmax.f32 %v4207_v42, %v1158_v39  ;;  %v1315_v42 = vlaneseq }
 0x1ba   : > { %v1094_v60 = vrot.slane %v999_v49, 1 }
 0x1bc   : > { %v1095_v8 = vsel %vm1034_vm2, %v1092_v1, %v1094_v60 }
 0x1bd   : > { %v966_v47 = vpop.f32.mrf.mxu0  ;;  %v1161_v14 = vmax.f32 %v998_v55, %v1095_v8 }
 0x1be   : > { %v967_v50 = vadd.f32 %v966_v47, %v4095_v52 }
 0x1bf   : > { %v1194_v38 = vmax.f32 %v1159_v31, %v1161_v14  ;;  %1246 = vmatmul.f32.gmra.mxu1 %v1209_v27 }
 0x1c0   : > { %v1000_v56 = vmax.f32 %v967_v50, 0.0  ;;  %v1749_v50 = vld [vmem:[%s6405_s28 + $0x100] sm:$0xff] }
 0x1c2   : > { %v1096_v61 = vrot.slane %v1000_v56, 1 }
 0x1c4   : > { %v1099_v26 = vsel %vm1034_vm2, %v1096_v61, %v4216_v30  ;;  %v1097_v2 = vsel %vm1034_vm2, %v1094_v60, %v1096_v61 }
 0x1c5   : > { %v1163_v4 = vmax.f32 %v1000_v56, %v1099_v26  ;;  %v1162_v5 = vmax.f32 %v999_v49, %v1097_v2  ;;  %v4313_v49 = vshrl.u32 %v1315_v42, 7 }
 0x1c7   : > { %v1198_v52 = vmax.f32 %v1163_v4, %v4221_v62  ;;  %v1197_v13 = vmax.f32 %v1162_v5, %v4221_v62  ;;  %v1196_v19 = vmax.f32 %v1161_v14, %v1163_v4  ;;  %v1195_v25 = vmax.f32 %v1160_v22, %v1162_v5  ;;  %1249 = vmatmul.f32.gmra.mxu1 %v1211_v28 }
 0x1c8   : > { %v4322_v55 = vadd.s32 8, %v4313_v49  ;;  %v1318_v5 = vadd.s32 16, %v4313_v49  ;;  %v4354_v22 = vadd.s32 24, %v4313_v49 }
 0x1c9   : > { %1256 = vmatpush.msra.mxu2 %v1198_v52  ;;  %v1324_v52 = vand.u32 7, %v4313_v49 }
 0x1ca   : > { %v1325_v61 = vand.u32 7, %v4322_v55  ;;  %v1326_v9 = vand.u32 7, %v1318_v5  ;;  %v1327_v37 = vand.u32 7, %v4354_v22 }
 0x1cb   : > { %1257 = vmatpush.msra.mxu2 %v1197_v13  ;;  %vm4344_vm4 = vcmp.eq.s32.totalorder %v1324_v52, 0  ;;  %vm4393_vm8 = vcmp.eq.s32.totalorder %v1324_v52, 7 }
 0x1cc   : > { %vm4330_vm3 = vcmp.eq.s32.totalorder %v1325_v61, 0  ;;  %vm4349_vm5 = vcmp.eq.s32.totalorder %v1326_v9, 0  ;;  %vm4384_vm7 = vcmp.eq.s32.totalorder %v1325_v61, 7  ;;  %vm4399_vm9 = vcmp.eq.s32.totalorder %v1327_v37, 0 }
 0x1cd   : > { %1258 = vmatpush.msra.mxu2 %v1196_v19  ;;  %vm4408_vm10 = vcmp.eq.s32.totalorder %v1326_v9, 7  ;;  %vm4452_vm13 = vcmp.eq.s32.totalorder %v1327_v37, 7 }
 0x1cf   : > { %1259 = vmatpush.msra.mxu2 %v1195_v25  ;;  %1252 = vmatmul.f32.gmra.mxu1 %v1213_v35 }
 0x1d1   : > { %1260 = vmatpush.msra.mxu2 %v1194_v38 }
 0x1d3   : > { %1261 = vmatpush.msra.mxu2 %v1193_v44 }
 0x1d5   : > { %1262 = vmatpush.msra.mxu2 %v1192_v45 }
 0x1d7   : > { %1263 = vmatpush.msra.mxu2 %v1191_v32 }
 0x1d9   : > { %1264 = vmatpush.msra.mxu2 %v1190_v46 }
 0x1db   : > { %1265 = vmatpush.msra.mxu2 %v1189_v18  ;;  %v1751_v18 = vld [vmem:[%s6405_s28 + $0x110] sm:$0xff] }
 0x1dd   : > { %1266 = vmatpush.msra.mxu2 %v1188_v20  ;;  %v1752_v20 = vld [vmem:[%s6405_s28 + $0x118] sm:$0xff] }
 0x1df   : > { %1267 = vmatpush.msra.mxu2 %v1187_v21  ;;  %v1214_v21 = vld [vmem:[%s6404_s4 + $0x78] sm:$0xff] }
 0x1e1   : > { %1268 = vmatpush.msra.mxu2 %v1186_v12  ;;  %v1212_v12 = vld [vmem:[%s6404_s4 + $0x68] sm:$0xff] }
 0x1e3   : > { %1269 = vmatpush.msra.mxu2 %v1185_v0  ;;  %v1210_v0 = vld [vmem:[%s6404_s4 + $0x58] sm:$0xff] }
 0x1e5   : > { %1270 = vmatpush.msra.mxu2 %v1184_v40  ;;  %v1208_v40 = vld [vmem:[%s6404_s4 + $0x48] sm:$0xff] }
 0x1e7   : > { %1271 = vmatpush.msra.mxu2 %v1183_v3  ;;  %v1206_v3 = vld [vmem:[%s6404_s4 + $0x38] sm:$0xff] }
 0x1e8   : > { %1272 = vmatmul.f32.vlgmr.msra.gmra.mxu2 %v1200_v17 }
 0x1e9   : > { %1872 = vmatpush.msrb.mxu2 %v1752_v20 }
 0x1eb   : > { %1873 = vmatpush.msrb.mxu2 %v1751_v18 }
 0x1ed   : > { %1874 = vmatpush.msrb.mxu2 %v1750_v48 }
 0x1ef   : > { %1875 = vmatpush.msrb.mxu2 %v1749_v50 }
 0x1f0   : > { %1275 = vmatmul.f32.gmra.mxu2 %v1202_v58 }
 0x1f8   : > { %1278 = vmatmul.f32.gmra.mxu2 %v1204_v29  ;;  %v4390_v29 = vadd.s32 32, %v4313_v49 }
 0x1fa   : > { %v1328_v48 = vand.u32 7, %v4390_v29 }
 0x1fc   : > { %vm4443_vm12 = vcmp.eq.s32.totalorder %v1328_v48, 0  ;;  %vm4496_vm15 = vcmp.eq.s32.totalorder %v1328_v48, 7 }
 0x1fe   : > { %v1232_v33 = vpop.f32.mrf.mxu1 }
 0x200   : > { %1281 = vmatmul.f32.gmra.mxu2 %v1206_v3 }
 0x208   : > { %1284 = vmatmul.f32.gmra.mxu2 %v1208_v40 }
 0x210   : > { %1287 = vmatmul.f32.gmra.mxu2 %v1210_v0 }
 0x218   : > { %1290 = vmatmul.f32.gmra.mxu2 %v1212_v12 }
 0x21c   : > { %v1235_v47 = vpop.f32.mrf.mxu1 }
 0x220   : > { %1293 = vmatmul.f32.gmra.mxu2 %v1214_v21 }
 0x224   : > { %v1238_v63 = vpop.f32.mrf.mxu1 }
 0x22c   : > { %v1241_v11 = vpop.f32.mrf.mxu1 }
 0x234   : > { %v1244_v0 = vpop.f32.mrf.mxu1 }
 0x26b   : > { %v1273_v56 = vpop.f32.mrf.mxu2 }
 0x26c   : > { %v1274_v57 = vadd.f32 %v1273_v56, %v1232_v33 }
 0x26e   : > { %v1298_v60 = vmul.f32 %v4319_v54, %v1274_v57 }
 0x270   : > { %v1307_v1 = vadd.f32 %v4325_v59, %v1298_v60 }
 0x272   : > { %v1340_v26 = vrot.slane %v1307_v1, 7 }
 0x273   : > { %v1276_v4 = vpop.f32.mrf.mxu2 }
 0x274   : > { %v1277_v6 = vadd.f32 %v1276_v4, %v1235_v47  ;;  %v4336_v7 = vsel %vm852_vm0, 0.0, %v1340_v26 }
 0x275   : > { %v1374_v51 = vsel %vm4330_vm3, 0.0, %v4336_v7  ;;  %v1462_v16 = vrot.slane %v4336_v7, 1  ;;  %v1424_v31 = vsel %vm4344_vm4, 0.0, %v4336_v7  ;;  %v1392_v34 = vrot.slane %v4336_v7, 2 }
 0x276   : > { %v1299_v8 = vmul.f32 %v4319_v54, %v1277_v6 }
 0x277   : > { %v1463_v32 = vsel %vm1034_vm2, %v4216_v30, %v1462_v16  ;;  %v1393_v40 = vsel %vm1390_vm6, %v4369_v41, %v1392_v34 }
 0x278   : > { %v1308_v10 = vadd.f32 %v4325_v59, %v1299_v8  ;;  %v1416_v56 = vsel %vm4393_vm8, 0.0, %v1393_v40  ;;  %v4483_v40 = vadd.s32 48, %v4313_v49 }
 0x27a   : > { %v1341_v13 = vrot.slane %v1308_v10, 7  ;;  %v4440_v10 = vadd.s32 40, %v4313_v49 }
 0x27b   : > { %v1279_v15 = vpop.f32.mrf.mxu2 }
 0x27c   : > { %v1280_v23 = vadd.f32 %v1279_v15, %v1238_v63  ;;  %v4357_v25 = vsel %vm852_vm0, %v1340_v26, %v1341_v13 }
 0x27d   : > { %v1425_v36 = vsel %vm4330_vm3, 0.0, %v4357_v25  ;;  %v1464_v38 = vrot.slane %v4357_v25, 1  ;;  %v1394_v39 = vrot.slane %v4357_v25, 2  ;;  %v1375_v45 = vsel %vm4349_vm5, 0.0, %v4357_v25 }
 0x27e   : > { %v1300_v43 = vmul.f32 %v4319_v54, %v1280_v23  ;;  %v3541_v44 = vpack.i.bf16 %v1425_v36, %v1424_v31  ;;  %v1444_v57 = vsel %vm4344_vm4, 0.0, %v4357_v25  ;;  %v1247_v31 = vpop.f32.mrf.mxu1 }
 0x27f   : > { %v4377_v46 = vsel %vm1034_vm2, %v1462_v16, %v1464_v38  ;;  %v1395_v27 = vsel %vm1390_vm6, %v1392_v34, %v1394_v39 }
 0x280   : > { %v1309_v17 = vadd.f32 %v4325_v59, %v1300_v43  ;;  %3542 = vrot.lane.b32.xlu1 %v3541_v44, %s3786_s24  ;;  %v3531_v24 = vpack.i.bf16 %v4377_v46, %v1463_v32  ;;  %v1417_v20 = vsel %vm4384_vm7, 0.0, %v1395_v27  ;;  %v1436_v1 = vsel %vm4393_vm8, 0.0, %v1395_v27 }
 0x281   : > { %v3536_v63 = vpack.i.bf16 %v1417_v20, %v1416_v56 }
 0x282   : > { %v1343_v28 = vrot.slane %v1309_v17, 7  ;;  %3532 = vrot.lane.b32.xlu0 %v3531_v24, %s3787_s2 }
 0x283   : > { %v1282_v3 = vpop.f32.mrf.mxu2 }
 0x284   : > { %v4404_v21 = vsel %vm852_vm0, %v1341_v13, %v1343_v28  ;;  %v1283_v33 = vadd.f32 %v1282_v3, %v1241_v11 }
 0x285   : > { %v1396_v18 = vrot.slane %v4404_v21, 2  ;;  %v1466_v47 = vrot.slane %v4404_v21, 1  ;;  %v1376_v60 = vsel %vm4399_vm9, 0.0, %v4404_v21  ;;  %v1445_v37 = vsel %vm4330_vm3, 0.0, %v4404_v21 }
 0x286   : > { %v1301_v50 = vmul.f32 %v4319_v54, %v1283_v33  ;;  %vm1998_vm3 = vcmask 1044480  }
 0x287   : > { %v1397_v61 = vsel %vm1390_vm6, %v1394_v39, %v1396_v18  ;;  %v4428_v26 = vsel %vm1034_vm2, %v1464_v38, %v1466_v47  ;;  %v1426_v38 = vsel %vm4349_vm5, 0.0, %v4404_v21  ;;  %v1329_v39 = vand.u32 7, %v4440_v10 }
 0x288   : > { %v1310_v4 = vadd.f32 %v4325_v59, %v1301_v50  ;;  %v1454_v5 = vsel %vm4393_vm8, 0.0, %v1397_v61  ;;  %v3546_v6 = vpack.i.bf16 %v4428_v26, %v1436_v1  ;;  %v1418_v8 = vsel %vm4408_vm10, 0.0, %v1397_v61  ;;  %v1748_v50 = vld [vmem:[%s6405_s28 + $0xf8] sm:$0xff] }
 0x289   : > { %3420 = vmatmul.msk.f32.vlgmr.msrb.gmra.mxu2 %vm1665_vm11, %v1454_v5  ;;  %v3551_v52 = vpack.i.bf16 %v1418_v8, %v1444_v57  ;;  %v1437_v32 = vsel %vm4384_vm7, 0.0, %v1397_v61  ;;  %vm4487_vm14 = vcmp.eq.s32.totalorder %v1329_v39, 0  ;;  %v1330_v61 = vand.u32 7, %v4483_v40  ;;  %1819 = vmatpush.msrb.mxu1 %v1748_v50  ;;  %v1730_v50 = vld [vmem:[%s6405_s28 + $0x68] sm:$0xff] }
 0x28a   : > { %v1345_v9 = vrot.slane %v1310_v4, 7  ;;  %3537 = vrot.lane.b32.xlu0 %v3536_v63, %s6380_s5  ;;  %3547 = vrot.lane.b32.xlu1 %v3546_v6, %s3787_s2  ;;  %v1250_v6 = vpop.f32.mrf.mxu1  ;;  %vm4540_vm4 = vcmp.eq.s32.totalorder %v1329_v39, 7 }
 0x28b   : > { %v1285_v11 = vpop.f32.mrf.mxu2  ;;  %3552 = vrot.lane.b32.xlu2 %v3551_v52, %s6380_s5  ;;  %vm4531_vm1 = vcmp.eq.s32.totalorder %v1330_v61, 0  ;;  %vm4581_vm8 = vcmp.eq.s32.totalorder %v1330_v61, 7 }
 0x28c   : > { %v4448_v14 = vsel %vm852_vm0, %v1343_v28, %v1345_v9  ;;  %v1286_v15 = vadd.f32 %v1285_v11, %v1244_v0  ;;  %v3556_v28 = vpack.i.bf16 %v1426_v38, %v4428_v26 }
 0x28d   : > { %v1398_v16 = vrot.slane %v4448_v14, 2  ;;  %v1468_v22 = vrot.slane %v4448_v14, 1  ;;  %v1377_v43 = vsel %vm4443_vm12, 0.0, %v4448_v14  ;;  %v1427_v57 = vsel %vm4399_vm9, 0.0, %v4448_v14 }
 0x28e   : > { %v1302_v36 = vmul.f32 %v4319_v54, %v1286_v15  ;;  %v1446_v5 = vsel %vm4349_vm5, 0.0, %v4448_v14 }
 0x28f   : > { %v1399_v44 = vsel %vm1390_vm6, %v1396_v18, %v1398_v16  ;;  %v4468_v34 = vsel %vm1034_vm2, %v1466_v47, %v1468_v22 }
 0x290   : > { %v1311_v17 = vadd.f32 %v4325_v59, %v1302_v36  ;;  %v1455_v24 = vsel %vm4384_vm7, 0.0, %v1399_v44  ;;  %v3561_v27 = vpack.i.bf16 %v4468_v34, %v1437_v32  ;;  %v1419_v29 = vsel %vm4452_vm13, 0.0, %v1399_v44 }
 0x291   : > { %3421 = vmatmul.msk.f32.gmra.mxu2 %vm1665_vm11, %v1455_v24  ;;  %v3571_v3 = vpack.i.bf16 %v1419_v29, %v1445_v37  ;;  %v1438_v48 = vsel %vm4408_vm10, 0.0, %v1399_v44  ;;  %v3566_v11 = vpack.i.bf16 %v1427_v57, %v4468_v34 }
 0x292   : > { %v1347_v35 = vrot.slane %v1311_v17, 7  ;;  %3562 = vrot.lane.b32.xlu0 %v3561_v27, %s3787_s2  ;;  %v1253_v57 = vpop.f32.mrf.mxu1 }
 0x293   : > { %v1288_v0 = vpop.f32.mrf.mxu2  ;;  %3557 = vrot.lane.b32.xlu2 %v3556_v28, %s3786_s24  ;;  %3572 = vrot.lane.b32.xlu1 %v3571_v3, %s6380_s5 }
 0x294   : > { %v4492_v33 = vsel %vm852_vm0, %v1345_v9, %v1347_v35  ;;  %v1289_v20 = vadd.f32 %v1288_v0, %v1247_v31 }
 0x295   : > { %v1400_v18 = vrot.slane %v4492_v33, 2  ;;  %v1470_v47 = vrot.slane %v4492_v33, 1  ;;  %v1378_v63 = vsel %vm4487_vm14, 0.0, %v4492_v33  ;;  %v1428_v24 = vsel %vm4443_vm12, 0.0, %v4492_v33 }
 0x296   : > { %v1303_v56 = vmul.f32 %v4319_v54, %v1289_v20 }
 0x297   : > { %v1401_v1 = vsel %vm1390_vm6, %v1398_v16, %v1400_v18  ;;  %v4512_v4 = vsel %vm1034_vm2, %v1468_v22, %v1470_v47  ;;  %v4527_v22 = vadd.s32 56, %v4313_v49 }
 0x298   : > { %v1312_v8 = vadd.f32 %v4325_v59, %v1303_v56  ;;  %v1456_v52 = vsel %vm4408_vm10, 0.0, %v1401_v1  ;;  %v3576_v9 = vpack.i.bf16 %v4512_v4, %v1438_v48  ;;  %v1420_v10 = vsel %vm4496_vm15, 0.0, %v1401_v1 }
 0x299   : > { %3422 = vmatmul.msk.f32.gmra.mxu2 %vm1665_vm11, %v1456_v52  ;;  %v3586_v15 = vpack.i.bf16 %v1420_v10, %v1446_v5  ;;  %v1331_v27 = vand.u32 7, %v4527_v22  ;;  %v1439_v39 = vsel %vm4452_vm13, 0.0, %v1401_v1  ;;  %v3581_v56 = vpack.i.bf16 %v1428_v24, %v4512_v4 }
 0x29a   : > { %v1349_v16 = vrot.slane %v1312_v8, 7  ;;  %3577 = vrot.lane.b32.xlu0 %v3576_v9, %s3787_s2 }
 0x29b   : > { %v1291_v31 = vpop.f32.mrf.mxu2  ;;  %3567 = vrot.lane.b32.xlu2 %v3566_v11, %s3786_s24  ;;  %3587 = vrot.lane.b32.xlu1 %v3586_v15, %s6380_s5  ;;  %vm4572_vm7 = vcmp.eq.s32.totalorder %v1331_v27, 0  ;;  %vm4625_vm10 = vcmp.eq.s32.totalorder %v1331_v27, 7 }
 0x29c   : > { %v4536_v36 = vsel %vm852_vm0, %v1347_v35, %v1349_v16  ;;  %v1292_v38 = vadd.f32 %v1291_v31, %v1250_v6  ;;  %v1447_v35 = vsel %vm4399_vm9, 0.0, %v4492_v33 }
 0x29d   : > { %v1402_v44 = vrot.slane %v4536_v36, 2  ;;  %v1472_v32 = vrot.slane %v4536_v36, 1  ;;  %v1379_v29 = vsel %vm4531_vm1, 0.0, %v4536_v36  ;;  %v1429_v11 = vsel %vm4487_vm14, 0.0, %v4536_v36 }
 0x29e   : > { %v1304_v17 = vmul.f32 %v4319_v54, %v1292_v38 }
 0x29f   : > { %v1403_v28 = vsel %vm1390_vm6, %v1400_v18, %v1402_v44  ;;  %v4556_v3 = vsel %vm1034_vm2, %v1470_v47, %v1472_v32 }
 0x2a0   : > { %v1313_v40 = vadd.f32 %v4325_v59, %v1304_v17  ;;  %v1457_v0 = vsel %vm4452_vm13, 0.0, %v1403_v28  ;;  %v3591_v20 = vpack.i.bf16 %v4556_v3, %v1439_v39  ;;  %v1421_v18 = vsel %vm4540_vm4, 0.0, %v1403_v28 }
 0x2a1   : > { %3423 = vmatmul.msk.f32.gmra.mxu2 %vm1665_vm11, %v1457_v0  ;;  %v3601_v47 = vpack.i.bf16 %v1421_v18, %v1447_v35  ;;  %v1440_v22 = vsel %vm4496_vm15, 0.0, %v1403_v28  ;;  %v3596_v24 = vpack.i.bf16 %v1429_v11, %v4556_v3  ;;  %v1731_v35 = vld [vmem:[%s6405_s28 + $0x70] sm:$0xff]  ;;  %vm1683_vm13 = vcmask 785408  }
 0x2a2   : > { %v1351_v1 = vrot.slane %v1313_v40, 7  ;;  %3592 = vrot.lane.b32.xlu0 %v3591_v20, %s3787_s2  ;;  %v1747_v40 = vld [vmem:[%s6405_s28 + $0xf0] sm:$0xff] }
 0x2a3   : > { %v1294_v48 = vpop.f32.mrf.mxu2  ;;  %3582 = vrot.lane.b32.xlu2 %v3581_v56, %s3786_s24  ;;  %3602 = vrot.lane.b32.xlu1 %v3601_v47, %s6380_s5 }
 0x2a4   : > { %v4577_v5 = vsel %vm852_vm0, %v1349_v16, %v1351_v1  ;;  %v1295_v6 = vadd.f32 %v1294_v48, %v1253_v57  ;;  %1820 = vmatpush.msrb.mxu1 %v1747_v40  ;;  %v1745_v40 = vld [vmem:[%s6405_s28 + $0xe0] sm:$0xff] }
 0x2a5   : > { %v1404_v8 = vrot.slane %v4577_v5, 2  ;;  %v1474_v52 = vrot.slane %v4577_v5, 1  ;;  %v1380_v15 = vsel %vm4572_vm7, 0.0, %v4577_v5  ;;  %v1430_v48 = vsel %vm4531_vm1, 0.0, %v4577_v5 }
 0x2a6   : > { %v1305_v10 = vmul.f32 %v4319_v54, %v1295_v6  ;;  %v1448_v54 = vsel %vm4443_vm12, 0.0, %v4536_v36  ;;  %vm2024_vm12 = vcmask 1043456  }
 0x2a7   : > { %v1405_v16 = vsel %vm1390_vm6, %v1402_v44, %v1404_v8  ;;  %v4596_v61 = vsel %vm1034_vm2, %v1472_v32, %v1474_v52 }
 0x2a8   : > { %v1314_v31 = vadd.f32 %v4325_v59, %v1305_v10  ;;  %v1458_v38 = vsel %vm4496_vm15, 0.0, %v1405_v16  ;;  %v3606_v17 = vpack.i.bf16 %v4596_v61, %v1440_v22  ;;  %v1422_v44 = vsel %vm4581_vm8, 0.0, %v1405_v16  ;;  %v1732_v59 = vld [vmem:[%s6405_s28 + $0x78] sm:$0xff] }
 0x2a9   : > { %3424 = vmatmul.msk.f32.gmra.mxu2 %vm1665_vm11, %v1458_v38  ;;  %v3616_v32 = vpack.i.bf16 %v1422_v44, %v1448_v54  ;;  %1778 = vmatpush.msra.mxu3 %v1732_v59  ;;  %v1441_v57 = vsel %vm4540_vm4, 0.0, %v1405_v16  ;;  %vm2069_vm15 = vcmask 1042432  }
 0x2aa   : > { %v1353_v28 = vrot.slane %v1314_v31, 7  ;;  %3607 = vrot.lane.b32.xlu0 %v3606_v17, %s3787_s2 }
 0x2ab   : > { %3597 = vrot.lane.b32.xlu2 %v3596_v24, %s3786_s24  ;;  %3617 = vrot.lane.b32.xlu1 %v3616_v32, %s6380_s5 }
 0x2ac   : > { %v1354_v39 = vsel %vm852_vm0, %v1351_v1, %v1353_v28  ;;  %v1365_v56 = vsel %vm852_vm0, %v1353_v28, 0.0  ;;  %1779 = vmatpush.msra.mxu3 %v1731_v35  ;;  %v1729_v35 = vld [vmem:[%s6405_s28 + $0x60] sm:$0xff]  ;;  %vm1674_vm0 = vcmask 523264  }
 0x2ad   : > { %v1406_v0 = vrot.slane %v1354_v39, 2  ;;  %v1476_v20 = vrot.slane %v1354_v39, 1  ;;  %v1433_v16 = vrot.slane %v1365_v56, 2  ;;  %v1566_v31 = vrot.slane %v1365_v56, 1 }
 0x2ae   : > { %v1450_v38 = vsel %vm4531_vm1, 0.0, %v1354_v39  ;;  %v1431_v24 = vsel %vm4572_vm7, 0.0, %v1354_v39  ;;  %v1451_v59 = vsel %vm4572_vm7, 0.0, %v1365_v56  ;;  %v1746_v39 = vld [vmem:[%s6405_s28 + $0xe8] sm:$0xff]  ;;  %1780 = vmatpush.msra.mxu3 %v1730_v50  ;;  %v1727_v56 = vld [vmem:[%s6405_s28 + $0x50] sm:$0xff] }
 0x2af   : > { %v1407_v47 = vsel %vm1390_vm6, %v1404_v8, %v1406_v0  ;;  %v4634_v1 = vsel %vm1034_vm2, %v1474_v52, %v1476_v20  ;;  %v1449_v8 = vsel %vm4487_vm14, 0.0, %v4577_v5  ;;  %v3611_v52 = vpack.i.bf16 %v1430_v48, %v4596_v61  ;;  %1821 = vmatpush.msrb.mxu1 %v1746_v39  ;;  %v1742_v48 = vld [vmem:[%s6405_s28 + $0xc8] sm:$0xff] }
 0x2b0   : > { %v1459_v27 = vsel %vm4540_vm4, 0.0, %v1407_v47  ;;  %v3621_v6 = vpack.i.bf16 %v4634_v1, %v1441_v57  ;;  %v1423_v10 = vsel %vm4625_vm10, 0.0, %v1407_v47  ;;  %v1434_v37 = vsel %vm1390_vm6, %v1406_v0, %v1433_v16  ;;  %v1728_v0 = vld [vmem:[%s6405_s28 + $0x58] sm:$0xff]  ;;  %1781 = vmatpush.msra.mxu3 %v1729_v35  ;;  %v1726_v57 = vld [vmem:[%s6405_s28 + $0x48] sm:$0xff] }
 0x2b1   : > { %3425 = vmatmul.msk.f32.gmra.mxu2 %vm1665_vm11, %v1459_v27  ;;  %v3626_v11 = vpack.i.bf16 %v1423_v10, %v1449_v8  ;;  %v1460_v22 = vsel %vm4581_vm8, 0.0, %v1434_v37  ;;  %v1442_v54 = vsel %vm4581_vm8, 0.0, %v1407_v47  ;;  %v1452_v17 = vsel %vm1390_vm6, %v1433_v16, %v4369_v41  ;;  %1822 = vmatpush.msrb.mxu1 %v1745_v40  ;;  %v1743_v47 = vld [vmem:[%s6405_s28 + $0xd0] sm:$0xff]  ;;  %v1725_v27 = vld [vmem:[%s6405_s28 + $0x40] sm:$0xff]  ;;  %v1724_v10 = vld [vmem:[%s6405_s28 + $0x38] sm:$0xff] }
 0x2b2   : > { %3622 = vrot.lane.b32.xlu0 %v3621_v6, %s3787_s2  ;;  %v4667_v44 = vsel %vm1034_vm2, %v1476_v20, %v1566_v31  ;;  %v1461_v9 = vsel %vm4625_vm10, 0.0, %v1452_v17  ;;  %v1443_v32 = vsel %vm4625_vm10, 0.0, %v1434_v37  ;;  %v1744_v20 = vld [vmem:[%s6405_s28 + $0xd8] sm:$0xff]  ;;  %v1640_v18 = vsel %vm1034_vm2, %v1566_v31, %v4216_v30  ;;  %1782 = vmatpush.msra.mxu3 %v1728_v0  ;;  %v1741_v6 = vld [vmem:[%s6405_s28 + $0xc0] sm:$0xff]  ;;  %v1722_v16 = vld [vmem:[%s6405_s28 + $0x28] sm:$0xff] }
 0x2b3   : > { %3612 = vrot.lane.b32.xlu2 %v3611_v52, %s3786_s24  ;;  %3627 = vrot.lane.b32.xlu1 %v3626_v11, %s6380_s5  ;;  %v3631_v28 = vpack.i.bf16 %v4667_v44, %v1431_v24  ;;  %v1740_v8 = vld [vmem:[%s6405_s28 + $0xb8] sm:$0xff]  ;;  %v1723_v52 = vld [vmem:[%s6405_s28 + $0x30] sm:$0xff]  ;;  %vm2034_vm14 = vcmask 1041408   ;;  %vm3289_vm8 = vcmask 16384  }
 0x2b4   : > { %1823 = vmatpush.msrb.mxu1 %v1744_v20  ;;  %1783 = vmatpush.msra.mxu3 %v1727_v56  ;;  %v1739_v11 = vld [vmem:[%s6405_s28 + $0xb0] sm:$0xff]  ;;  %v1738_v37 = vld [vmem:[%s6405_s28 + $0xa8] sm:$0xff]  ;;  %v1720_v31 = vld [vmem:[%s6405_s28 + $0x18] sm:$0xff] }
 0x2b5   : > { %v1719_v17 = vld [vmem:[%s6405_s28 + $0x10] sm:$0xff]  ;;  %v1718_v24 = vld [vmem:[%s6405_s28 + $0x8] sm:$0xff] }
 0x2b6   : > { %1824 = vmatpush.msrb.mxu1 %v1743_v47  ;;  %1784 = vmatpush.msra.mxu3 %v1726_v57 }
 0x2b8   : > { %1825 = vmatpush.msrb.mxu1 %v1742_v48  ;;  %1785 = vmatpush.msra.mxu3 %v1725_v27 }
 0x2b9   : > { %3426 = vmatmul.msk.f32.gmra.mxu2 %vm1665_vm11, %v1460_v22  ;;  %v1721_v22 = vld [vmem:[%s6405_s28 + $0x20] sm:$0xff] }
 0x2ba   : > { %1596 = vrot.lane.b32.xlu0 %v1442_v54, %s3787_s2  ;;  %1826 = vmatpush.msrb.mxu1 %v1741_v6  ;;  %v1737_v54 = vld [vmem:[%s6405_s28 + $0xa0] sm:$0xff] }
 0x2bb   : > { %1651 = vrot.lane.b32.xlu2 %v4634_v1, %s3786_s24  ;;  %1628 = vrot.lane.b32.xlu1 %v1450_v38, %s6380_s5  ;;  %v1736_v38 = vld [vmem:[%s6405_s28 + $0x98] sm:$0xff] }
 0x2bc   : > { %1786 = vmatpush.msra.mxu3 %v1724_v10  ;;  %1827 = vmatpush.msrb.mxu1 %v1740_v8 }
 0x2be   : > { %1787 = vmatpush.msra.mxu3 %v1723_v52  ;;  %1828 = vmatpush.msrb.mxu1 %v1739_v11 }
 0x2c0   : > { %1788 = vmatpush.msra.mxu3 %v1722_v16  ;;  %1829 = vmatpush.msrb.mxu1 %v1738_v37 }
 0x2c1   : > { %3427 = vmatmul.msk.f32.gmra.mxu2 %vm1665_vm11, %v1461_v9  ;;  %v1735_v9 = vld [vmem:[%s6405_s28 + $0x90] sm:$0xff] }
 0x2c2   : > { %1598 = vrot.lane.b32.xlu0 %v1443_v32, %s3787_s2  ;;  %1789 = vmatpush.msra.mxu3 %v1721_v22  ;;  %v1734_v32 = vld [vmem:[%s6405_s28 + $0x88] sm:$0xff]  ;;  %s6446_s2 = smov 64  }
 0x2c3   : > { %3632 = vrot.lane.b32.xlu2 %v3631_v28, %s3786_s24  ;;  %1630 = vrot.lane.b32.xlu1 %v1451_v59, %s6380_s5  ;;  %v1717_v28 = vld [vmem:[%s6405_s28] sm:$0xff] }
 0x2c4   : > { %1830 = vmatpush.msrb.mxu1 %v1737_v54  ;;  %1790 = vmatpush.msra.mxu3 %v1720_v31  ;;  %v1733_v59 = vld [vmem:[%s6405_s28 + $0x80] sm:$0xff] }
 0x2c6   : > { %1831 = vmatpush.msrb.mxu1 %v1736_v38  ;;  %1791 = vmatpush.msra.mxu3 %v1719_v17 }
 0x2c8   : > { %1832 = vmatpush.msrb.mxu1 %v1735_v9  ;;  %1792 = vmatpush.msra.mxu3 %v1718_v24 }
 0x2ca   : > { %1833 = vmatpush.msrb.mxu1 %v1734_v32  ;;  %1793 = vmatpush.msra.mxu3 %v1717_v28 }
 0x2cb   : > { %1655 = vrot.lane.b32.xlu2 %v1640_v18, %s3786_s24 }
 0x2cc   : > { %1834 = vmatpush.msrb.mxu1 %v1733_v59 }
 0x2e5   : > { %v3553_v50 = vpop.permute.xlu2 %3552 }
 0x2e6   : > { %v3554_v48 = vunpack.i.l.bf16 %v3553_v50 }
 0x2ed   : > { %v3558_v39 = vpop.permute.xlu2 %3557 }
 0x2ee   : > { %v3559_v10 = vunpack.i.l.bf16 %v3558_v39 }
 0x2f2   : > { %v3543_v35 = vpop.permute.xlu1 %3542 }
 0x2f3   : > { %v3544_v27 = vunpack.i.l.bf16 %v3543_v35  ;;  %v3545_v32 = vunpack.i.h.bf16 %v3543_v35  ;;  %v3555_v35 = vunpack.i.h.bf16 %v3553_v50 }
 0x2f4   : > { %v3533_v40 = vpop.permute.xlu0 %3532 }
 0x2f5   : > { %v3534_v0 = vunpack.i.l.bf16 %v3533_v40  ;;  %v4769_v20 = vpop.permute.xlu2 %3567  ;;  %v3535_v11 = vunpack.i.h.bf16 %v3533_v40 }
 0x2f6   : > { %v3569_v40 = vunpack.i.l.bf16 %v4769_v20 }
 0x2f7   : > { %v1666_v6 = vsel %vm1665_vm11, 0.0, %v3534_v0  ;;  %v1667_v17 = vsel %vm1665_vm11, %v1374_v51, %v3535_v11 }
 0x2fc   : > { %v3538_v18 = vpop.permute.xlu0 %3537  ;;  %v3548_v56 = vpop.permute.xlu1 %3547 }
 0x2fd   : > { %v3539_v47 = vunpack.i.l.bf16 %v3538_v18  ;;  %v3549_v57 = vunpack.i.l.bf16 %v3548_v56  ;;  %v3540_v22 = vunpack.i.h.bf16 %v3538_v18  ;;  %v4778_v31 = vpop.permute.xlu2 %3582  ;;  %v3550_v28 = vunpack.i.h.bf16 %v3548_v56 }
 0x2ff   : > { %v1675_v8 = vsel %vm1674_vm0, %v1666_v6, %v3539_v47  ;;  %v1692_v52 = vsel %vm1665_vm11, %v4377_v46, %v3549_v57  ;;  %v1676_v24 = vsel %vm1674_vm0, %v1667_v17, %v3540_v22  ;;  %v1668_v51 = vsel %vm1665_vm11, %v1375_v45, %v3550_v28 }
 0x300   : > { %v1684_v16 = vsel %vm1683_vm13, %v1675_v8, %v3544_v27  ;;  %v1700_v37 = vsel %vm1674_vm0, %v1692_v52, %v3554_v48  ;;  %v1685_v18 = vsel %vm1683_vm13, %v1676_v24, %v3545_v32  ;;  %v3560_v48 = vunpack.i.h.bf16 %v3558_v39 }
 0x301   : > { %1794 = vmatmul.f32.vlgmr.msra.gmra.mxu3 %v1684_v16  ;;  %v1708_v54 = vsel %vm1683_vm13, %v1700_v37, %v3559_v10  ;;  %v3584_v8 = vunpack.i.l.bf16 %v4778_v31  ;;  %v3570_v22 = vunpack.i.h.bf16 %v4769_v20 }
 0x302   : > { %1835 = vmatmul.f32.vlgmr.msrb.gmra.mxu1 %v1708_v54 }
 0x304   : > { %v3563_v38 = vpop.permute.xlu0 %3562 }
 0x305   : > { %v3564_v46 = vunpack.i.l.bf16 %v3563_v38  ;;  %v3573_v9 = vpop.permute.xlu1 %3572  ;;  %v3565_v27 = vunpack.i.h.bf16 %v3563_v38  ;;  %v3598_v6 = vpop.permute.xlu2 %3597 }
 0x306   : > { %v3574_v59 = vunpack.i.l.bf16 %v3573_v9  ;;  %v3575_v45 = vunpack.i.h.bf16 %v3573_v9  ;;  %v3599_v17 = vunpack.i.l.bf16 %v3598_v6 }
 0x307   : > { %v1693_v0 = vsel %vm1665_vm11, %v4428_v26, %v3564_v46  ;;  %v1677_v26 = vsel %vm1674_vm0, %v1668_v51, %v3555_v35  ;;  %v1669_v39 = vsel %vm1665_vm11, %v1376_v60, %v3565_v27 }
 0x308   : > { %v1701_v2 = vsel %vm1674_vm0, %v1693_v0, %v3574_v59  ;;  %v1686_v19 = vsel %vm1683_vm13, %v1677_v26, %v3560_v48  ;;  %v3600_v26 = vunpack.i.h.bf16 %v3598_v6 }
 0x309   : > { %1797 = vmatmul.f32.gmra.mxu3 %v1685_v18  ;;  %v1709_v7 = vsel %vm1683_vm13, %v1701_v2, %v3569_v40  ;;  %v3585_v40 = vunpack.i.h.bf16 %v4778_v31 }
 0x30a   : > { %1838 = vmatmul.f32.gmra.mxu1 %v1709_v7 }
 0x30c   : > { %v3578_v56 = vpop.permute.xlu0 %3577  ;;  %v1877_v5 = vpop.f32.mrf.mxu2 }
 0x30d   : > { %v3579_v47 = vunpack.i.l.bf16 %v3578_v56  ;;  %v3588_v57 = vpop.permute.xlu1 %3587  ;;  %v3580_v54 = vunpack.i.h.bf16 %v3578_v56  ;;  %v3613_v9 = vpop.permute.xlu2 %3612 }
 0x30e   : > { %v3589_v10 = vunpack.i.l.bf16 %v3588_v57  ;;  %v3590_v24 = vunpack.i.h.bf16 %v3588_v57  ;;  %v3614_v2 = vunpack.i.l.bf16 %v3613_v9 }
 0x30f   : > { %v1694_v52 = vsel %vm1665_vm11, %v4468_v34, %v3579_v47  ;;  %v1678_v34 = vsel %vm1674_vm0, %v1669_v39, %v3575_v45  ;;  %v1670_v20 = vsel %vm1665_vm11, %v1377_v43, %v3580_v54 }
 0x310   : > { %v1702_v25 = vsel %vm1674_vm0, %v1694_v52, %v3589_v10  ;;  %v1687_v12 = vsel %vm1683_vm13, %v1678_v34, %v3570_v22 }
 0x311   : > { %1800 = vmatmul.f32.gmra.mxu3 %v1686_v19  ;;  %v1710_v50 = vsel %vm1683_vm13, %v1702_v25, %v3584_v8 }
 0x312   : > { %1841 = vmatmul.f32.gmra.mxu1 %v1710_v50  ;;  %v3615_v50 = vunpack.i.h.bf16 %v3613_v9 }
 0x314   : > { %v3593_v11 = vpop.permute.xlu0 %3592 }
 0x315   : > { %v3594_v16 = vunpack.i.l.bf16 %v3593_v11  ;;  %v3603_v37 = vpop.permute.xlu1 %3602  ;;  %v3595_v0 = vunpack.i.h.bf16 %v3593_v11  ;;  %v1652_v35 = vpop.permute.xlu2 %1651 }
 0x316   : > { %v3604_v38 = vunpack.i.l.bf16 %v3603_v37  ;;  %v3605_v14 = vunpack.i.h.bf16 %v3603_v37 }
 0x317   : > { %v1695_v46 = vsel %vm1665_vm11, %v4512_v4, %v3594_v16  ;;  %v1679_v4 = vsel %vm1674_vm0, %v1670_v20, %v3590_v24  ;;  %v1671_v31 = vsel %vm1665_vm11, %v1378_v63, %v3595_v0 }
 0x318   : > { %v1703_v21 = vsel %vm1674_vm0, %v1695_v46, %v3604_v38  ;;  %v1688_v51 = vsel %vm1683_vm13, %v1679_v4, %v3585_v40 }
 0x319   : > { %1803 = vmatmul.f32.gmra.mxu3 %v1687_v12  ;;  %v1711_v60 = vsel %vm1683_vm13, %v1703_v21, %v3599_v17  ;;  %v1880_v21 = vpop.f32.mrf.mxu2 }
 0x31a   : > { %1844 = vmatmul.f32.gmra.mxu1 %v1711_v60 }
 0x31c   : > { %v3608_v32 = vpop.permute.xlu0 %3607 }
 0x31d   : > { %v3609_v28 = vunpack.i.l.bf16 %v3608_v32  ;;  %v3618_v59 = vpop.permute.xlu1 %3617  ;;  %v3610_v48 = vunpack.i.h.bf16 %v3608_v32  ;;  %v3633_v6 = vpop.permute.xlu2 %3632 }
 0x31e   : > { %v3619_v18 = vunpack.i.l.bf16 %v3618_v59  ;;  %v3620_v58 = vunpack.i.h.bf16 %v3618_v59  ;;  %v3635_v16 = vunpack.i.h.bf16 %v3633_v6  ;;  %v3634_v38 = vunpack.i.l.bf16 %v3633_v6 }
 0x31f   : > { %v1696_v7 = vsel %vm1665_vm11, %v4556_v3, %v3609_v28  ;;  %v1680_v3 = vsel %vm1674_vm0, %v1671_v31, %v3605_v14  ;;  %v1672_v63 = vsel %vm1665_vm11, %v1379_v29, %v3610_v48 }
 0x320   : > { %v1704_v13 = vsel %vm1674_vm0, %v1696_v7, %v3619_v18  ;;  %v1689_v8 = vsel %vm1683_vm13, %v1680_v3, %v3600_v26  ;;  %v1681_v45 = vsel %vm1674_vm0, %v1672_v63, %v3620_v58 }
 0x321   : > { %1806 = vmatmul.f32.gmra.mxu3 %v1688_v51  ;;  %v1712_v43 = vsel %vm1683_vm13, %v1704_v13, %v3614_v2  ;;  %v1690_v37 = vsel %vm1683_vm13, %v1681_v45, %v3615_v50  ;;  %v1883_v4 = vpop.f32.mrf.mxu2 }
 0x322   : > { %1847 = vmatmul.f32.gmra.mxu1 %v1712_v43 }
 0x324   : > { %v3623_v56 = vpop.permute.xlu0 %3622 }
 0x325   : > { %v3624_v47 = vunpack.i.l.bf16 %v3623_v56  ;;  %v3628_v57 = vpop.permute.xlu1 %3627  ;;  %v3625_v39 = vunpack.i.h.bf16 %v3623_v56  ;;  %v1656_v46 = vpop.permute.xlu2 %1655 }
 0x326   : > { %v3629_v27 = vunpack.i.l.bf16 %v3628_v57  ;;  %v3630_v42 = vunpack.i.h.bf16 %v3628_v57 }
 0x327   : > { %v1697_v10 = vsel %vm1665_vm11, %v4596_v61, %v3624_v47  ;;  %v1673_v29 = vsel %vm1665_vm11, %v1380_v15, %v3625_v39  ;;  %v4864_v15 = vld [vmem:[%s6357_s6] sm:$0x7] }
 0x328   : > { %v1705_v52 = vsel %vm1674_vm0, %v1697_v10, %v3629_v27  ;;  %v1682_v54 = vsel %vm1674_vm0, %v1673_v29, %v3630_v42  ;;  %v1753_v12 = vperm.slane %v4864_v15, 0 }
 0x329   : > { %1809 = vmatmul.f32.gmra.mxu3 %v1689_v8  ;;  %v1713_v33 = vsel %vm1683_vm13, %v1705_v52, %v1652_v35  ;;  %v1691_v9 = vsel %vm1683_vm13, %v1682_v54, %v3634_v38  ;;  %v1886_v2 = vpop.f32.mrf.mxu2 }
 0x32a   : > { %1850 = vmatmul.f32.gmra.mxu1 %v1713_v33 }
 0x32c   : > { %v1597_v19 = vpop.permute.xlu0 %1596 }
 0x32d   : > { %v1698_v61 = vsel %vm1665_vm11, %v4634_v1, %v1597_v19  ;;  %v1629_v25 = vpop.permute.xlu1 %1628 }
 0x32e   : > { %v1706_v11 = vsel %vm1674_vm0, %v1698_v61, %v1629_v25 }
 0x32f   : > { %v1714_v36 = vsel %vm1683_vm13, %v1706_v11, %v3635_v16 }
 0x331   : > { %1812 = vmatmul.f32.gmra.mxu3 %v1690_v37  ;;  %v1889_v13 = vpop.f32.mrf.mxu2 }
 0x332   : > { %1853 = vmatmul.f32.gmra.mxu1 %v1714_v36 }
 0x334   : > { %v1599_v1 = vpop.permute.xlu0 %1598 }
 0x335   : > { %v1699_v34 = vsel %vm1665_vm11, %v4667_v44, %v1599_v1  ;;  %v1631_v22 = vpop.permute.xlu1 %1630 }
 0x336   : > { %v1707_v17 = vsel %vm1674_vm0, %v1699_v34, %v1631_v22 }
 0x337   : > { %v1715_v23 = vsel %vm1683_vm13, %v1707_v17, %v1656_v46 }
 0x339   : > { %1815 = vmatmul.f32.gmra.mxu3 %v1691_v9  ;;  %v1892_v35 = vpop.f32.mrf.mxu2 }
 0x33a   : > { %1856 = vmatmul.f32.gmra.mxu1 %v1715_v23 }
 0x341   : > { %v1895_v3 = vpop.f32.mrf.mxu2 }
 0x349   : > { %v1898_v39 = vpop.f32.mrf.mxu2 }
 0x37f   : > { %v1836_v44 = vpop.f32.mrf.mxu1 }
 0x384   : > { %v1795_v24 = vpop.f32.mrf.mxu3 }
 0x385   : > { %v1796_v60 = vadd.f32 %v1795_v24, %v1753_v12 }
 0x387   : > { %v1837_v20 = vadd.f32 %v1836_v44, %v1796_v60  ;;  %v1839_v32 = vpop.f32.mrf.mxu1 }
 0x389   : > { %v4867_v28 = vadd.f32 %v1877_v5, %v1837_v20 }
 0x38c   : > { %v1798_v59 = vpop.f32.mrf.mxu3 }
 0x38d   : > { %v1799_v19 = vadd.f32 %v1798_v59, %v1753_v12 }
 0x38f   : > { %v1842_v40 = vpop.f32.mrf.mxu1  ;;  %v1840_v36 = vadd.f32 %v1839_v32, %v1799_v19  ;;  %v2113_v19 = vld [vmem:[%s6359_s8 + $0x78] sm:$0xff] }
 0x391   : > { %v1881_v46 = vadd.f32 %v1880_v21, %v1840_v36  ;;  %v2141_v36 = vld [vmem:[%s6359_s8 + $0x158] sm:$0xff] }
 0x394   : > { %v1801_v0 = vpop.f32.mrf.mxu3 }
 0x395   : > { %v1802_v58 = vadd.f32 %v1801_v0, %v1753_v12 }
 0x397   : > { %v1845_v18 = vpop.f32.mrf.mxu1  ;;  %v1843_v11 = vadd.f32 %v1842_v40, %v1802_v58  ;;  %v1957_v58 = vld [vmem:[%s6358_s7] sm:$0xff] }
 0x399   : > { %v1884_v22 = vadd.f32 %v1883_v4, %v1843_v11  ;;  %v1902_v4 = vmax.f32 %v1881_v46, 0.0  ;;  %v2142_v11 = vld [vmem:[%s6359_s8 + $0x160] sm:$0xff]  ;;  %v2139_v46 = vld [vmem:[%s6359_s8 + $0x148] sm:$0xff] }
 0x39b   : > { %v1903_v60 = vmax.f32 %v1884_v22, 0.0  ;;  %v2140_v22 = vld [vmem:[%s6359_s8 + $0x150] sm:$0xff] }
 0x39c   : > { %v1804_v7 = vpop.f32.mrf.mxu3 }
 0x39d   : > { %v1805_v10 = vadd.f32 %v1804_v7, %v1753_v12  ;;  %v1920_v7 = vrot.slane %v1903_v60, 1 }
 0x39f   : > { %v1848_v51 = vpop.f32.mrf.mxu1  ;;  %v1846_v25 = vadd.f32 %v1845_v18, %v1805_v10 }
 0x3a1   : > { %v1887_v29 = vadd.f32 %v1886_v2, %v1846_v25  ;;  %v1901_v2 = vmax.f32 %v4867_v28, 0.0  ;;  %v1988_v25 = vperm.slane %v4864_v15, 1 }
 0x3a3   : > { %v1904_v9 = vmax.f32 %v1887_v29, 0.0  ;;  %v1994_v29 = vand.u32 3, %v4313_v49 }
 0x3a4   : > { %v1807_v14 = vpop.f32.mrf.mxu3 }
 0x3a5   : > { %v1808_v48 = vadd.f32 %v1807_v14, %v1753_v12  ;;  %v1922_v40 = vrot.slane %v1904_v9, 1  ;;  %vm4939_vm5 = vcmp.eq.s32.totalorder %v1994_v29, 0  ;;  %vm4972_vm11 = vcmp.eq.s32.totalorder %v1994_v29, 3 }
 0x3a7   : > { %v1851_v43 = vpop.f32.mrf.mxu1  ;;  %v1849_v33 = vadd.f32 %v1848_v51, %v1808_v48 }
 0x3a9   : > { %v1890_v16 = vadd.f32 %v1889_v13, %v1849_v33  ;;  %v1958_v33 = vld [vmem:[%s6358_s7 + $0x8] sm:$0xff] }
 0x3ab   : > { %v1905_v54 = vmax.f32 %v1890_v16, 0.0  ;;  %v2110_v16 = vld [vmem:[%s6359_s8 + $0x60] sm:$0xff] }
 0x3ac   : > { %v1810_v31 = vpop.f32.mrf.mxu3 }
 0x3ad   : > { %v1811_v26 = vadd.f32 %v1810_v31, %v1753_v12  ;;  %v1924_v20 = vrot.slane %v1905_v54, 1 }
 0x3af   : > { %v1854_v56 = vpop.f32.mrf.mxu1  ;;  %v1852_v8 = vadd.f32 %v1851_v43, %v1811_v26  ;;  %v1925_v51 = vsel %vm1034_vm2, %v1922_v40, %v1924_v20  ;;  %v1918_v43 = vrot.slane %v1902_v4, 1 }
 0x3b1   : > { %v1893_v45 = vadd.f32 %v1892_v35, %v1852_v8  ;;  %v1923_v35 = vsel %vm1034_vm2, %v1920_v7, %v1922_v40 }
 0x3b2   : > { %v1943_v26 = vmax.f32 %v1903_v60, %v1923_v35  ;;  %v1995_v60 = vand.u32 3, %v4322_v55  ;;  %v2136_v55 = vld [vmem:[%s6359_s8 + $0x130] sm:$0xff]  ;;  %v2631_v35 = vld [vmem:[%s6362_s11 + $0x7e0] sm:$0xff] }
 0x3b3   : > { %v1906_v1 = vmax.f32 %v1893_v45, 0.0  ;;  %v2143_v45 = vld [vmem:[%s6359_s8 + $0x168] sm:$0xff] }
 0x3b4   : > { %v1813_v47 = vpop.f32.mrf.mxu3  ;;  %vm4968_vm9 = vcmp.eq.s32.totalorder %v1995_v60, 0  ;;  %vm4985_vm1 = vcmp.eq.s32.totalorder %v1995_v60, 3 }
 0x3b5   : > { %v1814_v57 = vadd.f32 %v1813_v47, %v1753_v12  ;;  %v1926_v23 = vrot.slane %v1906_v1, 1  ;;  %v1917_v47 = vrot.slane %v1901_v2, 1 }
 0x3b7   : > { %v1855_v27 = vadd.f32 %v1854_v56, %v1814_v57  ;;  %v1857_v61 = vpop.f32.mrf.mxu1  ;;  %v1927_v0 = vsel %vm1034_vm2, %v1924_v20, %v1926_v23  ;;  %v1944_v56 = vmax.f32 %v1904_v9, %v1925_v51  ;;  %v1921_v57 = vsel %vm1034_vm2, %v1918_v43, %v1920_v7  ;;  %v2107_v9 = vld [vmem:[%s6359_s8 + $0x48] sm:$0xff] }
 0x3b8   : > { %v1945_v14 = vmax.f32 %v1905_v54, %v1927_v0  ;;  %v1919_v28 = vsel %vm1034_vm2, %v1917_v47, %v1918_v43  ;;  %v2108_v54 = vld [vmem:[%s6359_s8 + $0x50] sm:$0xff]  ;;  %v2135_v7 = vld [vmem:[%s6359_s8 + $0x128] sm:$0xff]  ;;  %v2134_v47 = vld [vmem:[%s6359_s8 + $0x120] sm:$0xff] }
 0x3b9   : > { %v1896_v63 = vadd.f32 %v1895_v3, %v1855_v27  ;;  %v1951_v48 = vmax.f32 %v1943_v26, %v1944_v56  ;;  %v1942_v27 = vmax.f32 %v1902_v4, %v1921_v57  ;;  %v1941_v8 = vmax.f32 %v1901_v2, %v1919_v28  ;;  %v2104_v0 = vld [vmem:[%s6359_s8 + $0x30] sm:$0xff]  ;;  %v2103_v51 = vld [vmem:[%s6359_s8 + $0x28] sm:$0xff] }
 0x3ba   : > { %v1952_v3 = vmax.f32 %v1944_v56, %v1945_v14 }
 0x3bb   : > { %v1907_v37 = vmax.f32 %v1896_v63, 0.0  ;;  %v1950_v10 = vmax.f32 %v1942_v27, %v1943_v26  ;;  %v2145_v63 = vld [vmem:[%s6359_s8 + $0x178] sm:$0xff] }
 0x3bc   : > { %v1816_v52 = vpop.f32.mrf.mxu3  ;;  %2223 = vmatpush.msra.mxu2 %v2145_v63 }
 0x3bd   : > { %v1817_v6 = vadd.f32 %v1816_v52, %v1753_v12  ;;  %v1928_v38 = vrot.slane %v1907_v37, 1  ;;  %v1949_v52 = vmax.f32 %v1941_v8, %v1942_v27 }
 0x3bf   : > { %v1858_v50 = vadd.f32 %v1857_v61, %v1817_v6  ;;  %v1929_v32 = vsel %vm1034_vm2, %v1926_v23, %v1928_v38  ;;  %v2144_v6 = vld [vmem:[%s6359_s8 + $0x170] sm:$0xff] }
 0x3c0   : > { %v1946_v18 = vmax.f32 %v1906_v1, %v1929_v32  ;;  %v2112_v61 = vld [vmem:[%s6359_s8 + $0x70] sm:$0xff]  ;;  %2224 = vmatpush.msra.mxu2 %v2144_v6  ;;  %v2129_v1 = vld [vmem:[%s6359_s8 + $0xf8] sm:$0xff] }
 0x3c1   : > { %v1899_v42 = vadd.f32 %v1898_v39, %v1858_v50  ;;  %v2111_v50 = vld [vmem:[%s6359_s8 + $0x68] sm:$0xff]  ;;  %v1991_v39 = vperm.slane %v4864_v15, 2  ;;  %v2109_v15 = vld [vmem:[%s6359_s8 + $0x58] sm:$0xff]  ;;  %2200 = vmatpush.msra.mxu1 %v2129_v1  ;;  %v2633_v23 = vld [vmem:[%s6362_s11 + $0x7f0] sm:$0xff] }
 0x3c2   : > { %v1953_v31 = vmax.f32 %v1945_v14, %v1946_v18  ;;  %2225 = vmatpush.msra.mxu2 %v2143_v45  ;;  %v2137_v32 = vld [vmem:[%s6359_s8 + $0x138] sm:$0xff]  ;;  %2814 = vmatpush.msrb.mxu0 %v2633_v23  ;;  %v2387_v23 = vld [vmem:[%s6362_s11 + $0x40] sm:$0xff] }
 0x3c3   : > { %v1908_v34 = vmax.f32 %v1899_v42, 0.0 }
 0x3c4   : > { %2226 = vmatpush.msra.mxu2 %v2142_v11  ;;  %2815 = vmatpush.msrb.mxu0 %v2631_v35  ;;  %v2385_v35 = vld [vmem:[%s6362_s11 + $0x30] sm:$0xff] }
 0x3c5   : > { %v1930_v17 = vrot.slane %v1908_v34, 1 }
 0x3c6   : > { %2227 = vmatpush.msra.mxu2 %v2141_v36  ;;  %v2132_v36 = vld [vmem:[%s6359_s8 + $0x110] sm:$0xff] }
 0x3c7   : > { %v1932_v5 = vsel %vm1034_vm2, %v1930_v17, %v4216_v30  ;;  %v1931_v44 = vsel %vm1034_vm2, %v1928_v38, %v1930_v17  ;;  %v2128_v38 = vld [vmem:[%s6359_s8 + $0xf0] sm:$0xff] }
 0x3c8   : > { %v1948_v12 = vmax.f32 %v1908_v34, %v1932_v5  ;;  %v1947_v24 = vmax.f32 %v1907_v37, %v1931_v44  ;;  %2201 = vmatpush.msra.mxu1 %v2128_v38  ;;  %2228 = vmatpush.msra.mxu2 %v2140_v22  ;;  %v2138_v44 = vld [vmem:[%s6359_s8 + $0x140] sm:$0xff] }
 0x3ca   : > { %v1956_v59 = vmax.f32 %v1948_v12, %v4221_v62  ;;  %v1955_v21 = vmax.f32 %v1947_v24, %v1948_v12  ;;  %v1954_v13 = vmax.f32 %v1946_v18, %v1947_v24  ;;  %v2106_v12 = vld [vmem:[%s6359_s8 + $0x40] sm:$0xff]  ;;  %2229 = vmatpush.msra.mxu2 %v2139_v46 }
 0x3cc   : > { %1973 = vmatpush.msrb.mxu3 %v1956_v59  ;;  %v2105_v59 = vld [vmem:[%s6359_s8 + $0x38] sm:$0xff]  ;;  %2230 = vmatpush.msra.mxu2 %v2138_v44 }
 0x3ce   : > { %1974 = vmatpush.msrb.mxu3 %v1955_v21  ;;  %2231 = vmatpush.msra.mxu2 %v2137_v32  ;;  %v5258_v21 = vld [vmem:[%s6360_s9] sm:$0x7] }
 0x3d0   : > { %1975 = vmatpush.msrb.mxu3 %v1954_v13  ;;  %2232 = vmatpush.msra.mxu2 %v2136_v55  ;;  %v2131_v55 = vld [vmem:[%s6359_s8 + $0x108] sm:$0xff] }
 0x3d2   : > { %1976 = vmatpush.msrb.mxu3 %v1953_v31  ;;  %2233 = vmatpush.msra.mxu2 %v2135_v7  ;;  %v2130_v7 = vld [vmem:[%s6359_s8 + $0x100] sm:$0xff] }
 0x3d4   : > { %1977 = vmatpush.msrb.mxu3 %v1952_v3  ;;  %2234 = vmatpush.msra.mxu2 %v2134_v47  ;;  %v2161_v47 = vld [vmem:[%s6359_s8 + $0x1f8] sm:$0xff] }
 0x3d6   : > { %1978 = vmatpush.msrb.mxu3 %v1951_v48 }
 0x3d8   : > { %1979 = vmatpush.msrb.mxu3 %v1950_v10  ;;  %v2102_v10 = vld [vmem:[%s6359_s8 + $0x20] sm:$0xff] }
 0x3da   : > { %1980 = vmatpush.msrb.mxu3 %v1949_v52 }
 0x3db   : > { %3428 = vmatmul.msk.f32.vlgmr.msrb.gmra.mxu3 %vm1674_vm0, %v1957_v58  ;;  %v2133_v58 = vld [vmem:[%s6359_s8 + $0x118] sm:$0xff] }
 0x3dc   : > { %2177 = vmatpush.msra.mxu3 %v2113_v19  ;;  %2235 = vmatpush.msra.mxu2 %v2133_v58  ;;  %v2156_v58 = vld [vmem:[%s6359_s8 + $0x1d0] sm:$0xff] }
 0x3de   : > { %2178 = vmatpush.msra.mxu3 %v2112_v61  ;;  %2236 = vmatpush.msra.mxu2 %v2132_v36  ;;  %v2149_v36 = vld [vmem:[%s6359_s8 + $0x198] sm:$0xff] }
 0x3e0   : > { %2179 = vmatpush.msra.mxu3 %v2111_v50  ;;  %2237 = vmatpush.msra.mxu2 %v2131_v55  ;;  %v2165_v55 = vld [vmem:[%s6359_s8 + $0x218] sm:$0xff] }
 0x3e2   : > { %2180 = vmatpush.msra.mxu3 %v2110_v16  ;;  %2238 = vmatpush.msra.mxu2 %v2130_v7  ;;  %v2162_v7 = vld [vmem:[%s6359_s8 + $0x200] sm:$0xff] }
 0x3e3   : > { %3429 = vmatmul.msk.f32.gmra.mxu3 %vm1674_vm0, %v1958_v33 }
 0x3e4   : > { %2181 = vmatpush.msra.mxu3 %v2109_v15 }
 0x3e6   : > { %2182 = vmatpush.msra.mxu3 %v2108_v54 }
 0x3e8   : > { %2183 = vmatpush.msra.mxu3 %v2107_v9 }
 0x3ea   : > { %2184 = vmatpush.msra.mxu3 %v2106_v12 }
 0x3ec   : > { %2185 = vmatpush.msra.mxu3 %v2105_v59 }
 0x3ee   : > { %2186 = vmatpush.msra.mxu3 %v2104_v0  ;;  %v2100_v0 = vld [vmem:[%s6359_s8 + $0x10] sm:$0xff] }
 0x3f0   : > { %2187 = vmatpush.msra.mxu3 %v2103_v51  ;;  %v2099_v51 = vld [vmem:[%s6359_s8 + $0x8] sm:$0xff] }
 0x3f2   : > { %2188 = vmatpush.msra.mxu3 %v2102_v10  ;;  %v2120_v10 = vld [vmem:[%s6359_s8 + $0xb0] sm:$0xff] }
 0x45e   : > { %v1982_v37 = vpop.f32.mrf.mxu3 }
 0x45f   : > { %v1989_v42 = vmul.f32 %v1988_v25, %v1982_v37 }
 0x461   : > { %v1992_v34 = vadd.f32 %v1991_v39, %v1989_v42 }
 0x463   : > { %v1999_v17 = vrot.slane %v1992_v34, 3 }
 0x465   : > { %v4944_v5 = vsel %vm1998_vm3, 0.0, %v1999_v17 }
 0x466   : > { %v1985_v24 = vpop.f32.mrf.mxu3  ;;  %v2009_v4 = vsel %vm4939_vm5, 0.0, %v4944_v5  ;;  %v2050_v13 = vrot.slane %v4944_v5, 1  ;;  %v2035_v14 = vrot.slane %v4944_v5, 6  ;;  %v2025_v43 = vrot.slane %v4944_v5, 4 }
 0x467   : > { %v1990_v20 = vmul.f32 %v1988_v25, %v1985_v24  ;;  %v2070_v57 = vrot.slane %v4944_v5, 5  ;;  %v2015_v3 = vrot.slane %v4944_v5, 2 }
 0x469   : > { %v1993_v40 = vadd.f32 %v1991_v39, %v1990_v20 }
 0x46b   : > { %v2000_v2 = vrot.slane %v1993_v40, 3  ;;  %v2127_v40 = vld [vmem:[%s6359_s8 + $0xe8] sm:$0xff] }
 0x46c   : > { %2202 = vmatpush.msra.mxu1 %v2127_v40  ;;  %v2147_v40 = vld [vmem:[%s6359_s8 + $0x188] sm:$0xff] }
 0x46d   : > { %v4990_v31 = vsel %vm1998_vm3, %v1999_v17, %v2000_v2  ;;  %v4993_v56 = vsel %vm1998_vm3, %v2000_v2, 0.0  ;;  %v2126_v2 = vld [vmem:[%s6359_s8 + $0xe0] sm:$0xff] }
 0x46e   : > { %v2051_v26 = vrot.slane %v4990_v31, 1  ;;  %v2026_v28 = vrot.slane %v4990_v31, 4  ;;  %v2028_v48 = vrot.slane %v4993_v56, 4  ;;  %v2036_v27 = vrot.slane %v4990_v31, 6  ;;  %2203 = vmatpush.msra.mxu1 %v2126_v2  ;;  %v2163_v2 = vld [vmem:[%s6359_s8 + $0x208] sm:$0xff] }
 0x46f   : > { %v2053_v8 = vrot.slane %v4993_v56, 1  ;;  %v2038_v52 = vrot.slane %v4993_v56, 6  ;;  %v2071_v33 = vrot.slane %v4990_v31, 5  ;;  %v2016_v63 = vrot.slane %v4990_v31, 2 }
 0x470   : > { %v2052_v6 = vsel %vm1034_vm2, %v2050_v13, %v2051_v26  ;;  %v2029_v19 = vsel %vm2024_vm12, %v2026_v28, %v2028_v48  ;;  %v2037_v61 = vsel %vm2034_vm14, %v2035_v14, %v2036_v27  ;;  %v2027_v25 = vsel %vm2024_vm12, %v2025_v43, %v2026_v28  ;;  %v2125_v13 = vld [vmem:[%s6359_s8 + $0xd8] sm:$0xff]  ;;  %v2098_v14 = vld [vmem:[%s6359_s8] sm:$0xff]  ;;  %v2124_v43 = vld [vmem:[%s6359_s8 + $0xd0] sm:$0xff] }
 0x471   : > { %2055 = vrot.lane.b32.xlu0 %v2052_v6, %s6446_s2  ;;  %v2033_v45 = vsel %vm4968_vm9, 0.0, %v2029_v19  ;;  %v2042_v50 = vsel %vm4972_vm11, 0.0, %v2037_v61  ;;  %v2032_v39 = vsel %vm4939_vm5, 0.0, %v2027_v25  ;;  %v2054_v11 = vsel %vm1034_vm2, %v2051_v26, %v2053_v8  ;;  %2204 = vmatpush.msra.mxu1 %v2125_v13  ;;  %v2122_v26 = vld [vmem:[%s6359_s8 + $0xc0] sm:$0xff]  ;;  %v2159_v28 = vld [vmem:[%s6359_s8 + $0x1e8] sm:$0xff]  ;;  %v2121_v48 = vld [vmem:[%s6359_s8 + $0xb8] sm:$0xff] }
 0x472   : > { %v3641_v16 = vpack.i.bf16 %v2033_v45, %v2042_v50  ;;  %v3636_v37 = vpack.i.bf16 %v2032_v39, %v2054_v11  ;;  %v2039_v42 = vsel %vm2034_vm14, %v2036_v27, %v2038_v52  ;;  %v2085_v15 = vsel %vm1034_vm2, %v2053_v8, %v4216_v30  ;;  %v2158_v27 = vld [vmem:[%s6359_s8 + $0x1e0] sm:$0xff]  ;;  %v2157_v8 = vld [vmem:[%s6359_s8 + $0x1d8] sm:$0xff]  ;;  %v2119_v52 = vld [vmem:[%s6359_s8 + $0xa8] sm:$0xff] }
 0x473   : > { %v5033_v29 = vsel %vm2069_vm15, %v2070_v57, %v2071_v33  ;;  %v5036_v1 = vsel %vm1390_vm6, %v2015_v3, %v2016_v63  ;;  %v2010_v34 = vsel %vm4968_vm9, 0.0, %v4990_v31  ;;  %v2043_v22 = vsel %vm4985_vm1, 0.0, %v2039_v42  ;;  %v2123_v57 = vld [vmem:[%s6359_s8 + $0xc8] sm:$0xff]  ;;  %2205 = vmatpush.msra.mxu1 %v2124_v43  ;;  %v2160_v3 = vld [vmem:[%s6359_s8 + $0x1f0] sm:$0xff]  ;;  %v2117_v6 = vld [vmem:[%s6359_s8 + $0x98] sm:$0xff] }
 0x474   : > { %3642 = vrot.lane.b32.xlu2 %v3641_v16, %s6446_s2  ;;  %3637 = vrot.lane.b32.xlu1 %v3636_v37, %s6446_s2  ;;  %v2022_v54 = vsel %vm4972_vm11, 0.0, %v5036_v1  ;;  %v2073_v38 = vrot.slane %v4993_v56, 5  ;;  %v2018_v17 = vrot.slane %v4993_v56, 2  ;;  %v2044_v46 = vsel %vm4939_vm5, 0.0, %v4990_v31  ;;  %v2154_v19 = vld [vmem:[%s6359_s8 + $0x1c0] sm:$0xff]  ;;  %v2116_v61 = vld [vmem:[%s6359_s8 + $0x90] sm:$0xff] }
 0x475   : > { %v2045_v9 = vsel %vm4968_vm9, 0.0, %v4993_v56  ;;  %v3646_v60 = vpack.i.bf16 %v2085_v15, %v2043_v22  ;;  %2206 = vmatpush.msra.mxu1 %v2123_v57  ;;  %v2153_v25 = vld [vmem:[%s6359_s8 + $0x1b8] sm:$0xff]  ;;  %v2115_v45 = vld [vmem:[%s6359_s8 + $0x88] sm:$0xff]  ;;  %v2152_v50 = vld [vmem:[%s6359_s8 + $0x1b0] sm:$0xff]  ;;  %v2170_v56 = vperm.slane %v5258_v21, 0 }
 0x476   : > { %v5057_v44 = vsel %vm2069_vm15, %v2071_v33, %v2073_v38  ;;  %v5060_v12 = vsel %vm1390_vm6, %v2016_v63, %v2018_v17  ;;  %v5064_v24 = vsel %vm1390_vm6, %v2018_v17, %v4369_v41  ;;  %v2101_v41 = vld [vmem:[%s6359_s8 + $0x18] sm:$0xff]  ;;  %v2118_v33 = vld [vmem:[%s6359_s8 + $0xa0] sm:$0xff]  ;;  %v2155_v63 = vld [vmem:[%s6359_s8 + $0x1c8] sm:$0xff]  ;;  %vm2319_vm6 = vcmask 130048  }
 0x477   : > { %v2023_v20 = vsel %vm4985_vm1, 0.0, %v5060_v12  ;;  %v2048_v32 = vsel %vm4972_vm11, 0.0, %v5060_v12  ;;  %v2049_v59 = vsel %vm4985_vm1, 0.0, %v5064_v24  ;;  %2189 = vmatpush.msra.mxu3 %v2101_v41  ;;  %2207 = vmatpush.msra.mxu1 %v2122_v26  ;;  %v2114_v39 = vld [vmem:[%s6359_s8 + $0x80] sm:$0xff]  ;;  %v2151_v11 = vld [vmem:[%s6359_s8 + $0x1a8] sm:$0xff]  ;;  %v2169_v16 = vld [vmem:[%s6359_s8 + $0x238] sm:$0xff] }
 0x478   : > { %v2150_v37 = vld [vmem:[%s6359_s8 + $0x1a0] sm:$0xff]  ;;  %v2168_v42 = vld [vmem:[%s6359_s8 + $0x230] sm:$0xff]  ;;  %v2167_v38 = vld [vmem:[%s6359_s8 + $0x228] sm:$0xff] }
 0x479   : > { %3647 = vrot.lane.b32.xlu0 %v3646_v60, %s6446_s2  ;;  %2190 = vmatpush.msra.mxu3 %v2100_v0  ;;  %v2148_v17 = vld [vmem:[%s6359_s8 + $0x190] sm:$0xff]  ;;  %v2166_v60 = vld [vmem:[%s6359_s8 + $0x220] sm:$0xff] }
 0x47a   : > { %2208 = vmatpush.msra.mxu1 %v2121_v48  ;;  %v2146_v0 = vld [vmem:[%s6359_s8 + $0x180] sm:$0xff]  ;;  %v2629_v24 = vld [vmem:[%s6362_s11 + $0x7d0] sm:$0xff] }
 0x47b   : > { %2191 = vmatpush.msra.mxu3 %v2099_v51  ;;  %2816 = vmatpush.msrb.mxu0 %v2629_v24 }
 0x47c   : > { %2209 = vmatpush.msra.mxu1 %v2120_v10  ;;  %v2407_v10 = vld [vmem:[%s6362_s11 + $0xe0] sm:$0xff] }
 0x47d   : > { %2192 = vmatpush.msra.mxu3 %v2098_v14 }
 0x47e   : > { %2210 = vmatpush.msra.mxu1 %v2119_v52 }
 0x47f   : > { %2246 = vmatpush.msrb.mxu3 %v2161_v47 }
 0x480   : > { %2211 = vmatpush.msra.mxu1 %v2118_v33  ;;  %v2439_v33 = vld [vmem:[%s6362_s11 + $0x1e0] sm:$0xff] }
 0x481   : > { %2247 = vmatpush.msrb.mxu3 %v2160_v3 }
 0x482   : > { %2212 = vmatpush.msra.mxu1 %v2117_v6 }
 0x483   : > { %2248 = vmatpush.msrb.mxu3 %v2159_v28 }
 0x484   : > { %2213 = vmatpush.msra.mxu1 %v2116_v61  ;;  %v2437_v61 = vld [vmem:[%s6362_s11 + $0x1d0] sm:$0xff] }
 0x485   : > { %2249 = vmatpush.msrb.mxu3 %v2158_v27  ;;  %v2625_v27 = vld [vmem:[%s6362_s11 + $0x7b0] sm:$0xff] }
 0x486   : > { %2214 = vmatpush.msra.mxu1 %v2115_v45  ;;  %v2403_v45 = vld [vmem:[%s6362_s11 + $0xc0] sm:$0xff] }
 0x487   : > { %2250 = vmatpush.msrb.mxu3 %v2157_v8  ;;  %v2441_v8 = vld [vmem:[%s6362_s11 + $0x1f0] sm:$0xff] }
 0x488   : > { %2215 = vmatpush.msra.mxu1 %v2114_v39  ;;  %v2435_v39 = vld [vmem:[%s6362_s11 + $0x1c0] sm:$0xff] }
 0x489   : > { %2251 = vmatpush.msrb.mxu3 %v2156_v58  ;;  %v2405_v58 = vld [vmem:[%s6362_s11 + $0xd0] sm:$0xff] }
 0x48a   : > { %2277 = vmatpush.msrb.mxu1 %v2169_v16 }
 0x48b   : > { %2252 = vmatpush.msrb.mxu3 %v2155_v63 }
 0x48c   : > { %2278 = vmatpush.msrb.mxu1 %v2168_v42  ;;  %v2619_v42 = vld [vmem:[%s6362_s11 + $0x780] sm:$0xff] }
 0x48d   : > { %2253 = vmatpush.msrb.mxu3 %v2154_v19  ;;  %v2623_v19 = vld [vmem:[%s6362_s11 + $0x7a0] sm:$0xff] }
 0x48e   : > { %2279 = vmatpush.msrb.mxu1 %v2167_v38  ;;  %v2431_v38 = vld [vmem:[%s6362_s11 + $0x1a0] sm:$0xff] }
 0x48f   : > { %2254 = vmatpush.msrb.mxu3 %v2153_v25 }
 0x490   : > { %2280 = vmatpush.msrb.mxu1 %v2166_v60 }
 0x491   : > { %2255 = vmatpush.msrb.mxu3 %v2152_v50  ;;  %v2621_v50 = vld [vmem:[%s6362_s11 + $0x790] sm:$0xff] }
 0x492   : > { %2281 = vmatpush.msrb.mxu1 %v2165_v55  ;;  %v2429_v55 = vld [vmem:[%s6362_s11 + $0x190] sm:$0xff] }
 0x493   : > { %2256 = vmatpush.msrb.mxu3 %v2151_v11 }
 0x495   : > { %2257 = vmatpush.msrb.mxu3 %v2150_v37  ;;  %v2401_v37 = vld [vmem:[%s6362_s11 + $0xb0] sm:$0xff] }
 0x497   : > { %2258 = vmatpush.msrb.mxu3 %v2149_v36  ;;  %v2433_v36 = vld [vmem:[%s6362_s11 + $0x1b0] sm:$0xff] }
 0x499   : > { %2259 = vmatpush.msrb.mxu3 %v2148_v17 }
 0x49b   : > { %2260 = vmatpush.msrb.mxu3 %v2147_v40 }
 0x49d   : > { %2261 = vmatpush.msrb.mxu3 %v2146_v0 }
 0x4ce   : > { %v3643_v15 = vpop.permute.xlu2 %3642 }
 0x4cf   : > { %v3644_v22 = vunpack.i.l.bf16 %v3643_v15 }
 0x4d1   : > { %v2093_v41 = vsel %vm1674_vm0, %v5033_v29, %v3644_v22  ;;  %v2164_v29 = vld [vmem:[%s6359_s8 + $0x210] sm:$0xff] }
 0x4d2   : > { %2239 = vmatmul.f32.vlgmr.msra.gmra.mxu2 %v2093_v41  ;;  %2282 = vmatpush.msrb.mxu1 %v2164_v29  ;;  %v2397_v41 = vld [vmem:[%s6362_s11 + $0x90] sm:$0xff]  ;;  %v2395_v29 = vld [vmem:[%s6362_s11 + $0x80] sm:$0xff] }
 0x4d4   : > { %2283 = vmatpush.msrb.mxu1 %v2163_v2 }
 0x4d6   : > { %2284 = vmatpush.msrb.mxu1 %v2162_v7  ;;  %v2427_v7 = vld [vmem:[%s6362_s11 + $0x180] sm:$0xff] }
 0x4e3   : > { %v2056_v51 = vpop.permute.xlu0 %2055 }
 0x4e4   : > { %v2089_v13 = vsel %vm1674_vm0, %v2009_v4, %v2056_v51  ;;  %v3645_v4 = vunpack.i.h.bf16 %v3643_v15  ;;  %v2399_v15 = vld [vmem:[%s6362_s11 + $0xa0] sm:$0xff] }
 0x4e5   : > { %2193 = vmatmul.f32.vlgmr.msra.gmra.mxu3 %v2089_v13 }
 0x4e6   : > { %v3638_v14 = vpop.permute.xlu1 %3637  ;;  %v2092_v1 = vsel %vm1674_vm0, %v2023_v20, %v3645_v4  ;;  %v2627_v20 = vld [vmem:[%s6362_s11 + $0x7c0] sm:$0xff] }
 0x4e7   : > { %v3640_v43 = vunpack.i.h.bf16 %v3638_v14  ;;  %v3639_v47 = vunpack.i.l.bf16 %v3638_v14  ;;  %2817 = vmatpush.msrb.mxu0 %v2627_v20  ;;  %v2393_v14 = vld [vmem:[%s6362_s11 + $0x70] sm:$0xff]  ;;  %v2383_v20 = vld [vmem:[%s6362_s11 + $0x20] sm:$0xff] }
 0x4e9   : > { %v2091_v57 = vsel %vm1674_vm0, %v2022_v54, %v3640_v43  ;;  %v2090_v5 = vsel %vm1674_vm0, %v2010_v34, %v3639_v47  ;;  %v2095_v54 = vsel %vm1674_vm0, %v2044_v46, %v3639_v47  ;;  %2818 = vmatpush.msrb.mxu0 %v2625_v27  ;;  %v2425_v43 = vld [vmem:[%s6362_s11 + $0x170] sm:$0xff]  ;;  %v2415_v27 = vld [vmem:[%s6362_s11 + $0x120] sm:$0xff] }
 0x4ea   : > { %2216 = vmatmul.f32.vlgmr.msra.gmra.mxu1 %v2091_v57  ;;  %v2391_v57 = vld [vmem:[%s6362_s11 + $0x60] sm:$0xff] }
 0x4eb   : > { %v3648_v3 = vpop.permute.xlu0 %3647  ;;  %2694 = vmatpush.msra.mxu1 %v2441_v8  ;;  %2819 = vmatpush.msrb.mxu0 %v2623_v19  ;;  %v2381_v8 = vld [vmem:[%s6362_s11 + $0x10] sm:$0xff] }
 0x4ec   : > { %v3649_v26 = vunpack.i.l.bf16 %v3648_v3  ;;  %v3650_v34 = vunpack.i.h.bf16 %v3648_v3  ;;  %v2617_v3 = vld [vmem:[%s6362_s11 + $0x770] sm:$0xff] }
 0x4ed   : > { %2196 = vmatmul.f32.gmra.mxu3 %v2090_v5  ;;  %2695 = vmatpush.msra.mxu1 %v2439_v33  ;;  %v2605_v19 = vld [vmem:[%s6362_s11 + $0x710] sm:$0xff] }
 0x4ee   : > { %v2094_v28 = vsel %vm1674_vm0, %v5057_v44, %v3649_v26  ;;  %v2096_v44 = vsel %vm1674_vm0, %v2045_v9, %v3650_v34  ;;  %2820 = vmatpush.msrb.mxu0 %v2621_v50  ;;  %v2423_v26 = vld [vmem:[%s6362_s11 + $0x160] sm:$0xff] }
 0x4ef   : > { %2242 = vmatmul.f32.gmra.mxu2 %v2094_v28  ;;  %2696 = vmatpush.msra.mxu1 %v2437_v61  ;;  %v2389_v28 = vld [vmem:[%s6362_s11 + $0x50] sm:$0xff]  ;;  %v2471_v50 = vld [vmem:[%s6362_s11 + $0x2e0] sm:$0xff] }
 0x4f0   : > { %2821 = vmatpush.msrb.mxu0 %v2619_v42  ;;  %v2473_v61 = vld [vmem:[%s6362_s11 + $0x2f0] sm:$0xff] }
 0x4f1   : > { %2697 = vmatpush.msra.mxu1 %v2435_v39  ;;  %v2503_v39 = vld [vmem:[%s6362_s11 + $0x3e0] sm:$0xff]  ;;  %v2469_v42 = vld [vmem:[%s6362_s11 + $0x2d0] sm:$0xff] }
 0x4f2   : > { %2219 = vmatmul.f32.gmra.mxu1 %v2092_v1  ;;  %2822 = vmatpush.msrb.mxu0 %v2617_v3  ;;  %v2615_v1 = vld [vmem:[%s6362_s11 + $0x760] sm:$0xff] }
 0x4f3   : > { %2698 = vmatpush.msra.mxu1 %v2433_v36  ;;  %v2501_v36 = vld [vmem:[%s6362_s11 + $0x3d0] sm:$0xff]  ;;  %v2459_v3 = vld [vmem:[%s6362_s11 + $0x280] sm:$0xff] }
 0x4f4   : > { %2823 = vmatpush.msrb.mxu0 %v2615_v1  ;;  %v2489_v1 = vld [vmem:[%s6362_s11 + $0x370] sm:$0xff] }
 0x4f5   : > { %2262 = vmatmul.f32.vlgmr.msrb.gmra.mxu3 %v2095_v54  ;;  %2699 = vmatpush.msra.mxu1 %v2431_v38  ;;  %v2421_v54 = vld [vmem:[%s6362_s11 + $0x150] sm:$0xff]  ;;  %v2467_v38 = vld [vmem:[%s6362_s11 + $0x2c0] sm:$0xff] }
 0x4f7   : > { %2700 = vmatpush.msra.mxu1 %v2429_v55  ;;  %v2497_v55 = vld [vmem:[%s6362_s11 + $0x3b0] sm:$0xff] }
 0x4f9   : > { %2701 = vmatpush.msra.mxu1 %v2427_v7  ;;  %v2495_v7 = vld [vmem:[%s6362_s11 + $0x3a0] sm:$0xff] }
 0x4fa   : > { %3430 = vmatmul.msk.f32.vlgmr.msrb.gmra.mxu1 %vm1674_vm0, %v2048_v32 }
 0x4fb   : > { %2702 = vmatpush.msra.mxu1 %v2425_v43  ;;  %v2493_v43 = vld [vmem:[%s6362_s11 + $0x390] sm:$0xff] }
 0x4fd   : > { %2265 = vmatmul.f32.gmra.mxu3 %v2096_v44  ;;  %2703 = vmatpush.msra.mxu1 %v2423_v26  ;;  %v2491_v26 = vld [vmem:[%s6362_s11 + $0x380] sm:$0xff] }
 0x4ff   : > { %2704 = vmatpush.msra.mxu1 %v2421_v54  ;;  %v2523_v54 = vld [vmem:[%s6362_s11 + $0x480] sm:$0xff] }
 0x502   : > { %3431 = vmatmul.msk.f32.gmra.mxu1 %vm1674_vm0, %v2049_v59  ;;  %v2409_v59 = vld [vmem:[%s6362_s11 + $0xf0] sm:$0xff] }
 0x503   : > { %2674 = vmatpush.msra.mxu3 %v2409_v59 }
 0x505   : > { %2675 = vmatpush.msra.mxu3 %v2407_v10 }
 0x507   : > { %2676 = vmatpush.msra.mxu3 %v2405_v58  ;;  %v2413_v58 = vld [vmem:[%s6362_s11 + $0x110] sm:$0xff] }
 0x509   : > { %2677 = vmatpush.msra.mxu3 %v2403_v45  ;;  %v2411_v45 = vld [vmem:[%s6362_s11 + $0x100] sm:$0xff] }
 0x50b   : > { %2678 = vmatpush.msra.mxu3 %v2401_v37  ;;  %v2474_v37 = vld [vmem:[%s6362_s11 + $0x2f8] sm:$0xff] }
 0x50d   : > { %2679 = vmatpush.msra.mxu3 %v2399_v15  ;;  %v2535_v15 = vld [vmem:[%s6362_s11 + $0x4e0] sm:$0xff] }
 0x50f   : > { %2680 = vmatpush.msra.mxu3 %v2397_v41  ;;  %v2470_v41 = vld [vmem:[%s6362_s11 + $0x2d8] sm:$0xff] }
 0x511   : > { %2681 = vmatpush.msra.mxu3 %v2395_v29  ;;  %v2468_v29 = vld [vmem:[%s6362_s11 + $0x2c8] sm:$0xff] }
 0x513   : > { %2682 = vmatpush.msra.mxu3 %v2393_v14  ;;  %v2461_v14 = vld [vmem:[%s6362_s11 + $0x290] sm:$0xff] }
 0x515   : > { %2683 = vmatpush.msra.mxu3 %v2391_v57  ;;  %v2464_v57 = vld [vmem:[%s6362_s11 + $0x2a8] sm:$0xff] }
 0x517   : > { %2684 = vmatpush.msra.mxu3 %v2389_v28  ;;  %v2457_v28 = vld [vmem:[%s6362_s11 + $0x270] sm:$0xff] }
 0x519   : > { %2685 = vmatpush.msra.mxu3 %v2387_v23  ;;  %v2487_v23 = vld [vmem:[%s6362_s11 + $0x360] sm:$0xff] }
 0x51b   : > { %2686 = vmatpush.msra.mxu3 %v2385_v35  ;;  %v2456_v35 = vld [vmem:[%s6362_s11 + $0x268] sm:$0xff] }
 0x51d   : > { %2687 = vmatpush.msra.mxu3 %v2383_v20  ;;  %v2443_v20 = vld [vmem:[%s6362_s11 + $0x200] sm:$0xff] }
 0x51f   : > { %2688 = vmatpush.msra.mxu3 %v2381_v8  ;;  %v2559_v8 = vld [vmem:[%s6362_s11 + $0x5a0] sm:$0xff] }
 0x555   : > { %v2240_v48 = vpop.f32.mrf.mxu2 }
 0x567   : > { %v2217_v18 = vpop.f32.mrf.mxu1 }
 0x568   : > { %v2194_v31 = vpop.f32.mrf.mxu3 }
 0x569   : > { %v2195_v12 = vadd.f32 %v2194_v31, %v2170_v56 }
 0x56b   : > { %v2218_v32 = vadd.f32 %v2217_v18, %v2195_v12  ;;  %v2613_v18 = vld [vmem:[%s6362_s11 + $0x750] sm:$0xff] }
 0x56c   : > { %2824 = vmatpush.msrb.mxu0 %v2613_v18  ;;  %v2521_v18 = vld [vmem:[%s6362_s11 + $0x470] sm:$0xff] }
 0x56d   : > { %v2241_v25 = vadd.f32 %v2240_v48, %v2218_v32  ;;  %v2609_v32 = vld [vmem:[%s6362_s11 + $0x730] sm:$0xff] }
 0x56f   : > { %v2220_v46 = vpop.f32.mrf.mxu1 }
 0x570   : > { %v2197_v9 = vpop.f32.mrf.mxu3 }
 0x571   : > { %v2198_v52 = vadd.f32 %v2197_v9, %v2170_v56  ;;  %v2312_v56 = vrot.slane %v4221_v62, 4  ;;  %v2611_v9 = vld [vmem:[%s6362_s11 + $0x740] sm:$0xff]  ;;  %v2417_v62 = vld [vmem:[%s6362_s11 + $0x130] sm:$0xff] }
 0x572   : > { %v2243_v22 = vpop.f32.mrf.mxu2  ;;  %2825 = vmatpush.msrb.mxu0 %v2611_v9  ;;  %v2451_v9 = vld [vmem:[%s6362_s11 + $0x240] sm:$0xff] }
 0x573   : > { %v2221_v11 = vadd.f32 %v2220_v46, %v2198_v52  ;;  %v2607_v52 = vld [vmem:[%s6362_s11 + $0x720] sm:$0xff] }
 0x574   : > { %2826 = vmatpush.msrb.mxu0 %v2609_v32  ;;  %v2569_v32 = vld [vmem:[%s6362_s11 + $0x5f0] sm:$0xff] }
 0x575   : > { %v2244_v17 = vadd.f32 %v2243_v22, %v2221_v11  ;;  %v2603_v11 = vld [vmem:[%s6362_s11 + $0x700] sm:$0xff]  ;;  %v2472_v22 = vld [vmem:[%s6362_s11 + $0x2e8] sm:$0xff] }
 0x576   : > { %2827 = vmatpush.msrb.mxu0 %v2607_v52  ;;  %v2557_v52 = vld [vmem:[%s6362_s11 + $0x590] sm:$0xff] }
 0x577   : > { %v2286_v63 = vpop.f32.mrf.mxu1 }
 0x578   : > { %v2263_v6 = vpop.f32.mrf.mxu3  ;;  %2828 = vmatpush.msrb.mxu0 %v2605_v19  ;;  %v2517_v19 = vld [vmem:[%s6362_s11 + $0x450] sm:$0xff] }
 0x579   : > { %v2264_v16 = vadd.f32 %v2263_v6, %v2241_v25  ;;  %v2379_v6 = vld [vmem:[%s6362_s11] sm:$0xff]  ;;  %v2505_v25 = vld [vmem:[%s6362_s11 + $0x3f0] sm:$0xff] }
 0x57a   : > { %2689 = vmatpush.msra.mxu3 %v2379_v6  ;;  %2829 = vmatpush.msrb.mxu0 %v2603_v11  ;;  %v2483_v6 = vld [vmem:[%s6362_s11 + $0x340] sm:$0xff]  ;;  %v2452_v11 = vld [vmem:[%s6362_s11 + $0x248] sm:$0xff] }
 0x57b   : > { %v2287_v60 = vadd.f32 %v2286_v63, %v2264_v16  ;;  %v2318_v63 = vld [vmem:[%s6361_s10] sm:$0xf]  ;;  %v2537_v16 = vld [vmem:[%s6362_s11 + $0x4f0] sm:$0xff] }
 0x57c   : > { %2734 = vmatpush.msrb.mxu3 %v2505_v25  ;;  %2894 = vmatpush.msra.mxu0 %v2474_v37  ;;  %v2454_v25 = vld [vmem:[%s6362_s11 + $0x258] sm:$0xff]  ;;  %v2513_v37 = vld [vmem:[%s6362_s11 + $0x430] sm:$0xff] }
 0x57d   : > { %v2292_v51 = vmax.f32 %v2287_v60, 0.0  ;;  %v2533_v60 = vld [vmem:[%s6362_s11 + $0x4d0] sm:$0xff] }
 0x57e   : > { %2735 = vmatpush.msrb.mxu3 %v2503_v39  ;;  %2895 = vmatpush.msra.mxu0 %v2472_v22  ;;  %v2547_v39 = vld [vmem:[%s6362_s11 + $0x540] sm:$0xff] }
 0x57f   : > { %v2289_v2 = vpop.f32.mrf.mxu1  ;;  %v2296_v5 = vrot.slane %v2292_v51, 1  ;;  %v2511_v22 = vld [vmem:[%s6362_s11 + $0x420] sm:$0xff] }
 0x580   : > { %v2266_v40 = vpop.f32.mrf.mxu3  ;;  %2736 = vmatpush.msrb.mxu3 %v2501_v36  ;;  %2896 = vmatpush.msra.mxu0 %v2470_v41  ;;  %v2450_v36 = vld [vmem:[%s6362_s11 + $0x238] sm:$0xff]  ;;  %v2509_v41 = vld [vmem:[%s6362_s11 + $0x410] sm:$0xff] }
 0x581   : > { %v2267_v0 = vadd.f32 %v2266_v40, %v2244_v17  ;;  %v2499_v17 = vld [vmem:[%s6362_s11 + $0x3c0] sm:$0xff]  ;;  %v2465_v40 = vld [vmem:[%s6362_s11 + $0x2b0] sm:$0xff] }
 0x582   : > { %2737 = vmatpush.msrb.mxu3 %v2499_v17  ;;  %2897 = vmatpush.msra.mxu0 %v2468_v29  ;;  %v2448_v17 = vld [vmem:[%s6362_s11 + $0x228] sm:$0xff]  ;;  %v2539_v29 = vld [vmem:[%s6362_s11 + $0x500] sm:$0xff] }
 0x583   : > { %v2290_v13 = vadd.f32 %v2289_v2, %v2267_v0  ;;  %v2531_v0 = vld [vmem:[%s6362_s11 + $0x4c0] sm:$0xff] }
 0x584   : > { %v2463_v2 = vld [vmem:[%s6362_s11 + $0x2a0] sm:$0xff]  ;;  %2738 = vmatpush.msrb.mxu3 %v2497_v55  ;;  %v2446_v55 = vld [vmem:[%s6362_s11 + $0x218] sm:$0xff] }
 0x585   : > { %v2293_v47 = vmax.f32 %v2290_v13, 0.0  ;;  %v2466_v13 = vld [vmem:[%s6362_s11 + $0x2b8] sm:$0xff] }
 0x586   : > { %2739 = vmatpush.msrb.mxu3 %v2495_v7  ;;  %2898 = vmatpush.msra.mxu0 %v2466_v13  ;;  %v2343_v7 = vperm.slane %v5258_v21, 1 }
 0x587   : > { %v2297_v4 = vrot.slane %v2293_v47, 1 }
 0x588   : > { %2740 = vmatpush.msrb.mxu3 %v2493_v43  ;;  %2899 = vmatpush.msra.mxu0 %v2464_v57  ;;  %v2347_v43 = vand.u32 1, %v4313_v49 }
 0x589   : > { %v2299_v34 = vsel %vm1034_vm2, %v2297_v4, %v4216_v30  ;;  %v2298_v44 = vsel %vm1034_vm2, %v2296_v5, %v2297_v4  ;;  %v2419_v30 = vld [vmem:[%s6362_s11 + $0x140] sm:$0xff]  ;;  %v2525_v5 = vld [vmem:[%s6362_s11 + $0x490] sm:$0xff]  ;;  %v2462_v4 = vld [vmem:[%s6362_s11 + $0x298] sm:$0xff] }
 0x58a   : > { %v2303_v31 = vmax.f32 %v2293_v47, %v2299_v34  ;;  %v2302_v46 = vmax.f32 %v2292_v51, %v2298_v44  ;;  %2705 = vmatpush.msra.mxu1 %v2419_v30  ;;  %v2529_v51 = vld [vmem:[%s6362_s11 + $0x4b0] sm:$0xff]  ;;  %v2527_v47 = vld [vmem:[%s6362_s11 + $0x4a0] sm:$0xff]  ;;  %2741 = vmatpush.msrb.mxu3 %v2491_v26  ;;  %v2460_v34 = vld [vmem:[%s6362_s11 + $0x288] sm:$0xff]  ;;  %vm5654_vm4 = vcmp.ne.s32.totalorder %v2347_v43, 0  ;;  %vm5666_vm7 = vcmp.ne.s32.totalorder %v2347_v43, 1 }
 0x58b   : > { %v2455_v44 = vld [vmem:[%s6362_s11 + $0x260] sm:$0xff]  ;;  %2900 = vmatpush.msra.mxu0 %v2462_v4  ;;  %v2375_v4 = vrot.slane %v3785_v53, 5 }
 0x58c   : > { %v2310_v12 = vrot.slane %v2303_v31, 4  ;;  %v2309_v24 = vrot.slane %v2302_v46, 4  ;;  %2706 = vmatpush.msra.mxu1 %v2417_v62  ;;  %2742 = vmatpush.msrb.mxu3 %v2489_v1  ;;  %v2519_v30 = vld [vmem:[%s6362_s11 + $0x460] sm:$0xff]  ;;  %v2445_v62 = vld [vmem:[%s6362_s11 + $0x210] sm:$0xff] }
 0x58d   : > { %2901 = vmatpush.msra.mxu0 %v2460_v34  ;;  %v2665_v34 = vld [vmem:[%s6362_s11 + $0x8f0] sm:$0xff]  ;;  %v2575_v43 = vld [vmem:[%s6362_s11 + $0x620] sm:$0xff] }
 0x58e   : > { %v2313_v59 = vsel %vm2024_vm12, %v2310_v12, %v2312_v56  ;;  %v2311_v48 = vsel %vm2024_vm12, %v2309_v24, %v2310_v12  ;;  %2707 = vmatpush.msra.mxu1 %v2415_v27  ;;  %v2453_v56 = vld [vmem:[%s6362_s11 + $0x250] sm:$0xff]  ;;  %2743 = vmatpush.msrb.mxu3 %v2487_v23  ;;  %v2447_v24 = vld [vmem:[%s6362_s11 + $0x220] sm:$0xff]  ;;  %v2410_v23 = vld [vmem:[%s6362_s11 + $0xf8] sm:$0xff] }
 0x58f   : > { %v2317_v10 = vmax.f32 %v2303_v31, %v2313_v59  ;;  %v2316_v33 = vmax.f32 %v2302_v46, %v2311_v48  ;;  %v2458_v31 = vld [vmem:[%s6362_s11 + $0x278] sm:$0xff]  ;;  %v2485_v46 = vld [vmem:[%s6362_s11 + $0x350] sm:$0xff]  ;;  %v2567_v59 = vld [vmem:[%s6362_s11 + $0x5e0] sm:$0xff] }
 0x590   : > { %2708 = vmatpush.msra.mxu1 %v2413_v58  ;;  %2902 = vmatpush.msra.mxu0 %v2458_v31  ;;  %v2449_v12 = vld [vmem:[%s6362_s11 + $0x230] sm:$0xff]  ;;  %v2563_v27 = vld [vmem:[%s6362_s11 + $0x5c0] sm:$0xff]  ;;  %v2602_v31 = vld [vmem:[%s6362_s11 + $0x6f8] sm:$0xff] }
 0x591   : > { %2337 = vmatpush.msrb.mxu2 %v2317_v10  ;;  %2744 = vmatpush.msrb.mxu3 %v2485_v46  ;;  %v2565_v48 = vld [vmem:[%s6362_s11 + $0x5d0] sm:$0xff]  ;;  %v2555_v58 = vld [vmem:[%s6362_s11 + $0x580] sm:$0xff] }
 0x592   : > { %2709 = vmatpush.msra.mxu1 %v2411_v45  ;;  %2903 = vmatpush.msra.mxu0 %v2456_v35  ;;  %v2561_v10 = vld [vmem:[%s6362_s11 + $0x5b0] sm:$0xff]  ;;  %v2663_v46 = vld [vmem:[%s6362_s11 + $0x8e0] sm:$0xff]  ;;  %v2600_v35 = vld [vmem:[%s6362_s11 + $0x6e8] sm:$0xff] }
 0x593   : > { %2338 = vmatpush.msrb.mxu2 %v2316_v33  ;;  %v2553_v33 = vld [vmem:[%s6362_s11 + $0x570] sm:$0xff]  ;;  %2745 = vmatpush.msrb.mxu3 %v2483_v6  ;;  %v2592_v6 = vld [vmem:[%s6362_s11 + $0x6a8] sm:$0xff] }
 0x594   : > { %3432 = vmatmul.msk.f32.vlgmr.msrb.gmra.mxu2 %vm2319_vm6, %v2318_v63  ;;  %2754 = vmatpush.msrb.mxu1 %v2537_v16  ;;  %v2551_v63 = vld [vmem:[%s6362_s11 + $0x560] sm:$0xff]  ;;  %v2481_v45 = vld [vmem:[%s6362_s11 + $0x330] sm:$0xff] }
 0x595   : > { %2714 = vmatpush.msra.mxu2 %v2473_v61  ;;  %v2549_v61 = vld [vmem:[%s6362_s11 + $0x550] sm:$0xff]  ;;  %2904 = vmatpush.msra.mxu0 %v2454_v25  ;;  %v2479_v16 = vld [vmem:[%s6362_s11 + $0x320] sm:$0xff]  ;;  %v2398_v25 = vld [vmem:[%s6362_s11 + $0x98] sm:$0xff] }
 0x596   : > { %2755 = vmatpush.msrb.mxu1 %v2535_v15  ;;  %2746 = vmatpush.msrb.mxu3 %v2481_v45  ;;  %v2477_v15 = vld [vmem:[%s6362_s11 + $0x310] sm:$0xff]  ;;  %v2590_v45 = vld [vmem:[%s6362_s11 + $0x698] sm:$0xff] }
 0x597   : > { %2715 = vmatpush.msra.mxu2 %v2471_v50  ;;  %v2515_v50 = vld [vmem:[%s6362_s11 + $0x440] sm:$0xff]  ;;  %2905 = vmatpush.msra.mxu0 %v2452_v11  ;;  %v2396_v11 = vld [vmem:[%s6362_s11 + $0x88] sm:$0xff] }
 0x598   : > { %2756 = vmatpush.msrb.mxu1 %v2533_v60  ;;  %2747 = vmatpush.msrb.mxu3 %v2479_v16  ;;  %v2475_v60 = vld [vmem:[%s6362_s11 + $0x300] sm:$0xff]  ;;  %v2588_v16 = vld [vmem:[%s6362_s11 + $0x688] sm:$0xff] }
 0x599   : > { %2716 = vmatpush.msra.mxu2 %v2469_v42  ;;  %v2545_v42 = vld [vmem:[%s6362_s11 + $0x530] sm:$0xff]  ;;  %2906 = vmatpush.msra.mxu0 %v2450_v36 }
 0x59a   : > { %2757 = vmatpush.msrb.mxu1 %v2531_v0  ;;  %2748 = vmatpush.msrb.mxu3 %v2477_v15  ;;  %v2507_v0 = vld [vmem:[%s6362_s11 + $0x400] sm:$0xff]  ;;  %v2649_v36 = vld [vmem:[%s6362_s11 + $0x870] sm:$0xff]  ;;  %v2394_v15 = vld [vmem:[%s6362_s11 + $0x78] sm:$0xff] }
 0x59b   : > { %2717 = vmatpush.msra.mxu2 %v2467_v38  ;;  %v2543_v38 = vld [vmem:[%s6362_s11 + $0x520] sm:$0xff]  ;;  %2907 = vmatpush.msra.mxu0 %v2448_v17 }
 0x59c   : > { %2758 = vmatpush.msrb.mxu1 %v2529_v51  ;;  %2749 = vmatpush.msrb.mxu3 %v2475_v60  ;;  %v2345_v51 = vperm.slane %v5258_v21, 2  ;;  %v2647_v17 = vld [vmem:[%s6362_s11 + $0x860] sm:$0xff]  ;;  %v2392_v60 = vld [vmem:[%s6362_s11 + $0x68] sm:$0xff] }
 0x59d   : > { %2718 = vmatpush.msra.mxu2 %v2465_v40  ;;  %v2541_v40 = vld [vmem:[%s6362_s11 + $0x510] sm:$0xff]  ;;  %2908 = vmatpush.msra.mxu0 %v2446_v55  ;;  %v2579_v55 = vld [vmem:[%s6362_s11 + $0x640] sm:$0xff] }
 0x59e   : > { %2759 = vmatpush.msrb.mxu1 %v2527_v47 }
 0x59f   : > { %2719 = vmatpush.msra.mxu2 %v2463_v2  ;;  %v2444_v2 = vld [vmem:[%s6362_s11 + $0x208] sm:$0xff] }
 0x5a0   : > { %2760 = vmatpush.msrb.mxu1 %v2525_v5  ;;  %2909 = vmatpush.msra.mxu0 %v2444_v2  ;;  %v2601_v5 = vld [vmem:[%s6362_s11 + $0x6f0] sm:$0xff]  ;;  %v2582_v2 = vld [vmem:[%s6362_s11 + $0x658] sm:$0xff] }
 0x5a1   : > { %2720 = vmatpush.msra.mxu2 %v2461_v14 }
 0x5a2   : > { %2761 = vmatpush.msrb.mxu1 %v2523_v54  ;;  %v2599_v54 = vld [vmem:[%s6362_s11 + $0x6e0] sm:$0xff] }
 0x5a3   : > { %2721 = vmatpush.msra.mxu2 %v2459_v3  ;;  %v2564_v3 = vld [vmem:[%s6362_s11 + $0x5c8] sm:$0xff] }
 0x5a4   : > { %2762 = vmatpush.msrb.mxu1 %v2521_v18 }
 0x5a5   : > { %2722 = vmatpush.msra.mxu2 %v2457_v28  ;;  %v3116_v28 = vld [vmem:[#allocation4 + $0x68] sm:$0xff] }
 0x5a6   : > { %2763 = vmatpush.msrb.mxu1 %v2519_v30  ;;  %v2408_v30 = vld [vmem:[%s6362_s11 + $0xe8] sm:$0xff] }
 0x5a7   : > { %2723 = vmatpush.msra.mxu2 %v2455_v44 }
 0x5a8   : > { %2764 = vmatpush.msrb.mxu1 %v2517_v19  ;;  %v2587_v19 = vld [vmem:[%s6362_s11 + $0x680] sm:$0xff] }
 0x5a9   : > { %2724 = vmatpush.msra.mxu2 %v2453_v56  ;;  %v2597_v56 = vld [vmem:[%s6362_s11 + $0x6d0] sm:$0xff] }
 0x5aa   : > { %2765 = vmatpush.msrb.mxu1 %v2515_v50  ;;  %v2585_v50 = vld [vmem:[%s6362_s11 + $0x670] sm:$0xff] }
 0x5ab   : > { %2725 = vmatpush.msra.mxu2 %v2451_v9  ;;  %v2595_v9 = vld [vmem:[%s6362_s11 + $0x6c0] sm:$0xff] }
 0x5ac   : > { %2766 = vmatpush.msrb.mxu1 %v2513_v37  ;;  %v2583_v37 = vld [vmem:[%s6362_s11 + $0x660] sm:$0xff] }
 0x5ad   : > { %2726 = vmatpush.msra.mxu2 %v2449_v12  ;;  %v2661_v12 = vld [vmem:[%s6362_s11 + $0x8d0] sm:$0xff] }
 0x5ae   : > { %2767 = vmatpush.msrb.mxu1 %v2511_v22  ;;  %v2586_v22 = vld [vmem:[%s6362_s11 + $0x678] sm:$0xff] }
 0x5af   : > { %2727 = vmatpush.msra.mxu2 %v2447_v24  ;;  %v2406_v24 = vld [vmem:[%s6362_s11 + $0xd8] sm:$0xff] }
 0x5b0   : > { %2768 = vmatpush.msrb.mxu1 %v2509_v41 }
 0x5b1   : > { %2728 = vmatpush.msra.mxu2 %v2445_v62  ;;  %v2598_v62 = vld [vmem:[%s6362_s11 + $0x6d8] sm:$0xff] }
 0x5b2   : > { %2769 = vmatpush.msrb.mxu1 %v2507_v0  ;;  %v2645_v0 = vld [vmem:[%s6362_s11 + $0x850] sm:$0xff] }
 0x5b3   : > { %2729 = vmatpush.msra.mxu2 %v2443_v20  ;;  %v2593_v20 = vld [vmem:[%s6362_s11 + $0x6b0] sm:$0xff] }
 0x5b5   : > { %2774 = vmatpush.msrb.mxu2 %v2569_v32  ;;  %v2659_v32 = vld [vmem:[%s6362_s11 + $0x8c0] sm:$0xff] }
 0x5b7   : > { %2775 = vmatpush.msrb.mxu2 %v2567_v59  ;;  %v2404_v59 = vld [vmem:[%s6362_s11 + $0xc8] sm:$0xff] }
 0x5b9   : > { %2776 = vmatpush.msrb.mxu2 %v2565_v48  ;;  %v2596_v48 = vld [vmem:[%s6362_s11 + $0x6c8] sm:$0xff] }
 0x5bb   : > { %2777 = vmatpush.msrb.mxu2 %v2563_v27  ;;  %v2591_v27 = vld [vmem:[%s6362_s11 + $0x6a0] sm:$0xff] }
 0x5bd   : > { %2778 = vmatpush.msrb.mxu2 %v2561_v10  ;;  %v2657_v10 = vld [vmem:[%s6362_s11 + $0x8b0] sm:$0xff] }
 0x5bf   : > { %2779 = vmatpush.msrb.mxu2 %v2559_v8  ;;  %v2402_v8 = vld [vmem:[%s6362_s11 + $0xb8] sm:$0xff] }
 0x5c1   : > { %2780 = vmatpush.msrb.mxu2 %v2557_v52  ;;  %v2594_v52 = vld [vmem:[%s6362_s11 + $0x6b8] sm:$0xff] }
 0x5c3   : > { %2781 = vmatpush.msrb.mxu2 %v2555_v58  ;;  %v2589_v58 = vld [vmem:[%s6362_s11 + $0x690] sm:$0xff] }
 0x5c5   : > { %2782 = vmatpush.msrb.mxu2 %v2553_v33  ;;  %v2655_v33 = vld [vmem:[%s6362_s11 + $0x8a0] sm:$0xff] }
 0x5c7   : > { %2783 = vmatpush.msrb.mxu2 %v2551_v63  ;;  %v2400_v63 = vld [vmem:[%s6362_s11 + $0xa8] sm:$0xff] }
 0x5c9   : > { %2784 = vmatpush.msrb.mxu2 %v2549_v61  ;;  %v2653_v61 = vld [vmem:[%s6362_s11 + $0x890] sm:$0xff] }
 0x5cb   : > { %2785 = vmatpush.msrb.mxu2 %v2547_v39  ;;  %v2651_v39 = vld [vmem:[%s6362_s11 + $0x880] sm:$0xff] }
 0x5cd   : > { %2786 = vmatpush.msrb.mxu2 %v2545_v42 }
 0x5cf   : > { %2787 = vmatpush.msrb.mxu2 %v2543_v38  ;;  %v2581_v38 = vld [vmem:[%s6362_s11 + $0x650] sm:$0xff] }
 0x5d1   : > { %2788 = vmatpush.msrb.mxu2 %v2541_v40  ;;  %v2584_v40 = vld [vmem:[%s6362_s11 + $0x668] sm:$0xff] }
 0x5d3   : > { %2789 = vmatpush.msrb.mxu2 %v2539_v29  ;;  %v2390_v29 = vld [vmem:[%s6362_s11 + $0x58] sm:$0xff] }
 0x617   : > { %v2340_v13 = vpop.f32.mrf.mxu2 }
 0x618   : > { %v2344_v14 = vmul.f32 %v2343_v7, %v2340_v13  ;;  %v2577_v7 = vld [vmem:[%s6362_s11 + $0x630] sm:$0xff]  ;;  %v2388_v13 = vld [vmem:[%s6362_s11 + $0x48] sm:$0xff] }
 0x61a   : > { %v2346_v47 = vadd.f32 %v2345_v51, %v2344_v14  ;;  %v2643_v51 = vld [vmem:[%s6362_s11 + $0x840] sm:$0xff]  ;;  %v2580_v14 = vld [vmem:[%s6362_s11 + $0x648] sm:$0xff] }
 0x61c   : > { %v2349_v57 = vrot.slane %v2346_v47, 5  ;;  %v2641_v47 = vld [vmem:[%s6362_s11 + $0x830] sm:$0xff] }
 0x61e   : > { %v2351_v26 = vsel %vm2069_vm15, 0.0, %v2349_v57  ;;  %v2386_v57 = vld [vmem:[%s6362_s11 + $0x38] sm:$0xff] }
 0x61f   : > { %v5664_v21 = vsel %vm1034_vm2, %v2351_v26, 0.0  ;;  %v2578_v26 = vld [vmem:[%s6362_s11 + $0x638] sm:$0xff]  ;;  %vm3067_vm2 = vcmask 23552  }
 0x620   : > { %3434 = vmatmul.msk.f32.vlgmr.msra.gmra.mxu3 %vm5654_vm4, %v5664_v21  ;;  %v2370_v49 = vrot.slane %v5664_v21, 1  ;;  %v5675_v1 = vrot.slane %v5664_v21, 2  ;;  %v2374_v44 = vrot.slane %v5664_v21, 5  ;;  %v5790_v42 = vrot.slane %v5664_v21, 4 }
 0x621   : > { %2794 = vmatpush.msra.mxu3 %v2601_v5  ;;  %v2372_v41 = vrot.slane %v5664_v21, 3  ;;  %v2573_v5 = vld [vmem:[%s6362_s11 + $0x610] sm:$0xff] }
 0x622   : > { %2710 = vmatmul.f32.vlgmr.msra.gmra.mxu1 %v2370_v49  ;;  %3436 = vmatmul.msk.f32.vlgmr.msra.gmra.mxu2 %vm5666_vm7, %v5675_v1  ;;  %v5693_v18 = vsel %vm2069_vm15, %v2374_v44, %v2375_v4  ;;  %v2639_v4 = vld [vmem:[%s6362_s11 + $0x820] sm:$0xff] }
 0x623   : > { %2795 = vmatpush.msra.mxu3 %v2599_v54  ;;  %2834 = vmatpush.msra.mxu1 %v2665_v34  ;;  %v2384_v54 = vld [vmem:[%s6362_s11 + $0x28] sm:$0xff]  ;;  %v2571_v44 = vld [vmem:[%s6362_s11 + $0x600] sm:$0xff] }
 0x624   : > { %2854 = vmatpush.msra.mxu2 %v2410_v23  ;;  %2830 = vmatmul.f32.vlgmr.msrb.gmra.mxu0 %v5693_v18  ;;  %v2576_v34 = vld [vmem:[%s6362_s11 + $0x628] sm:$0xff]  ;;  %v2637_v23 = vld [vmem:[%s6362_s11 + $0x810] sm:$0xff] }
 0x625   : > { %2974 = vmatpush.msrb.mxu0 %v2602_v31  ;;  %2796 = vmatpush.msra.mxu3 %v2597_v56  ;;  %v2382_v31 = vld [vmem:[%s6362_s11 + $0x18] sm:$0xff] }
 0x626   : > { %2835 = vmatpush.msra.mxu1 %v2663_v46  ;;  %2855 = vmatpush.msra.mxu2 %v2408_v30  ;;  %v2574_v56 = vld [vmem:[%s6362_s11 + $0x618] sm:$0xff]  ;;  %v2365_v46 = vrot.slane %v5664_v21, 6  ;;  %v2366_v30 = vrot.slane %v3785_v53, 6  ;;  %v2440_v53 = vld [vmem:[%s6362_s11 + $0x1e8] sm:$0xff] }
 0x627   : > { %2975 = vmatpush.msrb.mxu0 %v2600_v35  ;;  %2797 = vmatpush.msra.mxu3 %v2595_v9  ;;  %v2442_v35 = vld [vmem:[%s6362_s11 + $0x1f8] sm:$0xff]  ;;  %v2635_v9 = vld [vmem:[%s6362_s11 + $0x800] sm:$0xff] }
 0x628   : > { %2836 = vmatpush.msra.mxu1 %v2661_v12  ;;  %2856 = vmatpush.msra.mxu2 %v2406_v24  ;;  %v2380_v12 = vld [vmem:[%s6362_s11 + $0x8] sm:$0xff]  ;;  %v5900_v24 = vsel %vm2034_vm14, %v2365_v46, %v2366_v30  ;;  %v2634_v46 = vld [vmem:[%s6362_s11 + $0x7f8] sm:$0xff] }
 0x629   : > { %2976 = vmatpush.msrb.mxu0 %v2598_v62  ;;  %2798 = vmatpush.msra.mxu3 %v2593_v20  ;;  %v2506_v62 = vld [vmem:[%s6362_s11 + $0x3f8] sm:$0xff] }
 0x62a   : > { %2837 = vmatpush.msra.mxu1 %v2659_v32  ;;  %2857 = vmatpush.msra.mxu2 %v2404_v59  ;;  %v2538_v20 = vld [vmem:[%s6362_s11 + $0x4f8] sm:$0xff]  ;;  %v2572_v32 = vld [vmem:[%s6362_s11 + $0x608] sm:$0xff] }
 0x62b   : > { %2977 = vmatpush.msrb.mxu0 %v2596_v48  ;;  %2799 = vmatpush.msra.mxu3 %v2591_v27  ;;  %v2438_v59 = vld [vmem:[%s6362_s11 + $0x1d8] sm:$0xff]  ;;  %v2504_v48 = vld [vmem:[%s6362_s11 + $0x3e8] sm:$0xff] }
 0x62c   : > { %2838 = vmatpush.msra.mxu1 %v2657_v10  ;;  %2858 = vmatpush.msra.mxu2 %v2402_v8  ;;  %v2536_v27 = vld [vmem:[%s6362_s11 + $0x4e8] sm:$0xff]  ;;  %v2502_v8 = vld [vmem:[%s6362_s11 + $0x3d8] sm:$0xff] }
 0x62d   : > { %2978 = vmatpush.msrb.mxu0 %v2594_v52  ;;  %2800 = vmatpush.msra.mxu3 %v2589_v58  ;;  %v2436_v10 = vld [vmem:[%s6362_s11 + $0x1c8] sm:$0xff]  ;;  %v2534_v52 = vld [vmem:[%s6362_s11 + $0x4d8] sm:$0xff] }
 0x62e   : > { %2839 = vmatpush.msra.mxu1 %v2655_v33  ;;  %2859 = vmatpush.msra.mxu2 %v2400_v63  ;;  %v2434_v58 = vld [vmem:[%s6362_s11 + $0x1b8] sm:$0xff]  ;;  %v2500_v33 = vld [vmem:[%s6362_s11 + $0x3c8] sm:$0xff] }
 0x62f   : > { %3438 = vmatmul.msk.f32.vlgmr.msrb.gmra.mxu3 %vm5654_vm4, %v5675_v1  ;;  %2979 = vmatpush.msrb.mxu0 %v2592_v6  ;;  %v2532_v63 = vld [vmem:[%s6362_s11 + $0x4c8] sm:$0xff]  ;;  %v2666_v30 = vld [vmem:[%s6362_s11 + $0x8f8] sm:$0xff] }
 0x630   : > { %2801 = vmatpush.msra.mxu3 %v2587_v19  ;;  %2840 = vmatpush.msra.mxu1 %v2653_v61  ;;  %v2432_v6 = vld [vmem:[%s6362_s11 + $0x1a8] sm:$0xff]  ;;  %v2498_v19 = vld [vmem:[%s6362_s11 + $0x3b8] sm:$0xff] }
 0x631   : > { %2860 = vmatpush.msra.mxu2 %v2398_v25  ;;  %2980 = vmatpush.msrb.mxu0 %v2590_v45  ;;  %v2530_v61 = vld [vmem:[%s6362_s11 + $0x4b8] sm:$0xff]  ;;  %v2496_v45 = vld [vmem:[%s6362_s11 + $0x3a8] sm:$0xff] }
 0x632   : > { %2802 = vmatpush.msra.mxu3 %v2585_v50  ;;  %2841 = vmatpush.msra.mxu1 %v2651_v39  ;;  %v2430_v25 = vld [vmem:[%s6362_s11 + $0x198] sm:$0xff]  ;;  %v2528_v50 = vld [vmem:[%s6362_s11 + $0x4a8] sm:$0xff] }
 0x633   : > { %2861 = vmatpush.msra.mxu2 %v2396_v11  ;;  %2981 = vmatpush.msrb.mxu0 %v2588_v16  ;;  %v2428_v39 = vld [vmem:[%s6362_s11 + $0x188] sm:$0xff]  ;;  %v2494_v11 = vld [vmem:[%s6362_s11 + $0x398] sm:$0xff] }
 0x634   : > { %3440 = vmatmul.msk.f32.vlgmr.msrb.gmra.mxu2 %vm5666_vm7, %v5790_v42  ;;  %2803 = vmatpush.msra.mxu3 %v2583_v37  ;;  %v2526_v16 = vld [vmem:[%s6362_s11 + $0x498] sm:$0xff] }
 0x635   : > { %2842 = vmatpush.msra.mxu1 %v2649_v36  ;;  %2862 = vmatpush.msra.mxu2 %v2394_v15  ;;  %v2426_v37 = vld [vmem:[%s6362_s11 + $0x178] sm:$0xff]  ;;  %v2492_v36 = vld [vmem:[%s6362_s11 + $0x388] sm:$0xff] }
 0x636   : > { %2982 = vmatpush.msrb.mxu0 %v2586_v22  ;;  %2804 = vmatpush.msra.mxu3 %v2581_v38  ;;  %v2524_v15 = vld [vmem:[%s6362_s11 + $0x488] sm:$0xff]  ;;  %v2490_v38 = vld [vmem:[%s6362_s11 + $0x378] sm:$0xff] }
 0x637   : > { %2843 = vmatpush.msra.mxu1 %v2647_v17  ;;  %2863 = vmatpush.msra.mxu2 %v2392_v60  ;;  %v2424_v22 = vld [vmem:[%s6362_s11 + $0x168] sm:$0xff]  ;;  %v2522_v17 = vld [vmem:[%s6362_s11 + $0x478] sm:$0xff] }
 0x638   : > { %2770 = vmatmul.f32.vlgmr.msrb.gmra.mxu1 %v2372_v41  ;;  %3448 = vmatmul.msk.f32.vlgmr.msra.gmra.mxu0 %vm5666_vm7, %v5675_v1  ;;  %v2422_v60 = vld [vmem:[%s6362_s11 + $0x158] sm:$0xff] }
 0x639   : > { %2983 = vmatpush.msrb.mxu0 %v2584_v40  ;;  %2805 = vmatpush.msra.mxu3 %v2579_v55  ;;  %v2488_v40 = vld [vmem:[%s6362_s11 + $0x368] sm:$0xff] }
 0x63a   : > { %2844 = vmatpush.msra.mxu1 %v2645_v0  ;;  %2864 = vmatpush.msra.mxu2 %v2390_v29  ;;  %v2520_v55 = vld [vmem:[%s6362_s11 + $0x468] sm:$0xff]  ;;  %v2486_v29 = vld [vmem:[%s6362_s11 + $0x358] sm:$0xff] }
 0x63b   : > { %2984 = vmatpush.msrb.mxu0 %v2582_v2  ;;  %2806 = vmatpush.msra.mxu3 %v2577_v7  ;;  %v2420_v0 = vld [vmem:[%s6362_s11 + $0x148] sm:$0xff]  ;;  %v2518_v2 = vld [vmem:[%s6362_s11 + $0x458] sm:$0xff] }
 0x63c   : > { %2845 = vmatpush.msra.mxu1 %v2643_v51  ;;  %2865 = vmatpush.msra.mxu2 %v2388_v13  ;;  %v2418_v7 = vld [vmem:[%s6362_s11 + $0x138] sm:$0xff]  ;;  %v2484_v51 = vld [vmem:[%s6362_s11 + $0x348] sm:$0xff] }
 0x63d   : > { %2985 = vmatpush.msrb.mxu0 %v2580_v14  ;;  %2807 = vmatpush.msra.mxu3 %v2575_v43  ;;  %v2516_v13 = vld [vmem:[%s6362_s11 + $0x448] sm:$0xff]  ;;  %v2482_v43 = vld [vmem:[%s6362_s11 + $0x338] sm:$0xff] }
 0x63e   : > { %2846 = vmatpush.msra.mxu1 %v2641_v47  ;;  %2866 = vmatpush.msra.mxu2 %v2386_v57  ;;  %v2416_v14 = vld [vmem:[%s6362_s11 + $0x128] sm:$0xff]  ;;  %v2514_v47 = vld [vmem:[%s6362_s11 + $0x438] sm:$0xff] }
 0x63f   : > { %2986 = vmatpush.msrb.mxu0 %v2578_v26  ;;  %2808 = vmatpush.msra.mxu3 %v2573_v5  ;;  %v2414_v57 = vld [vmem:[%s6362_s11 + $0x118] sm:$0xff]  ;;  %v2480_v26 = vld [vmem:[%s6362_s11 + $0x328] sm:$0xff] }
 0x640   : > { %2847 = vmatpush.msra.mxu1 %v2639_v4  ;;  %2867 = vmatpush.msra.mxu2 %v2384_v54  ;;  %v2512_v5 = vld [vmem:[%s6362_s11 + $0x428] sm:$0xff]  ;;  %v2478_v54 = vld [vmem:[%s6362_s11 + $0x318] sm:$0xff] }
 0x641   : > { %2987 = vmatpush.msrb.mxu0 %v2576_v34  ;;  %2809 = vmatpush.msra.mxu3 %v2571_v44  ;;  %v2412_v4 = vld [vmem:[%s6362_s11 + $0x108] sm:$0xff]  ;;  %v2510_v34 = vld [vmem:[%s6362_s11 + $0x418] sm:$0xff] }
 0x642   : > { %2848 = vmatpush.msra.mxu1 %v2637_v23  ;;  %2868 = vmatpush.msra.mxu2 %v2382_v31  ;;  %v2570_v44 = vld [vmem:[%s6362_s11 + $0x5f8] sm:$0xff]  ;;  %v2476_v23 = vld [vmem:[%s6362_s11 + $0x308] sm:$0xff] }
 0x643   : > { %3442 = vmatmul.msk.f32.vlgmr.msra.gmra.mxu3 %vm5654_vm4, %v5790_v42  ;;  %2988 = vmatpush.msrb.mxu0 %v2574_v56  ;;  %v2508_v31 = vld [vmem:[%s6362_s11 + $0x408] sm:$0xff] }
 0x644   : > { %2874 = vmatpush.msrb.mxu3 %v2442_v35  ;;  %2849 = vmatpush.msra.mxu1 %v2635_v9  ;;  %v2568_v56 = vld [vmem:[%s6362_s11 + $0x5e8] sm:$0xff] }
 0x645   : > { %2869 = vmatpush.msra.mxu2 %v2380_v12  ;;  %3444 = vmatmul.msk.f32.vlgmr.msra.gmra.mxu1 %vm5666_vm7, %v5900_v24  ;;  %v2632_v35 = vld [vmem:[%s6362_s11 + $0x7e8] sm:$0xff] }
 0x646   : > { %3446 = vmatmul.msk.f32.vlgmr.msra.gmra.mxu2 %vm5654_vm4, %v5664_v21  ;;  %2875 = vmatpush.msrb.mxu3 %v2440_v53  ;;  %v2664_v9 = vld [vmem:[%s6362_s11 + $0x8e8] sm:$0xff]  ;;  %v2630_v21 = vld [vmem:[%s6362_s11 + $0x7d8] sm:$0xff] }
 0x647   : > { %2914 = vmatpush.msrb.mxu1 %v2506_v62  ;;  %2934 = vmatpush.msrb.mxu2 %v2538_v20  ;;  %v2628_v12 = vld [vmem:[%s6362_s11 + $0x7c8] sm:$0xff]  ;;  %v2626_v20 = vld [vmem:[%s6362_s11 + $0x7b8] sm:$0xff] }
 0x648   : > { %2989 = vmatpush.msrb.mxu0 %v2572_v32  ;;  %2876 = vmatpush.msrb.mxu3 %v2438_v59  ;;  %v2660_v53 = vld [vmem:[%s6362_s11 + $0x8c8] sm:$0xff]  ;;  %v2658_v32 = vld [vmem:[%s6362_s11 + $0x8b8] sm:$0xff] }
 0x649   : > { %3454 = vmatmul.msk.f32.vlgmr.msrb.gmra.mxu0 %vm5654_vm4, %v5790_v42  ;;  %2915 = vmatpush.msrb.mxu1 %v2504_v48  ;;  %v2560_v62 = vld [vmem:[%s6362_s11 + $0x5a8] sm:$0xff]  ;;  %v2558_v59 = vld [vmem:[%s6362_s11 + $0x598] sm:$0xff] }
 0x64a   : > { %2935 = vmatpush.msrb.mxu2 %v2536_v27  ;;  %2877 = vmatpush.msrb.mxu3 %v2436_v10  ;;  %v2624_v48 = vld [vmem:[%s6362_s11 + $0x7a8] sm:$0xff] }
 0x64b   : > { %2916 = vmatpush.msrb.mxu1 %v2502_v8  ;;  %v2656_v27 = vld [vmem:[%s6362_s11 + $0x8a8] sm:$0xff]  ;;  %v2622_v8 = vld [vmem:[%s6362_s11 + $0x798] sm:$0xff] }
 0x64c   : > { %2936 = vmatpush.msrb.mxu2 %v2534_v52  ;;  %2878 = vmatpush.msrb.mxu3 %v2434_v58  ;;  %v2556_v10 = vld [vmem:[%s6362_s11 + $0x588] sm:$0xff]  ;;  %v2654_v52 = vld [vmem:[%s6362_s11 + $0x898] sm:$0xff] }
 0x64d   : > { %2917 = vmatpush.msrb.mxu1 %v2500_v33  ;;  %v2554_v58 = vld [vmem:[%s6362_s11 + $0x578] sm:$0xff]  ;;  %v2620_v33 = vld [vmem:[%s6362_s11 + $0x788] sm:$0xff] }
 0x64e   : > { %2937 = vmatpush.msrb.mxu2 %v2532_v63  ;;  %2879 = vmatpush.msrb.mxu3 %v2432_v6  ;;  %v2652_v63 = vld [vmem:[%s6362_s11 + $0x888] sm:$0xff] }
 0x64f   : > { %2918 = vmatpush.msrb.mxu1 %v2498_v19  ;;  %v2552_v6 = vld [vmem:[%s6362_s11 + $0x568] sm:$0xff]  ;;  %v2618_v19 = vld [vmem:[%s6362_s11 + $0x778] sm:$0xff] }
 0x650   : > { %2938 = vmatpush.msrb.mxu2 %v2530_v61  ;;  %2880 = vmatpush.msrb.mxu3 %v2430_v25  ;;  %v2650_v61 = vld [vmem:[%s6362_s11 + $0x878] sm:$0xff] }
 0x651   : > { %2919 = vmatpush.msrb.mxu1 %v2496_v45  ;;  %v2550_v25 = vld [vmem:[%s6362_s11 + $0x558] sm:$0xff]  ;;  %v2616_v45 = vld [vmem:[%s6362_s11 + $0x768] sm:$0xff] }
 0x652   : > { %2939 = vmatpush.msrb.mxu2 %v2528_v50  ;;  %2881 = vmatpush.msrb.mxu3 %v2428_v39  ;;  %v2648_v50 = vld [vmem:[%s6362_s11 + $0x868] sm:$0xff] }
 0x653   : > { %2920 = vmatpush.msrb.mxu1 %v2494_v11  ;;  %v2548_v39 = vld [vmem:[%s6362_s11 + $0x548] sm:$0xff]  ;;  %v2614_v11 = vld [vmem:[%s6362_s11 + $0x758] sm:$0xff] }
 0x654   : > { %2940 = vmatpush.msrb.mxu2 %v2526_v16  ;;  %2882 = vmatpush.msrb.mxu3 %v2426_v37  ;;  %v2646_v16 = vld [vmem:[%s6362_s11 + $0x858] sm:$0xff] }
 0x655   : > { %2921 = vmatpush.msrb.mxu1 %v2492_v36  ;;  %v2546_v37 = vld [vmem:[%s6362_s11 + $0x538] sm:$0xff]  ;;  %v2612_v36 = vld [vmem:[%s6362_s11 + $0x748] sm:$0xff] }
 0x656   : > { %2941 = vmatpush.msrb.mxu2 %v2524_v15  ;;  %2883 = vmatpush.msrb.mxu3 %v2424_v22  ;;  %v2644_v15 = vld [vmem:[%s6362_s11 + $0x848] sm:$0xff] }
 0x657   : > { %2922 = vmatpush.msrb.mxu1 %v2490_v38  ;;  %v2544_v22 = vld [vmem:[%s6362_s11 + $0x528] sm:$0xff]  ;;  %v2610_v38 = vld [vmem:[%s6362_s11 + $0x738] sm:$0xff] }
 0x658   : > { %2942 = vmatpush.msrb.mxu2 %v2522_v17  ;;  %2884 = vmatpush.msrb.mxu3 %v2422_v60  ;;  %v2642_v17 = vld [vmem:[%s6362_s11 + $0x838] sm:$0xff] }
 0x659   : > { %2923 = vmatpush.msrb.mxu1 %v2488_v40  ;;  %v2542_v60 = vld [vmem:[%s6362_s11 + $0x518] sm:$0xff]  ;;  %v2608_v40 = vld [vmem:[%s6362_s11 + $0x728] sm:$0xff] }
 0x65a   : > { %2943 = vmatpush.msrb.mxu2 %v2520_v55  ;;  %2885 = vmatpush.msrb.mxu3 %v2420_v0  ;;  %v2640_v55 = vld [vmem:[%s6362_s11 + $0x828] sm:$0xff] }
 0x65b   : > { %2924 = vmatpush.msrb.mxu1 %v2486_v29  ;;  %v2540_v0 = vld [vmem:[%s6362_s11 + $0x508] sm:$0xff]  ;;  %v2606_v29 = vld [vmem:[%s6362_s11 + $0x718] sm:$0xff] }
 0x65c   : > { %2944 = vmatpush.msrb.mxu2 %v2518_v2  ;;  %2886 = vmatpush.msrb.mxu3 %v2418_v7  ;;  %v2638_v2 = vld [vmem:[%s6362_s11 + $0x818] sm:$0xff]  ;;  %v2604_v7 = vld [vmem:[%s6362_s11 + $0x708] sm:$0xff] }
 0x65d   : > { %2925 = vmatpush.msrb.mxu1 %v2484_v51  ;;  %v2636_v51 = vld [vmem:[%s6362_s11 + $0x808] sm:$0xff] }
 0x65e   : > { %2945 = vmatpush.msrb.mxu2 %v2516_v13  ;;  %2887 = vmatpush.msrb.mxu3 %v2416_v14  ;;  %v3066_v13 = vld [vmem:[%s6364_s13] sm:$0x7] }
 0x65f   : > { %2926 = vmatpush.msrb.mxu1 %v2482_v43  ;;  %v3064_v14 = vld [vmem:[%s3982_s27] sm:$0x1]  ;;  %s6451_s27 = sld [smem:[#allocation20_spill]] }
 0x660   : > { %2946 = vmatpush.msrb.mxu2 %v2514_v47  ;;  %2888 = vmatpush.msrb.mxu3 %v2414_v57  ;;  %v3118_v43 = vld [vmem:[#allocation4 + $0x78] sm:$0xff]  ;;  %v3117_v47 = vld [vmem:[#allocation4 + $0x70] sm:$0xff] }
 0x661   : > { %2927 = vmatpush.msrb.mxu1 %v2480_v26  ;;  %3146 = vmatpush.msra.mxu0 %v3118_v43  ;;  %v3126_v43 = vld [vmem:[#allocation4 + $0xb8] sm:$0xff] }
 0x662   : > { %2947 = vmatpush.msrb.mxu2 %v2512_v5  ;;  %2889 = vmatpush.msrb.mxu3 %v2412_v4  ;;  %v3114_v4 = vld [vmem:[#allocation4 + $0x58] sm:$0xff] }
 0x663   : > { %2928 = vmatpush.msrb.mxu1 %v2478_v54  ;;  %2890 = vmatmul.f32.vlgmr.msrb.gmra.mxu3 %v2370_v49  ;;  %v2566_v49 = vld [vmem:[%s6362_s11 + $0x5d8] sm:$0xff] }
 0x664   : > { %2948 = vmatpush.msrb.mxu2 %v2510_v34  ;;  %2954 = vmatpush.msra.mxu3 %v2570_v44  ;;  %v3113_v34 = vld [vmem:[#allocation4 + $0x50] sm:$0xff] }
 0x665   : > { %2929 = vmatpush.msrb.mxu1 %v2476_v23  ;;  %3147 = vmatpush.msra.mxu0 %v3117_v47  ;;  %v3112_v23 = vld [vmem:[#allocation4 + $0x48] sm:$0xff]  ;;  %s718_s1 = scalar_lea.vmem %s6451_s27, %s6458_s0 }
 0x666   : > { %2949 = vmatpush.msrb.mxu2 %v2508_v31  ;;  %3450 = vmatmul.msk.f32.vlgmr.msrb.gmra.mxu1 %vm5654_vm4, %v5675_v1  ;;  %v2662_v1 = vld [vmem:[%s6362_s11 + $0x8d8] sm:$0xff] }
 0x667   : > { %2950 = vmatmul.f32.vlgmr.msrb.gmra.mxu2 %v2372_v41  ;;  %2955 = vmatpush.msra.mxu3 %v2568_v56  ;;  %v2562_v41 = vld [vmem:[%s6362_s11 + $0x5b8] sm:$0xff] }
 0x668   : > { %2994 = vmatpush.msra.mxu1 %v2634_v46  ;;  %3014 = vmatpush.msra.mxu2 %v2666_v30  ;;  %v3111_v46 = vld [vmem:[#allocation4 + $0x40] sm:$0xff] }
 0x669   : > { %2956 = vmatpush.msra.mxu3 %v2566_v49  ;;  %3148 = vmatpush.msra.mxu0 %v3116_v28  ;;  %v3110_v49 = vld [vmem:[#allocation4 + $0x38] sm:$0xff]  ;;  %v3123_v28 = vld [vmem:[#allocation4 + $0xa0] sm:$0xff] }
 0x66a   : > { %2995 = vmatpush.msra.mxu1 %v2632_v35  ;;  %3015 = vmatpush.msra.mxu2 %v2664_v9  ;;  %v3109_v35 = vld [vmem:[#allocation4 + $0x30] sm:$0xff] }
 0x66b   : > { %2957 = vmatpush.msra.mxu3 %v2564_v3  ;;  %v3108_v3 = vld [vmem:[#allocation4 + $0x28] sm:$0xff] }
 0x66c   : > { %2996 = vmatpush.msra.mxu1 %v2630_v21  ;;  %3016 = vmatpush.msra.mxu2 %v2662_v1  ;;  %v3107_v1 = vld [vmem:[#allocation4 + $0x20] sm:$0xff] }
 0x66d   : > { %2958 = vmatpush.msra.mxu3 %v2562_v41 }
 0x66e   : > { %2997 = vmatpush.msra.mxu1 %v2628_v12  ;;  %3017 = vmatpush.msra.mxu2 %v2660_v53  ;;  %v3106_v12 = vld [vmem:[#allocation4 + $0x18] sm:$0xff] }
 0x66f   : > { %2959 = vmatpush.msra.mxu3 %v2560_v62  ;;  %v3105_v62 = vld [vmem:[#allocation4 + $0x10] sm:$0xff] }
 0x670   : > { %2998 = vmatpush.msra.mxu1 %v2626_v20  ;;  %3018 = vmatpush.msra.mxu2 %v2658_v32 }
 0x671   : > { %2960 = vmatpush.msra.mxu3 %v2558_v59  ;;  %v3104_v59 = vld [vmem:[#allocation4 + $0x8] sm:$0xff] }
 0x672   : > { %2999 = vmatpush.msra.mxu1 %v2624_v48  ;;  %3019 = vmatpush.msra.mxu2 %v2656_v27 }
 0x673   : > { %2961 = vmatpush.msra.mxu3 %v2556_v10  ;;  %v3103_v10 = vld [vmem:[#allocation4] sm:$0xff] }
 0x674   : > { %3000 = vmatpush.msra.mxu1 %v2622_v8  ;;  %3020 = vmatpush.msra.mxu2 %v2654_v52 }
 0x675   : > { %2962 = vmatpush.msra.mxu3 %v2554_v58 }
 0x676   : > { %3001 = vmatpush.msra.mxu1 %v2620_v33  ;;  %3021 = vmatpush.msra.mxu2 %v2652_v63 }
 0x677   : > { %2963 = vmatpush.msra.mxu3 %v2552_v6 }
 0x678   : > { %3002 = vmatpush.msra.mxu1 %v2618_v19  ;;  %3022 = vmatpush.msra.mxu2 %v2650_v61 }
 0x679   : > { %2964 = vmatpush.msra.mxu3 %v2550_v25 }
 0x67a   : > { %3003 = vmatpush.msra.mxu1 %v2616_v45  ;;  %3023 = vmatpush.msra.mxu2 %v2648_v50 }
 0x67b   : > { %2965 = vmatpush.msra.mxu3 %v2548_v39 }
 0x67c   : > { %3004 = vmatpush.msra.mxu1 %v2614_v11  ;;  %3024 = vmatpush.msra.mxu2 %v2646_v16 }
 0x67d   : > { %2966 = vmatpush.msra.mxu3 %v2546_v37 }
 0x67e   : > { %3005 = vmatpush.msra.mxu1 %v2612_v36  ;;  %3025 = vmatpush.msra.mxu2 %v2644_v15  ;;  %v3134_v15 = vld [vmem:[#allocation4 + $0xf8] sm:$0xff] }
 0x67f   : > { %2967 = vmatpush.msra.mxu3 %v2544_v22  ;;  %v3133_v22 = vld [vmem:[#allocation4 + $0xf0] sm:$0xff] }
 0x680   : > { %3006 = vmatpush.msra.mxu1 %v2610_v38  ;;  %3026 = vmatpush.msra.mxu2 %v2642_v17  ;;  %v3132_v38 = vld [vmem:[#allocation4 + $0xe8] sm:$0xff] }
 0x681   : > { %2968 = vmatpush.msra.mxu3 %v2542_v60  ;;  %v3131_v60 = vld [vmem:[#allocation4 + $0xe0] sm:$0xff] }
 0x682   : > { %3007 = vmatpush.msra.mxu1 %v2608_v40  ;;  %3027 = vmatpush.msra.mxu2 %v2640_v55  ;;  %v3130_v40 = vld [vmem:[#allocation4 + $0xd8] sm:$0xff] }
 0x683   : > { %2969 = vmatpush.msra.mxu3 %v2540_v0 }
 0x684   : > { %3008 = vmatpush.msra.mxu1 %v2606_v29  ;;  %3028 = vmatpush.msra.mxu2 %v2638_v2  ;;  %v3129_v29 = vld [vmem:[#allocation4 + $0xd0] sm:$0xff] }
 0x685   : > { %3452 = vmatmul.msk.f32.vlgmr.msra.gmra.mxu3 %vm5666_vm7, %v5790_v42  ;;  %v6218_v42 = vld [vmem:[%s6363_s12] sm:$0x77] }
 0x686   : > { %3009 = vmatpush.msra.mxu1 %v2604_v7  ;;  %3029 = vmatpush.msra.mxu2 %v2636_v51  ;;  %v3052_v39 = vperm.slane %v6218_v42, 1  ;;  %v3058_v16 = vperm.slane %v6218_v42, 2  ;;  %v2669_v17 = vperm.slane %v6218_v42, 4  ;;  %v3128_v7 = vld [vmem:[#allocation4 + $0xc8] sm:$0xff] }
 0x687   : > { %3010 = vmatmul.f32.vlgmr.msra.gmra.mxu1 %v5693_v18  ;;  %3456 = vmatmul.msk.f32.vlgmr.msra.gmra.mxu2 %vm5666_vm7, %v5900_v24  ;;  %v2668_v18 = vperm.slane %v6218_v42, 0  ;;  %v3115_v24 = vld [vmem:[#allocation4 + $0x60] sm:$0xff] }
 0x688   : > { %3457 = vmatpush.msk.msrb.mxu3 %vm2069_vm15, %v3066_v13  ;;  %3149 = vmatpush.msra.mxu0 %v3115_v24  ;;  %v2673_v55 = vperm.slane %v2669_v17, 0  ;;  %v3127_v13 = vld [vmem:[#allocation4 + $0xc0] sm:$0xff]  ;;  %v3142_v24 = vld [vmem:[#allocation4 + $0x138] sm:$0xff]  ;;  %v3228_v17 = vld [vmem:[%s6368_s17 + $0x70] sm:$0xff] }
 0x689   : > { %v2672_v57 = vperm.slane %v2668_v18, 0  ;;  %v3125_v18 = vld [vmem:[#allocation4 + $0xb0] sm:$0xff] }
 0x68a   : > { %3150 = vmatpush.msra.mxu0 %v3114_v4  ;;  %3166 = vmatpush.msra.mxu3 %v3134_v15 }
 0x68c   : > { %3151 = vmatpush.msra.mxu0 %v3113_v34  ;;  %3167 = vmatpush.msra.mxu3 %v3133_v22 }
 0x68d   : > { %3458 = vmatmul.msk.f32.vlgmr.msrb.gmra.mxu3 %vm3067_vm2, %v3064_v14 }
 0x68e   : > { %3152 = vmatpush.msra.mxu0 %v3112_v23  ;;  %3168 = vmatpush.msra.mxu3 %v3132_v38  ;;  %v3121_v23 = vld [vmem:[#allocation4 + $0x90] sm:$0xff] }
 0x68f   : > { %v3229_v38 = vld [vmem:[%s6368_s17 + $0x78] sm:$0xff] }
 0x690   : > { %3153 = vmatpush.msra.mxu0 %v3111_v46  ;;  %3169 = vmatpush.msra.mxu3 %v3131_v60  ;;  %v3120_v46 = vld [vmem:[#allocation4 + $0x88] sm:$0xff] }
 0x691   : > { %3231 = vmatpush.msrb.mxu2 %v3229_v38  ;;  %v3227_v60 = vld [vmem:[%s6368_s17 + $0x68] sm:$0xff] }
 0x692   : > { %3154 = vmatpush.msra.mxu0 %v3110_v49  ;;  %3170 = vmatpush.msra.mxu3 %v3130_v40  ;;  %v3138_v49 = vld [vmem:[#allocation4 + $0x118] sm:$0xff] }
 0x693   : > { %3232 = vmatpush.msrb.mxu2 %v3228_v17  ;;  %v3225_v40 = vld [vmem:[%s6368_s17 + $0x58] sm:$0xff] }
 0x694   : > { %3155 = vmatpush.msra.mxu0 %v3109_v35  ;;  %3171 = vmatpush.msra.mxu3 %v3129_v29  ;;  %v3222_v29 = vld [vmem:[%s6368_s17 + $0x40] sm:$0xff] }
 0x695   : > { %3233 = vmatpush.msrb.mxu2 %v3227_v60 }
 0x696   : > { %3156 = vmatpush.msra.mxu0 %v3108_v3  ;;  %3172 = vmatpush.msra.mxu3 %v3128_v7  ;;  %v3220_v7 = vld [vmem:[%s6368_s17 + $0x30] sm:$0xff] }
 0x698   : > { %3157 = vmatpush.msra.mxu0 %v3107_v1  ;;  %3173 = vmatpush.msra.mxu3 %v3127_v13  ;;  %v3218_v13 = vld [vmem:[%s6368_s17 + $0x20] sm:$0xff] }
 0x69a   : > { %3158 = vmatpush.msra.mxu0 %v3106_v12  ;;  %3174 = vmatpush.msra.mxu3 %v3126_v43  ;;  %v3136_v12 = vld [vmem:[#allocation4 + $0x108] sm:$0xff] }
 0x69b   : > { %v3216_v43 = vld [vmem:[%s6368_s17 + $0x10] sm:$0xff] }
 0x69c   : > { %3159 = vmatpush.msra.mxu0 %v3105_v62  ;;  %3175 = vmatpush.msra.mxu3 %v3125_v18  ;;  %v3267_v18 = vld [vmem:[%s6370_s19 + $0x78] sm:$0xff] }
 0x69d   : > { %3269 = vmatpush.msrb.mxu1 %v3267_v18 }
 0x69e   : > { %3160 = vmatpush.msra.mxu0 %v3104_v59  ;;  %v3065_v59 = vld [vmem:[%s6365_s14] sm:$0x7] }
 0x69f   : > { %v2711_v54 = vpop.f32.mrf.mxu1 }
 0x6a0   : > { %3161 = vmatpush.msra.mxu0 %v3103_v10 }
 0x6a1   : > { %v2831_v27 = vpop.f32.mrf.mxu0 }
 0x6a2   : > { %3194 = vmatpush.msrb.mxu0 %v3142_v24  ;;  %v3264_v24 = vld [vmem:[%s6370_s19 + $0x60] sm:$0xff] }
 0x6a3   : > { %v2691_v26 = vpop.f32.mrf.mxu3 }
 0x6a4   : > { %v2692_v5 = vadd.f32 %v2691_v26, %v2672_v57  ;;  %v3124_v26 = vld [vmem:[#allocation4 + $0xa8] sm:$0xff] }
 0x6a5   : > { %v2731_v31 = vpop.f32.mrf.mxu2  ;;  %3176 = vmatpush.msra.mxu3 %v3124_v26  ;;  %v3214_v26 = vld [vmem:[%s6368_s17] sm:$0xff] }
 0x6a6   : > { %v2712_v44 = vadd.f32 %v2711_v54, %v2692_v5  ;;  %v3141_v5 = vld [vmem:[#allocation4 + $0x130] sm:$0xff]  ;;  %v3122_v54 = vld [vmem:[#allocation4 + $0x98] sm:$0xff] }
 0x6a7   : > { %3177 = vmatpush.msra.mxu3 %v3123_v28  ;;  %3195 = vmatpush.msrb.mxu0 %v3141_v5  ;;  %v3265_v28 = vld [vmem:[%s6370_s19 + $0x68] sm:$0xff]  ;;  %v3263_v5 = vld [vmem:[%s6370_s19 + $0x58] sm:$0xff] }
 0x6a8   : > { %v2732_v30 = vadd.f32 %v2731_v31, %v2712_v44  ;;  %v3140_v44 = vld [vmem:[#allocation4 + $0x128] sm:$0xff]  ;;  %v3139_v31 = vld [vmem:[#allocation4 + $0x120] sm:$0xff] }
 0x6a9   : > { %3178 = vmatpush.msra.mxu3 %v3122_v54  ;;  %3196 = vmatpush.msrb.mxu0 %v3140_v44  ;;  %v3261_v54 = vld [vmem:[%s6370_s19 + $0x48] sm:$0xff] }
 0x6ab   : > { %3179 = vmatpush.msra.mxu3 %v3121_v23  ;;  %3197 = vmatpush.msrb.mxu0 %v3139_v31  ;;  %v3259_v23 = vld [vmem:[%s6370_s19 + $0x38] sm:$0xff]  ;;  %v3258_v31 = vld [vmem:[%s6370_s19 + $0x30] sm:$0xff] }
 0x6ad   : > { %3180 = vmatpush.msra.mxu3 %v3120_v46  ;;  %3198 = vmatpush.msrb.mxu0 %v3138_v49  ;;  %v3257_v46 = vld [vmem:[%s6370_s19 + $0x28] sm:$0xff]  ;;  %v3256_v49 = vld [vmem:[%s6370_s19 + $0x20] sm:$0xff] }
 0x6b2   : > { %v2751_v56 = vpop.f32.mrf.mxu3 }
 0x6b3   : > { %v2752_v9 = vadd.f32 %v2751_v56, %v2732_v30 }
 0x6b5   : > { %v2771_v21 = vpop.f32.mrf.mxu1  ;;  %v2911_v47 = vpop.f32.mrf.mxu0 }
 0x6b6   : > { %v2772_v41 = vadd.f32 %v2771_v21, %v2752_v9  ;;  %v3119_v9 = vld [vmem:[#allocation4 + $0x80] sm:$0xff]  ;;  %v3137_v21 = vld [vmem:[#allocation4 + $0x110] sm:$0xff] }
 0x6b7   : > { %v2791_v53 = vpop.f32.mrf.mxu2  ;;  %3181 = vmatpush.msra.mxu3 %v3119_v9  ;;  %3199 = vmatpush.msrb.mxu0 %v3137_v21  ;;  %v3255_v21 = vld [vmem:[%s6370_s19 + $0x18] sm:$0xff] }
 0x6b8   : > { %v2792_v20 = vadd.f32 %v2791_v53, %v2772_v41 }
 0x6b9   : > { %3200 = vmatpush.msrb.mxu0 %v3136_v12 }
 0x6c2   : > { %v2851_v52 = vpop.f32.mrf.mxu1 }
 0x6c6   : > { %v2811_v32 = vpop.f32.mrf.mxu3  ;;  %v2991_v1 = vpop.f32.mrf.mxu0 }
 0x6c7   : > { %v2812_v48 = vadd.f32 %v2811_v32, %v2792_v20  ;;  %v3135_v20 = vld [vmem:[#allocation4 + $0x100] sm:$0xff] }
 0x6c8   : > { %3201 = vmatpush.msrb.mxu0 %v3135_v20 }
 0x6c9   : > { %v2832_v8 = vadd.f32 %v2831_v27, %v2812_v48  ;;  %v2871_v0 = vpop.f32.mrf.mxu2 }
 0x6ca   : > { %v2872_v51 = vadd.f32 %v2871_v0, %v2673_v55  ;;  %v3224_v55 = vld [vmem:[%s6368_s17 + $0x50] sm:$0xff]  ;;  %v3223_v0 = vld [vmem:[%s6368_s17 + $0x48] sm:$0xff] }
 0x6cb   : > { %v2852_v58 = vadd.f32 %v2851_v52, %v2832_v8  ;;  %v3096_v52 = vrot.slane %v3065_v59, 1 }
 0x6cd   : > { %v3034_v33 = vmax.f32 %v2852_v58, 0.0 }
 0x6cf   : > { %v3036_v63 = vsel %vm2024_vm12, %v3034_v33, 0.0 }
 0x6d0   : > { %v3037_v6 = vrot.slane %v3036_v63, 4 }
 0x6d2   : > { %v3038_v19 = vadd.f32 %v3037_v6, %v3036_v63  ;;  %v3099_v63 = vrot.slane %v3065_v59, 2 }
 0x6d4   : > { %v3039_v61 = vrot.slane %v3038_v19, 2 }
 0x6d6   : > { %v3040_v25 = vadd.f32 %v3039_v61, %v3038_v19 }
 0x6d8   : > { %v3041_v45 = vrot.slane %v3040_v25, 1 }
 0x6da   : > { %v3042_v50 = vadd.f32 %v3041_v45, %v3040_v25 }
 0x6dc   : > { %v3050_v11 = vmul.f32 0.25, %v3042_v50 }
 0x6de   : > { %v3056_v37 = vmul.f32 %v3052_v39, %v3050_v11 }
 0x6e0   : > { %v3062_v36 = vadd.f32 %v3058_v16, %v3056_v37  ;;  %v3053_v16 = vperm.slane %v6218_v42, 5 }
 0x6e2   : > { %3162 = vmatmul.f32.vlgmr.msra.gmra.mxu0 %v3062_v36  ;;  %v3059_v36 = vperm.slane %v6218_v42, 6  ;;  %v3226_v42 = vld [vmem:[%s6368_s17 + $0x60] sm:$0xff] }
 0x6e3   : > { %v2931_v4 = vpop.f32.mrf.mxu1  ;;  %3234 = vmatpush.msrb.mxu2 %v3226_v42 }
 0x6e5   : > { %3235 = vmatpush.msrb.mxu2 %v3225_v40 }
 0x6e6   : > { %v2891_v2 = vpop.f32.mrf.mxu3 }
 0x6e7   : > { %v2892_v14 = vadd.f32 %v2891_v2, %v2872_v51  ;;  %3236 = vmatpush.msrb.mxu2 %v3224_v55  ;;  %v3221_v2 = vld [vmem:[%s6368_s17 + $0x38] sm:$0xff]  ;;  %v3219_v51 = vld [vmem:[%s6368_s17 + $0x28] sm:$0xff] }
 0x6e9   : > { %v2912_v57 = vadd.f32 %v2911_v47, %v2892_v14  ;;  %3237 = vmatpush.msrb.mxu2 %v3223_v0  ;;  %v3217_v14 = vld [vmem:[%s6368_s17 + $0x18] sm:$0xff]  ;;  %v3215_v47 = vld [vmem:[%s6368_s17 + $0x8] sm:$0xff] }
 0x6ea   : > { %v2951_v56 = vpop.f32.mrf.mxu2 }
 0x6eb   : > { %v2932_v34 = vadd.f32 %v2931_v4, %v2912_v57  ;;  %3238 = vmatpush.msrb.mxu2 %v3222_v29  ;;  %v3266_v57 = vld [vmem:[%s6370_s19 + $0x70] sm:$0xff] }
 0x6ec   : > { %3270 = vmatpush.msrb.mxu1 %v3266_v57  ;;  %v3262_v4 = vld [vmem:[%s6370_s19 + $0x50] sm:$0xff] }
 0x6ed   : > { %v2952_v30 = vadd.f32 %v2951_v56, %v2932_v34  ;;  %3239 = vmatpush.msrb.mxu2 %v3221_v2  ;;  %v3260_v34 = vld [vmem:[%s6370_s19 + $0x40] sm:$0xff] }
 0x6ee   : > { %3271 = vmatpush.msrb.mxu1 %v3265_v28  ;;  %v3102_v56 = vld [vmem:[#allocation6] sm:$0x7] }
 0x6ef   : > { %3240 = vmatpush.msrb.mxu2 %v3220_v7  ;;  %v3211_v12 = vrot.slane %v3102_v56, 2 }
 0x6f0   : > { %3272 = vmatpush.msrb.mxu1 %v3264_v24 }
 0x6f1   : > { %3241 = vmatpush.msrb.mxu2 %v3219_v51 }
 0x6f2   : > { %3273 = vmatpush.msrb.mxu1 %v3263_v5 }
 0x6f3   : > { %3242 = vmatpush.msrb.mxu2 %v3218_v13 }
 0x6f4   : > { %3274 = vmatpush.msrb.mxu1 %v3262_v4 }
 0x6f5   : > { %3243 = vmatpush.msrb.mxu2 %v3217_v14 }
 0x6f6   : > { %3275 = vmatpush.msrb.mxu1 %v3261_v54 }
 0x6f7   : > { %3244 = vmatpush.msrb.mxu2 %v3216_v43 }
 0x6f8   : > { %3276 = vmatpush.msrb.mxu1 %v3260_v34 }
 0x6f9   : > { %3245 = vmatpush.msrb.mxu2 %v3215_v47 }
 0x6fa   : > { %3277 = vmatpush.msrb.mxu1 %v3259_v23 }
 0x6fb   : > { %3246 = vmatpush.msrb.mxu2 %v3214_v26 }
 0x6fc   : > { %3278 = vmatpush.msrb.mxu1 %v3258_v31 }
 0x6fe   : > { %3279 = vmatpush.msrb.mxu1 %v3257_v46 }
 0x700   : > { %3280 = vmatpush.msrb.mxu1 %v3256_v49 }
 0x702   : > { %3281 = vmatpush.msrb.mxu1 %v3255_v21 }
 0x704   : > { %v3011_v53 = vpop.f32.mrf.mxu1 }
 0x708   : > { %v2971_v35 = vpop.f32.mrf.mxu3 }
 0x709   : > { %v2972_v3 = vadd.f32 %v2971_v35, %v2952_v30 }
 0x70a   : > { %v3031_v32 = vpop.f32.mrf.mxu2 }
 0x70b   : > { %v2992_v41 = vadd.f32 %v2991_v1, %v2972_v3 }
 0x70d   : > { %v3012_v62 = vadd.f32 %v3011_v53, %v2992_v41  ;;  %v3208_v41 = vrot.slane %v3102_v56, 1 }
 0x70f   : > { %v3032_v48 = vadd.f32 %v3031_v32, %v3012_v62  ;;  %v3254_v32 = vld [vmem:[%s6370_s19 + $0x10] sm:$0xff] }
 0x710   : > { %v3091_v27 = vpop.f32.mrf.mxu3  ;;  %3282 = vmatpush.msrb.mxu1 %v3254_v32 }
 0x711   : > { %v3035_v10 = vmax.f32 %v3032_v48, 0.0  ;;  %v3092_v8 = vadd.f32 %v3091_v27, %v3065_v59  ;;  %v3253_v59 = vld [vmem:[%s6370_s19 + $0x8] sm:$0xff]  ;;  %v3252_v48 = vld [vmem:[%s6370_s19] sm:$0xff] }
 0x712   : > { %3283 = vmatpush.msrb.mxu1 %v3253_v59  ;;  %v3230_v27 = vld [vmem:[%s6369_s18] sm:$0x1] }
 0x713   : > { %v3043_v58 = vsel %vm2024_vm12, %v3035_v10, 0.0  ;;  %v3094_v33 = vmax.f32 %v3092_v8, 0.0 }
 0x714   : > { %v3044_v6 = vrot.slane %v3043_v58, 4  ;;  %3284 = vmatpush.msrb.mxu1 %v3252_v48 }
 0x715   : > { %v3098_v19 = vmul.f32 %v3096_v52, %v3094_v33 }
 0x716   : > { %v3045_v61 = vadd.f32 %v3044_v6, %v3043_v58  ;;  %v3268_v58 = vld [vmem:[%s6371_s20] sm:$0x1] }
 0x717   : > { %v3101_v25 = vadd.f32 %v3099_v63, %v3098_v19 }
 0x718   : > { %v3046_v45 = vrot.slane %v3045_v61, 2 }
 0x719   : > { %3459 = vmatmul.msk.f32.vlgmr.msrb.gmra.mxu0 %vm1674_vm0, %v3101_v25 }
 0x71a   : > { %v3047_v50 = vadd.f32 %v3046_v45, %v3045_v61 }
 0x71c   : > { %v3048_v39 = vrot.slane %v3047_v50, 1 }
 0x71e   : > { %v3049_v11 = vadd.f32 %v3048_v39, %v3047_v50 }
 0x720   : > { %v3051_v37 = vmul.f32 0.25, %v3049_v11 }
 0x722   : > { %v3057_v15 = vmul.f32 %v3053_v16, %v3051_v37 }
 0x724   : > { %v3063_v22 = vadd.f32 %v3059_v36, %v3057_v15 }
 0x726   : > { %3182 = vmatmul.f32.vlgmr.msra.gmra.mxu3 %v3063_v22 }
 0x75f   : > { %v3163_v44 = vpop.f32.mrf.mxu0 }
 0x760   : > { %v3164_v30 = vadd.f32 %v3163_v44, %v3102_v56 }
 0x796   : > { %v3203_v9 = vpop.f32.mrf.mxu0 }
 0x7a9   : > { %v3183_v35 = vpop.f32.mrf.mxu3 }
 0x7aa   : > { %v3184_v3 = vadd.f32 %v3183_v35, %v3164_v30 }
 0x7ac   : > { %v3204_v1 = vadd.f32 %v3203_v9, %v3184_v3 }
 0x7ae   : > { %v3206_v53 = vmax.f32 %v3204_v1, 0.0 }
 0x7b0   : > { %v3210_v62 = vmul.f32 %v3208_v41, %v3206_v53 }
 0x7b2   : > { %v3213_v20 = vadd.f32 %v3211_v12, %v3210_v62 }
 0x7b4   : > { %3247 = vmatmul.f32.vlgmr.msrb.gmra.mxu2 %v3213_v20 }
 0x837   : > { %v3248_v10 = vpop.f32.mrf.mxu2 }
 0x838   : > { %v3249_v8 = vadd.f32 %v3248_v10, %v3230_v27 }
 0x83a   : > { %v3251_v52 = vmax.f32 %v3249_v8, 0.0 }
 0x83c   : > { %3285 = vmatmul.f32.vlgmr.msrb.gmra.mxu1 %v3251_v52 }
 0x8b9   : > { %v3286_v33 = vpop.f32.mrf.mxu1 }
 0x8ba   : > { %v3287_v63 = vadd.f32 %v3286_v33, %v3268_v58 }
 0x8bc   : > { %3290 = vst.msk [vmem:[%s718_s1] sm:$0x1] %vm3289_vm8, %v3287_v63 }
 0x8bd PF: > { %s6452_s27 = sld [smem:[#allocation10_spill]]  ;;  %s6455_s2 = smov %s3771_s25 }
 0x8be   : > { %s6453_s24 = sld [smem:[#allocation9_spill]] }
 0x8bf   : > { %s6454_s26 = sld [smem:[#allocation11_spill]] }
 0x8c3   : > { %p32_p1 = scmp.ge.s32.totalorder %s6452_s27, 4  }
 0x8c4   : > { %s6456_s25 = smov %s6453_s24 }
 0x8c5   :  { %34 = sbr.rel (!%p32_p1) target bundleno = 14 (0xe), region = 155 }
 0x8ca   :  { %3308 = vsyncpa [#allocation3], 1 }
 0x8cb   :  { %3310 = vsyncpa [#allocation3 + $0x1], 1 }
 0x8cc   :  { %3311 = vsyncpa [#allocation5], 1 }

</bundles_post_ra>
